<compile_context>
chip_gen: v7x
topology: tpu7x:2x2x1
jax: 0.10.0
libtpu: 0.0.40
codegen_flags: <defaults>
</compile_context>

<pallas_src>
import functools

import jax
import jax.numpy as jnp
import numpy as np
from jax import lax
from jax.experimental import pallas as pl
from jax.experimental.pallas import tpu as pltpu


# ---------------------------------------------------------------------------
# Static (numpy) interpolation / shift matrices
# ---------------------------------------------------------------------------
def _upsample_matrix(n_in, n_out):
    """Bilinear upsample (align_corners=True) n_in -> n_out as (n_out, n_in)."""
    if n_in == 1:
        return np.ones((n_out, 1), np.float32)
    src = np.arange(n_out, dtype=np.float32) * float(n_in - 1) / float(n_out - 1)
    lo = np.clip(np.floor(src).astype(np.int32), 0, n_in - 2)
    frac = src - lo.astype(np.float32)
    U = np.zeros((n_out, n_in), np.float32)
    U[np.arange(n_out), lo] += 1.0 - frac
    U[np.arange(n_out), lo + 1] += frac
    return U


def _shift_rows_stack(U):
    """Stack of U shifted by dh-1 rows (zero fill), dh in {0,1,2}: (3, H_out, H_in)."""
    out = np.zeros((3,) + U.shape, np.float32)
    out[0, 1:, :] = U[:-1, :]     # dh = 0  -> reads row h-1
    out[1] = U                    # dh = 1  -> reads row h
    out[2, :-1, :] = U[1:, :]     # dh = 2  -> reads row h+1
    return out


def _w_shift_stack(W):
    """S[dw, w_in, w] = 1 iff w_in == w + dw - 1 (SAME zero padding otherwise)."""
    S = np.zeros((3, W, W), np.float32)
    for dw in range(3):
        for w in range(W):
            wi = w + dw - 1
            if 0 <= wi < W:
                S[dw, wi, w] = 1.0
    return S


def _kron_channels(U, C):
    """W-axis interpolation acting on a flattened (W_in*C,) row: kron(U.T, I_C)."""
    return np.kron(U.T, np.eye(C, dtype=np.float32)).astype(np.float32)


# ---------------------------------------------------------------------------
# One-time constant preparation (review #2: hoisted out of the hot path)
# ---------------------------------------------------------------------------
def _conv_g(w_hwio, scale, w_out, kw=None):
    """Banded conv matrices: G[dh] of shape (K, w_out*Cout) with the BN scale and
    (optionally) the W-direction upsample folded in."""
    wf = w_hwio * scale.reshape(1, 1, 1, -1)                      # fold BN scale
    cin, cout = w_hwio.shape[2], w_hwio.shape[3]
    S = jnp.asarray(_w_shift_stack(w_out))                        # (3, W, W)
    B = jnp.einsum("dab,hdco->hacbo", S, wf).reshape(3, w_out * cin, w_out * cout)
    if kw is not None:
        B = jnp.einsum("ij,hjk->hik", jnp.asarray(kw), B)
    return B


def _bias_row(shift, w_out):
    return jnp.tile(shift, w_out).reshape(1, -1).astype(jnp.float32)


def prepare_aggregation_consts(params, x1_shape, x2_shape, x3_shape,
                               const_dtype=jnp.bfloat16):
    """Build all kernel constants ONCE per parameter set (cache the result)."""
    _, C, H1, W1 = x1_shape
    _, _, H2, W2 = x2_shape
    _, _, H3, W3 = x3_shape
    C2, C3 = 2 * C, 3 * C
    out_lanes = max(128, -(-2 * W3 // 128) * 128)        # lane-dense output slab

    # ---- H-direction interpolation / shift matrices (row-stacked, review #5) ----
    U12 = _upsample_matrix(H1, H2)
    U23 = _upsample_matrix(H2, H3)
    U13 = (U23 @ U12).astype(np.float32)                  # up(up(.)) composite
    A_x1 = np.concatenate([_shift_rows_stack(U12).reshape(3 * H2, H1),
                           _shift_rows_stack(U13).reshape(3 * H3, H1)], axis=0)
    A_u23 = _shift_rows_stack(U23).reshape(3 * H3, H2)
    A_i16 = _shift_rows_stack(np.eye(H2, dtype=np.float32)).reshape(3 * H2, H2)
    A_i32 = _shift_rows_stack(np.eye(H3, dtype=np.float32)).reshape(3 * H3, H3)

    # ---- W-direction upsample operators on flattened (W*C) rows ----
    KW12_C = _kron_channels(U12, C)
    KW13_C = _kron_channels(U13, C)
    KW23_C = _kron_channels(U23, C)
    KW23_2C = _kron_channels(U23, C2)

    w_u1, s_u1, sh_u1 = params["conv_upsample1"]
    w_u2, s_u2, sh_u2 = params["conv_upsample2"]
    w_u3, s_u3, sh_u3 = params["conv_upsample3"]
    w_u4, s_u4, sh_u4 = params["conv_upsample4"]
    w_u5, s_u5, sh_u5 = params["conv_upsample5"]
    w_c2, s_c2, sh_c2 = params["conv_concat2"]
    w_c3, s_c3, sh_c3 = params["conv_concat3"]
    w_4, s_4, sh_4 = params["conv4"]
    w_5, b_5 = params["conv5"]

    # ---- Banded conv matrices (BN scale + upsample folded, review #4 fusions) ----
    # conv_upsample1 | conv_upsample4 share their left operand -> column concat.
    G_u14 = jnp.concatenate([_conv_g(w_u1, s_u1, W2, KW12_C),
                             _conv_g(w_u4, s_u4, W2, KW12_C)], axis=-1)
    G_u2 = _conv_g(w_u2, s_u2, W3, KW13_C)
    G_u3 = _conv_g(w_u3, s_u3, W3, KW23_C)
    # concat convs: K-stacked weights so the kernel does ONE matmul on the
    # lane-concatenated input instead of two split-weight matmuls.
    G_c2 = jnp.concatenate([_conv_g(w_c2[:, :, :C, :], s_c2, W2),
                            _conv_g(w_c2[:, :, C:, :], s_c2, W2)], axis=1)
    G_u5 = _conv_g(w_u5, s_u5, W3, KW23_2C)
    G_c3 = jnp.concatenate([_conv_g(w_c3[:, :, :C, :], s_c3, W3),
                            _conv_g(w_c3[:, :, C:, :], s_c3, W3)], axis=1)
    # conv4 (3x3+BN) and conv5 (1x1) are both linear -> compose them; pad the
    # output columns to a 128-lane multiple (review #3, unmasked stores).
    G_4 = _conv_g(w_4, s_4, W3)                                        # (3, W3*3C, W3*3C)
    G_5w = jnp.concatenate(
        [jnp.kron(jnp.eye(W3, dtype=jnp.float32), w_5.astype(jnp.float32)),
         jnp.zeros((W3 * C3, out_lanes - 2 * W3), jnp.float32)], axis=-1)
    G_45 = jnp.einsum("hij,jk->hik", G_4, G_5w)                        # (3, W3*3C, out_lanes)

    # ---- BN shift / bias rows (kept f32: tiny, and added to f32 accumulators) ----
    b_u14 = jnp.concatenate([_bias_row(sh_u1, W2), _bias_row(sh_u4, W2)], axis=-1)
    b_u2 = _bias_row(sh_u2, W3)
    b_u3 = _bias_row(sh_u3, W3)
    b_c2 = _bias_row(sh_c2, W2)
    b_u5 = _bias_row(sh_u5, W3)
    b_c3 = _bias_row(sh_c3, W3)
    b_45 = (_bias_row(sh_4, W3) @ G_5w
            + jnp.concatenate([_bias_row(b_5, W3),
                               jnp.zeros((1, out_lanes - 2 * W3), jnp.float32)], axis=-1))

    # review #1: weights in bf16 (halves weight DMA, MXU-native); A / biases f32.
    a_consts = tuple(jnp.asarray(a, jnp.float32) for a in (A_x1, A_u23, A_i16, A_i32))
    g_consts = tuple(g.astype(const_dtype) for g in
                     (G_u14, G_u2, G_u3, G_c2, G_u5, G_c3, G_45))
    b_consts = tuple(b.astype(jnp.float32) for b in
                     (b_u14, b_u2, b_u3, b_c2, b_u5, b_c3, b_45))
    return a_consts + g_consts + b_consts


# ---------------------------------------------------------------------------
# Pallas kernel: the entire aggregation forward, one grid step per batch item
# ---------------------------------------------------------------------------
def _band(T, row0, h, g_ref, b_ref):
    """sum_dh T[row0+dh*h : row0+(dh+1)*h] @ g_ref[dh]  + bias row.

    T holds the three row-shifted / H-interpolated copies stacked along rows
    (review #5), so the slices are static, sublane-aligned and free."""
    acc = None
    for dh in range(3):
        t = lax.slice_in_dim(T, row0 + dh * h, row0 + (dh + 1) * h, axis=0)
        r = jnp.dot(t, g_ref[dh], preferred_element_type=jnp.float32)
        acc = r if acc is None else acc + r
    return acc + b_ref[...]


def _aggregation_kernel(
        x1_ref, x2_ref, x3_ref,
        a_x1_ref, a_u23_ref, a_i16_ref, a_i32_ref,
        g_u14_ref, g_u2_ref, g_u3_ref, g_c2_ref, g_u5_ref, g_c3_ref, g_45_ref,
        b_u14_ref, b_u2_ref, b_u3_ref, b_c2_ref, b_u5_ref, b_c3_ref, b_45_ref,
        out_ref):
    f32 = jnp.float32
    H2 = x2_ref.shape[1]
    H3 = x3_ref.shape[1]

    x1 = x1_ref[0]          # (H1, W1*C)
    x2 = x2_ref[0]          # (H2, W2*C)
    x3 = x3_ref[0]          # (H3, W3*C)

    # One stacked A-matmul covers every conv fed by x1 (u1/u4 at 16x16, u2 at 32x32).
    T1 = jnp.dot(a_x1_ref[...], x1, preferred_element_type=f32)       # (3H2+3H3, W1*C)

    # ----- 16x16 stage -----
    # [conv_upsample1 | conv_upsample4] share T1 -> one column-fused matmul per dh.
    acc14 = _band(T1, 0, H2, g_u14_ref, b_u14_ref)                    # (H2, 2*W2*C)
    # cat2 = [ (u1+b1)*x2 | u4+b4 ]  == channel-concat input of conv_concat2.
    mult = jnp.concatenate([x2, jnp.ones_like(x2)], axis=-1)
    cat2 = acc14 * mult                                               # (H2, 2*W2*C)
    Tc2 = jnp.dot(a_i16_ref[...], cat2, preferred_element_type=f32)   # (3H2, 2*W2*C)
    x2_2 = _band(Tc2, 0, H2, g_c2_ref, b_c2_ref)                      # (H2, W2*2C)

    # ----- 32x32 stage -----
    p = _band(T1, 3 * H2, H3, g_u2_ref, b_u2_ref)                     # convup2(up(up(x1)))
    T2 = jnp.dot(a_u23_ref[...], x2, preferred_element_type=f32)      # (3H3, W2*C)
    q = _band(T2, 0, H3, g_u3_ref, b_u3_ref)                          # convup3(up(x2))
    x3_1 = p * q * x3
    T22 = jnp.dot(a_u23_ref[...], x2_2, preferred_element_type=f32)   # (3H3, W2*2C)
    r = _band(T22, 0, H3, g_u5_ref, b_u5_ref)                         # convup5(up(x2_2))
    cat3 = jnp.concatenate([x3_1, r], axis=-1)                        # (H3, W3*3C)
    Tc3 = jnp.dot(a_i32_ref[...], cat3, preferred_element_type=f32)   # (3H3, W3*3C)
    x3_2 = _band(Tc3, 0, H3, g_c3_ref, b_c3_ref)                      # conv_concat3
    Tc4 = jnp.dot(a_i32_ref[...], x3_2, preferred_element_type=f32)   # (3H3, W3*3C)
    out = _band(Tc4, 0, H3, g_45_ref, b_45_ref)                       # conv4 + conv5, 128-lane slab
    out_ref[0] = out.astype(out_ref.dtype)


# ---------------------------------------------------------------------------
# Public forward (NCHW in / NCHW out); constants prepared once and passed in
# ---------------------------------------------------------------------------
# TODO(synk): BatchNorm is reproduced in inference mode (running stats fused to
# scale/shift); training-mode batch statistics are not modelled.
def aggregation_forward_pallas(consts, x1, x2, x3):
    N, C, H1, W1 = x1.shape
    H2, W2 = x2.shape[2], x2.shape[3]
    H3, W3 = x3.shape[2], x3.shape[3]
    out_lanes = max(128, -(-2 * W3 // 128) * 128)

    def to_rows(x):                       # NCHW -> (N, H, W*C), lane-dense
        n, c, h, w = x.shape
        return jnp.transpose(x, (0, 2, 3, 1)).reshape(n, h, w * c)

    x1r, x2r, x3r = to_rows(x1), to_rows(x2), to_rows(x3)

    def per_n(h, lanes):
        return pl.BlockSpec((1, h, lanes), lambda n: (n, 0, 0))

    def const_spec(arr):
        zeros = (0,) * arr.ndim
        # Constant block index across the grid: not re-fetched between steps on
        # single-core chips.  (On v7x each TC fetches its own copy -- review #8.)
        return pl.BlockSpec(arr.shape, lambda n: zeros)

    out_pad = pl.pallas_call(
        _aggregation_kernel,
        out_shape=jax.ShapeDtypeStruct((N, H3, out_lanes), x1.dtype),
        grid=(N,),
        in_specs=[per_n(H1, W1 * C), per_n(H2, W2 * C), per_n(H3, W3 * C)]
        + [const_spec(a) for a in consts],
        out_specs=per_n(H3, out_lanes),
        compiler_params=pltpu.CompilerParams(
            dimension_semantics=("parallel",),
            # review #9: v5e default scoped VMEM is 16 MiB; keep explicit.
            vmem_limit_bytes=32 * 1024 * 1024),
    )(x1r, x2r, x3r, *consts)

    out = out_pad[:, :, : 2 * W3].reshape(N, H3, W3, 2)
    return jnp.transpose(out, (0, 3, 1, 2))


def make_aggregation_forward(params, x1_shape, x2_shape, x3_shape,
                             const_dtype=jnp.bfloat16):
    """Prepare constants once (review #2) and return a jitted forward."""
    consts = prepare_aggregation_consts(params, x1_shape, x2_shape, x3_shape,
                                        const_dtype=const_dtype)
    return jax.jit(functools.partial(aggregation_forward_pallas, consts))


# ---------------------------------------------------------------------------
# Pure-JAX reference (mirrors the PyTorch module) for the correctness check
# ---------------------------------------------------------------------------
def upsample2x(x):  # NHWC, bilinear, align_corners=True
    def lerp_axis(a, axis, n_in):
        n_out = 2 * n_in
        if n_in == 1:
            reps = [1] * a.ndim
            reps[axis] = n_out
            return jnp.tile(a, reps)
        src = jnp.arange(n_out, dtype=jnp.float32) * (n_in - 1) / (n_out - 1)
        lo = jnp.clip(jnp.floor(src).astype(jnp.int32), 0, n_in - 2)
        frac = src - lo.astype(jnp.float32)
        lo_v = jnp.take(a, lo, axis=axis)
        hi_v = jnp.take(a, lo + 1, axis=axis)
        shp = [1] * a.ndim
        shp[axis] = n_out
        return lo_v * (1.0 - frac.reshape(shp)) + hi_v * frac.reshape(shp)

    N, H, W, C = x.shape
    x = lerp_axis(x, 1, H)
    x = lerp_axis(x, 2, W)
    return x


def _bn_conv_ref(x, w, scale, shift):
    y = lax.conv_general_dilated(x, w, (1, 1), "SAME",
                                 dimension_numbers=("NHWC", "HWIO", "NHWC"))
    return y * scale + shift


def aggregation_forward_ref(params, x1, x2, x3):
    x1n = jnp.transpose(x1, (0, 2, 3, 1))
    x2n = jnp.transpose(x2, (0, 2, 3, 1))
    x3n = jnp.transpose(x3, (0, 2, 3, 1))
    up = upsample2x
    bc = lambda x, name: _bn_conv_ref(x, *params[name])
    x2_1 = bc(up(x1n), "conv_upsample1") * x2n
    x3_1 = bc(up(up(x1n)), "conv_upsample2") * bc(up(x2n), "conv_upsample3") * x3n
    x2_2 = jnp.concatenate([x2_1, bc(up(x1n), "conv_upsample4")], axis=-1)
    x2_2 = bc(x2_2, "conv_concat2")
    x3_2 = jnp.concatenate([x3_1, bc(up(x2_2), "conv_upsample5")], axis=-1)
    x3_2 = bc(x3_2, "conv_concat3")
    x = bc(x3_2, "conv4")
    w5, b5 = params["conv5"]
    x = jnp.einsum("nhwc,co->nhwo", x, w5) + b5
    return jnp.transpose(x, (0, 3, 1, 2))


# ---------------------------------------------------------------------------
# Deterministic synthetic parameters
# ---------------------------------------------------------------------------
def init_params(key, channel):
    layer_io = {
        "conv_upsample1": (channel, channel),
        "conv_upsample2": (channel, channel),
        "conv_upsample3": (channel, channel),
        "conv_upsample4": (channel, channel),
        "conv_upsample5": (2 * channel, 2 * channel),
        "conv_concat2": (2 * channel, 2 * channel),
        "conv_concat3": (3 * channel, 3 * channel),
        "conv4": (3 * channel, 3 * channel),
    }
    params = {}
    keys = jax.random.split(key, len(layer_io) + 1)
    for k, (name, (cin, cout)) in zip(keys[:-1], layer_io.items()):
        kw, kg, kb, km, kv = jax.random.split(k, 5)
        w = jax.random.normal(kw, (3, 3, cin, cout), jnp.float32) * 0.1
        gamma = jax.random.uniform(kg, (cout,), jnp.float32, 0.8, 1.2)
        beta = jax.random.normal(kb, (cout,), jnp.float32) * 0.05
        rmean = jax.random.normal(km, (cout,), jnp.float32) * 0.05
        rvar = jax.random.uniform(kv, (cout,), jnp.float32, 0.5, 1.5)
        scale = gamma / jnp.sqrt(rvar + 1e-5)
        shift = beta - rmean * scale
        params[name] = (w, scale, shift)
    kw5, kb5 = jax.random.split(keys[-1], 2)
    w5 = jax.random.normal(kw5, (3 * channel, 2), jnp.float32) * 0.1
    b5 = jax.random.normal(kb5, (2,), jnp.float32) * 0.1
    params["conv5"] = (w5, b5)
    return params


if __name__ == "__main__":
    key = jax.random.PRNGKey(0)
    kp, k1, k2, k3 = jax.random.split(key, 4)
    channel, N = 4, 2
    params = init_params(kp, channel)

    x1 = jax.random.normal(k1, (N, channel, 8, 8), jnp.float32)
    x2 = jax.random.normal(k2, (N, channel, 16, 16), jnp.float32)
    x3 = jax.random.normal(k3, (N, channel, 32, 32), jnp.float32)
    shapes = (x1.shape, x2.shape, x3.shape)

    # Production path: bf16 banded weights, constants prepared once (hot path is
    # transpose + one pallas_call).
    fwd_bf16 = make_aggregation_forward(params, *shapes, const_dtype=jnp.bfloat16)
    out = jax.block_until_ready(fwd_bf16(x1, x2, x3))

    # Exact-algebra check: the same kernel with f32 constants must match the
    # reference to tight tolerance (proves the upsample/band/concat fusions).
    fwd_f32 = make_aggregation_forward(params, *shapes, const_dtype=jnp.float32)
    out_f32 = jax.block_until_ready(fwd_f32(x1, x2, x3))

    ref = jax.block_until_ready(aggregation_forward_ref(params, x1, x2, x3))

    assert out.shape == (N, 2, 32, 32), out.shape
    err_f32 = float(np.max(np.abs(np.asarray(out_f32) - np.asarray(ref))))
    assert np.allclose(np.asarray(out_f32), np.asarray(ref),
                       rtol=1e-3, atol=1e-3), err_f32
    # bf16 weight quantization bound (~2^-9 relative per tap, a few conv layers
    # plus the p*q*x3 product chain deep) -- checked at a bf16-appropriate tol.
    err_bf16 = float(np.max(np.abs(np.asarray(out) - np.asarray(ref))))
    assert np.allclose(np.asarray(out), np.asarray(ref),
                       rtol=2e-2, atol=2e-2), err_bf16
    print("KERNEL_OK")
</pallas_src>

<mosaic_0001>
module attributes {stable_mosaic.version = 11 : i64} {
  func.func @_aggregation_kernel(%arg0: i32, %arg1: memref<1x8x32xf32, #tpu.memory_space<vmem>>, %arg2: memref<1x16x64xf32, #tpu.memory_space<vmem>>, %arg3: memref<1x32x128xf32, #tpu.memory_space<vmem>>, %arg4: memref<144x8xf32, #tpu.memory_space<vmem>>, %arg5: memref<96x16xf32, #tpu.memory_space<vmem>>, %arg6: memref<48x16xf32, #tpu.memory_space<vmem>>, %arg7: memref<96x32xf32, #tpu.memory_space<vmem>>, %arg8: memref<3x32x128xbf16, #tpu.memory_space<vmem>>, %arg9: memref<3x32x128xbf16, #tpu.memory_space<vmem>>, %arg10: memref<3x64x128xbf16, #tpu.memory_space<vmem>>, %arg11: memref<3x128x128xbf16, #tpu.memory_space<vmem>>, %arg12: memref<3x128x256xbf16, #tpu.memory_space<vmem>>, %arg13: memref<3x384x384xbf16, #tpu.memory_space<vmem>>, %arg14: memref<3x384x128xbf16, #tpu.memory_space<vmem>>, %arg15: memref<1x128xf32, #tpu.memory_space<vmem>>, %arg16: memref<1x128xf32, #tpu.memory_space<vmem>>, %arg17: memref<1x128xf32, #tpu.memory_space<vmem>>, %arg18: memref<1x128xf32, #tpu.memory_space<vmem>>, %arg19: memref<1x256xf32, #tpu.memory_space<vmem>>, %arg20: memref<1x384xf32, #tpu.memory_space<vmem>>, %arg21: memref<1x128xf32, #tpu.memory_space<vmem>>, %arg22: memref<1x32x128xf32, #tpu.memory_space<vmem>>) attributes {dimension_semantics = [#tpu.dimension_semantics<parallel>], iteration_bounds = array<i64: 2>, scalar_prefetch = 0 : i64, scratch_operands = 0 : i64, tpu.core_type = #tpu.core_type<tc>, window_params = [{transform_indices = @transform_0, window_bounds = array<i64: 1, 8, 32>}, {transform_indices = @transform_1, window_bounds = array<i64: 1, 16, 64>}, {transform_indices = @transform_2, window_bounds = array<i64: 1, 32, 128>}, {pipeline_mode = #tpu.pipeline_mode<synchronous>, transform_indices = @transform_3, window_bounds = array<i64: 144, 8>}, {pipeline_mode = #tpu.pipeline_mode<synchronous>, transform_indices = @transform_4, window_bounds = array<i64: 96, 16>}, {pipeline_mode = #tpu.pipeline_mode<synchronous>, transform_indices = @transform_5, window_bounds = array<i64: 48, 16>}, {pipeline_mode = #tpu.pipeline_mode<synchronous>, transform_indices = @transform_6, window_bounds = array<i64: 96, 32>}, {pipeline_mode = #tpu.pipeline_mode<synchronous>, transform_indices = @transform_7, window_bounds = array<i64: 3, 32, 128>}, {pipeline_mode = #tpu.pipeline_mode<synchronous>, transform_indices = @transform_8, window_bounds = array<i64: 3, 32, 128>}, {pipeline_mode = #tpu.pipeline_mode<synchronous>, transform_indices = @transform_9, window_bounds = array<i64: 3, 64, 128>}, {pipeline_mode = #tpu.pipeline_mode<synchronous>, transform_indices = @transform_10, window_bounds = array<i64: 3, 128, 128>}, {pipeline_mode = #tpu.pipeline_mode<synchronous>, transform_indices = @transform_11, window_bounds = array<i64: 3, 128, 256>}, {pipeline_mode = #tpu.pipeline_mode<synchronous>, transform_indices = @transform_12, window_bounds = array<i64: 3, 384, 384>}, {pipeline_mode = #tpu.pipeline_mode<synchronous>, transform_indices = @transform_13, window_bounds = array<i64: 3, 384, 128>}, {pipeline_mode = #tpu.pipeline_mode<synchronous>, transform_indices = @transform_14, window_bounds = array<i64: 1, 128>}, {pipeline_mode = #tpu.pipeline_mode<synchronous>, transform_indices = @transform_15, window_bounds = array<i64: 1, 128>}, {pipeline_mode = #tpu.pipeline_mode<synchronous>, transform_indices = @transform_16, window_bounds = array<i64: 1, 128>}, {pipeline_mode = #tpu.pipeline_mode<synchronous>, transform_indices = @transform_17, window_bounds = array<i64: 1, 128>}, {pipeline_mode = #tpu.pipeline_mode<synchronous>, transform_indices = @transform_18, window_bounds = array<i64: 1, 256>}, {pipeline_mode = #tpu.pipeline_mode<synchronous>, transform_indices = @transform_19, window_bounds = array<i64: 1, 384>}, {pipeline_mode = #tpu.pipeline_mode<synchronous>, transform_indices = @transform_20, window_bounds = array<i64: 1, 128>}, {transform_indices = @transform_21, window_bounds = array<i64: 1, 32, 128>}]} {
    %c0 = arith.constant 0 : index
    %c0_0 = arith.constant 0 : index
    %c0_1 = arith.constant 0 : index
    %0 = vector.load %arg1[%c0, %c0_0, %c0_1] : memref<1x8x32xf32, #tpu.memory_space<vmem>>, vector<1x8x32xf32>
    %1 = vector.shape_cast %0 : vector<1x8x32xf32> to vector<8x32xf32>
    %c0_2 = arith.constant 0 : index
    %c0_3 = arith.constant 0 : index
    %c0_4 = arith.constant 0 : index
    %2 = vector.load %arg2[%c0_2, %c0_3, %c0_4] : memref<1x16x64xf32, #tpu.memory_space<vmem>>, vector<1x16x64xf32>
    %3 = vector.shape_cast %2 : vector<1x16x64xf32> to vector<16x64xf32>
    %c0_5 = arith.constant 0 : index
    %c0_6 = arith.constant 0 : index
    %c0_7 = arith.constant 0 : index
    %4 = vector.load %arg3[%c0_5, %c0_6, %c0_7] : memref<1x32x128xf32, #tpu.memory_space<vmem>>, vector<1x32x128xf32>
    %5 = vector.shape_cast %4 : vector<1x32x128xf32> to vector<32x128xf32>
    %c0_8 = arith.constant 0 : index
    %c0_9 = arith.constant 0 : index
    %6 = vector.load %arg4[%c0_8, %c0_9] : memref<144x8xf32, #tpu.memory_space<vmem>>, vector<144x8xf32>
    %cst = arith.constant dense<0.000000e+00> : vector<144x32xf32>
    %7 = tpu.matmul %6, %1, %cst {dimension_numbers = #tpu.dot_dimension_numbers<[1], [0], [0], [1], [0, 0, 1, 1], [], []>} : vector<144x8xf32>, vector<8x32xf32>, vector<144x32xf32> -> vector<144x32xf32>
    %8 = vector.extract_strided_slice %7 {offsets = [0, 0], sizes = [16, 32], strides = [1, 1]} : vector<144x32xf32> to vector<16x32xf32>
    %c0_10 = arith.constant 0 : index
    %c0_11 = arith.constant 0 : index
    %c0_12 = arith.constant 0 : index
    %9 = vector.load %arg8[%c0_10, %c0_11, %c0_12] : memref<3x32x128xbf16, #tpu.memory_space<vmem>>, vector<1x32x128xbf16>
    %10 = vector.shape_cast %9 : vector<1x32x128xbf16> to vector<32x128xbf16>
    %cst_13 = arith.constant dense<0.000000e+00> : vector<16x128xf32>
    %11 = tpu.matmul %8, %10, %cst_13 {dimension_numbers = #tpu.dot_dimension_numbers<[1], [0], [0], [1], [0, 0, 1, 1], [], []>} : vector<16x32xf32>, vector<32x128xbf16>, vector<16x128xf32> -> vector<16x128xf32>
    %12 = vector.extract_strided_slice %7 {offsets = [16, 0], sizes = [16, 32], strides = [1, 1]} : vector<144x32xf32> to vector<16x32xf32>
    %c1 = arith.constant 1 : index
    %c0_14 = arith.constant 0 : index
    %c0_15 = arith.constant 0 : index
    %13 = vector.load %arg8[%c1, %c0_14, %c0_15] : memref<3x32x128xbf16, #tpu.memory_space<vmem>>, vector<1x32x128xbf16>
    %14 = vector.shape_cast %13 : vector<1x32x128xbf16> to vector<32x128xbf16>
    %cst_16 = arith.constant dense<0.000000e+00> : vector<16x128xf32>
    %15 = tpu.matmul %12, %14, %cst_16 {dimension_numbers = #tpu.dot_dimension_numbers<[1], [0], [0], [1], [0, 0, 1, 1], [], []>} : vector<16x32xf32>, vector<32x128xbf16>, vector<16x128xf32> -> vector<16x128xf32>
    %16 = arith.addf %11, %15 : vector<16x128xf32>
    %17 = vector.extract_strided_slice %7 {offsets = [32, 0], sizes = [16, 32], strides = [1, 1]} : vector<144x32xf32> to vector<16x32xf32>
    %c2 = arith.constant 2 : index
    %c0_17 = arith.constant 0 : index
    %c0_18 = arith.constant 0 : index
    %18 = vector.load %arg8[%c2, %c0_17, %c0_18] : memref<3x32x128xbf16, #tpu.memory_space<vmem>>, vector<1x32x128xbf16>
    %19 = vector.shape_cast %18 : vector<1x32x128xbf16> to vector<32x128xbf16>
    %cst_19 = arith.constant dense<0.000000e+00> : vector<16x128xf32>
    %20 = tpu.matmul %17, %19, %cst_19 {dimension_numbers = #tpu.dot_dimension_numbers<[1], [0], [0], [1], [0, 0, 1, 1], [], []>} : vector<16x32xf32>, vector<32x128xbf16>, vector<16x128xf32> -> vector<16x128xf32>
    %21 = arith.addf %16, %20 : vector<16x128xf32>
    %c0_20 = arith.constant 0 : index
    %c0_21 = arith.constant 0 : index
    %22 = vector.load %arg15[%c0_20, %c0_21] : memref<1x128xf32, #tpu.memory_space<vmem>>, vector<1x128xf32>
    %23 = vector.broadcast %22 : vector<1x128xf32> to vector<16x128xf32>
    %24 = arith.addf %21, %23 : vector<16x128xf32>
    %cst_22 = arith.constant 1.000000e+00 : f32
    %25 = vector.broadcast %cst_22 : f32 to vector<16x64xf32>
    %26 = tpu.concatenate %3, %25 in 1 : vector<16x64xf32>, vector<16x64xf32> -> vector<16x128xf32>
    %27 = arith.mulf %24, %26 : vector<16x128xf32>
    %c0_23 = arith.constant 0 : index
    %c0_24 = arith.constant 0 : index
    %28 = vector.load %arg6[%c0_23, %c0_24] : memref<48x16xf32, #tpu.memory_space<vmem>>, vector<48x16xf32>
    %cst_25 = arith.constant dense<0.000000e+00> : vector<48x128xf32>
    %29 = tpu.matmul %28, %27, %cst_25 {dimension_numbers = #tpu.dot_dimension_numbers<[1], [0], [0], [1], [0, 0, 1, 1], [], []>} : vector<48x16xf32>, vector<16x128xf32>, vector<48x128xf32> -> vector<48x128xf32>
    %30 = vector.extract_strided_slice %29 {offsets = [0, 0], sizes = [16, 128], strides = [1, 1]} : vector<48x128xf32> to vector<16x128xf32>
    %c0_26 = arith.constant 0 : index
    %c0_27 = arith.constant 0 : index
    %c0_28 = arith.constant 0 : index
    %31 = vector.load %arg11[%c0_26, %c0_27, %c0_28] : memref<3x128x128xbf16, #tpu.memory_space<vmem>>, vector<1x128x128xbf16>
    %32 = vector.shape_cast %31 : vector<1x128x128xbf16> to vector<128x128xbf16>
    %cst_29 = arith.constant dense<0.000000e+00> : vector<16x128xf32>
    %33 = tpu.matmul %30, %32, %cst_29 {dimension_numbers = #tpu.dot_dimension_numbers<[1], [0], [0], [1], [0, 0, 1, 1], [], []>} : vector<16x128xf32>, vector<128x128xbf16>, vector<16x128xf32> -> vector<16x128xf32>
    %34 = vector.extract_strided_slice %29 {offsets = [16, 0], sizes = [16, 128], strides = [1, 1]} : vector<48x128xf32> to vector<16x128xf32>
    %c1_30 = arith.constant 1 : index
    %c0_31 = arith.constant 0 : index
    %c0_32 = arith.constant 0 : index
    %35 = vector.load %arg11[%c1_30, %c0_31, %c0_32] : memref<3x128x128xbf16, #tpu.memory_space<vmem>>, vector<1x128x128xbf16>
    %36 = vector.shape_cast %35 : vector<1x128x128xbf16> to vector<128x128xbf16>
    %cst_33 = arith.constant dense<0.000000e+00> : vector<16x128xf32>
    %37 = tpu.matmul %34, %36, %cst_33 {dimension_numbers = #tpu.dot_dimension_numbers<[1], [0], [0], [1], [0, 0, 1, 1], [], []>} : vector<16x128xf32>, vector<128x128xbf16>, vector<16x128xf32> -> vector<16x128xf32>
    %38 = arith.addf %33, %37 : vector<16x128xf32>
    %39 = vector.extract_strided_slice %29 {offsets = [32, 0], sizes = [16, 128], strides = [1, 1]} : vector<48x128xf32> to vector<16x128xf32>
    %c2_34 = arith.constant 2 : index
    %c0_35 = arith.constant 0 : index
    %c0_36 = arith.constant 0 : index
    %40 = vector.load %arg11[%c2_34, %c0_35, %c0_36] : memref<3x128x128xbf16, #tpu.memory_space<vmem>>, vector<1x128x128xbf16>
    %41 = vector.shape_cast %40 : vector<1x128x128xbf16> to vector<128x128xbf16>
    %cst_37 = arith.constant dense<0.000000e+00> : vector<16x128xf32>
    %42 = tpu.matmul %39, %41, %cst_37 {dimension_numbers = #tpu.dot_dimension_numbers<[1], [0], [0], [1], [0, 0, 1, 1], [], []>} : vector<16x128xf32>, vector<128x128xbf16>, vector<16x128xf32> -> vector<16x128xf32>
    %43 = arith.addf %38, %42 : vector<16x128xf32>
    %c0_38 = arith.constant 0 : index
    %c0_39 = arith.constant 0 : index
    %44 = vector.load %arg18[%c0_38, %c0_39] : memref<1x128xf32, #tpu.memory_space<vmem>>, vector<1x128xf32>
    %45 = vector.broadcast %44 : vector<1x128xf32> to vector<16x128xf32>
    %46 = arith.addf %43, %45 : vector<16x128xf32>
    %47 = vector.extract_strided_slice %7 {offsets = [48, 0], sizes = [32, 32], strides = [1, 1]} : vector<144x32xf32> to vector<32x32xf32>
    %c0_40 = arith.constant 0 : index
    %c0_41 = arith.constant 0 : index
    %c0_42 = arith.constant 0 : index
    %48 = vector.load %arg9[%c0_40, %c0_41, %c0_42] : memref<3x32x128xbf16, #tpu.memory_space<vmem>>, vector<1x32x128xbf16>
    %49 = vector.shape_cast %48 : vector<1x32x128xbf16> to vector<32x128xbf16>
    %cst_43 = arith.constant dense<0.000000e+00> : vector<32x128xf32>
    %50 = tpu.matmul %47, %49, %cst_43 {dimension_numbers = #tpu.dot_dimension_numbers<[1], [0], [0], [1], [0, 0, 1, 1], [], []>} : vector<32x32xf32>, vector<32x128xbf16>, vector<32x128xf32> -> vector<32x128xf32>
    %51 = vector.extract_strided_slice %7 {offsets = [80, 0], sizes = [32, 32], strides = [1, 1]} : vector<144x32xf32> to vector<32x32xf32>
    %c1_44 = arith.constant 1 : index
    %c0_45 = arith.constant 0 : index
    %c0_46 = arith.constant 0 : index
    %52 = vector.load %arg9[%c1_44, %c0_45, %c0_46] : memref<3x32x128xbf16, #tpu.memory_space<vmem>>, vector<1x32x128xbf16>
    %53 = vector.shape_cast %52 : vector<1x32x128xbf16> to vector<32x128xbf16>
    %cst_47 = arith.constant dense<0.000000e+00> : vector<32x128xf32>
    %54 = tpu.matmul %51, %53, %cst_47 {dimension_numbers = #tpu.dot_dimension_numbers<[1], [0], [0], [1], [0, 0, 1, 1], [], []>} : vector<32x32xf32>, vector<32x128xbf16>, vector<32x128xf32> -> vector<32x128xf32>
    %55 = arith.addf %50, %54 : vector<32x128xf32>
    %56 = vector.extract_strided_slice %7 {offsets = [112, 0], sizes = [32, 32], strides = [1, 1]} : vector<144x32xf32> to vector<32x32xf32>
    %c2_48 = arith.constant 2 : index
    %c0_49 = arith.constant 0 : index
    %c0_50 = arith.constant 0 : index
    %57 = vector.load %arg9[%c2_48, %c0_49, %c0_50] : memref<3x32x128xbf16, #tpu.memory_space<vmem>>, vector<1x32x128xbf16>
    %58 = vector.shape_cast %57 : vector<1x32x128xbf16> to vector<32x128xbf16>
    %cst_51 = arith.constant dense<0.000000e+00> : vector<32x128xf32>
    %59 = tpu.matmul %56, %58, %cst_51 {dimension_numbers = #tpu.dot_dimension_numbers<[1], [0], [0], [1], [0, 0, 1, 1], [], []>} : vector<32x32xf32>, vector<32x128xbf16>, vector<32x128xf32> -> vector<32x128xf32>
    %60 = arith.addf %55, %59 : vector<32x128xf32>
    %c0_52 = arith.constant 0 : index
    %c0_53 = arith.constant 0 : index
    %61 = vector.load %arg16[%c0_52, %c0_53] : memref<1x128xf32, #tpu.memory_space<vmem>>, vector<1x128xf32>
    %62 = vector.broadcast %61 : vector<1x128xf32> to vector<32x128xf32>
    %63 = arith.addf %60, %62 : vector<32x128xf32>
    %c0_54 = arith.constant 0 : index
    %c0_55 = arith.constant 0 : index
    %64 = vector.load %arg5[%c0_54, %c0_55] : memref<96x16xf32, #tpu.memory_space<vmem>>, vector<96x16xf32>
    %cst_56 = arith.constant dense<0.000000e+00> : vector<96x64xf32>
    %65 = tpu.matmul %64, %3, %cst_56 {dimension_numbers = #tpu.dot_dimension_numbers<[1], [0], [0], [1], [0, 0, 1, 1], [], []>} : vector<96x16xf32>, vector<16x64xf32>, vector<96x64xf32> -> vector<96x64xf32>
    %66 = vector.extract_strided_slice %65 {offsets = [0, 0], sizes = [32, 64], strides = [1, 1]} : vector<96x64xf32> to vector<32x64xf32>
    %c0_57 = arith.constant 0 : index
    %c0_58 = arith.constant 0 : index
    %c0_59 = arith.constant 0 : index
    %67 = vector.load %arg10[%c0_57, %c0_58, %c0_59] : memref<3x64x128xbf16, #tpu.memory_space<vmem>>, vector<1x64x128xbf16>
    %68 = vector.shape_cast %67 : vector<1x64x128xbf16> to vector<64x128xbf16>
    %cst_60 = arith.constant dense<0.000000e+00> : vector<32x128xf32>
    %69 = tpu.matmul %66, %68, %cst_60 {dimension_numbers = #tpu.dot_dimension_numbers<[1], [0], [0], [1], [0, 0, 1, 1], [], []>} : vector<32x64xf32>, vector<64x128xbf16>, vector<32x128xf32> -> vector<32x128xf32>
    %70 = vector.extract_strided_slice %65 {offsets = [32, 0], sizes = [32, 64], strides = [1, 1]} : vector<96x64xf32> to vector<32x64xf32>
    %c1_61 = arith.constant 1 : index
    %c0_62 = arith.constant 0 : index
    %c0_63 = arith.constant 0 : index
    %71 = vector.load %arg10[%c1_61, %c0_62, %c0_63] : memref<3x64x128xbf16, #tpu.memory_space<vmem>>, vector<1x64x128xbf16>
    %72 = vector.shape_cast %71 : vector<1x64x128xbf16> to vector<64x128xbf16>
    %cst_64 = arith.constant dense<0.000000e+00> : vector<32x128xf32>
    %73 = tpu.matmul %70, %72, %cst_64 {dimension_numbers = #tpu.dot_dimension_numbers<[1], [0], [0], [1], [0, 0, 1, 1], [], []>} : vector<32x64xf32>, vector<64x128xbf16>, vector<32x128xf32> -> vector<32x128xf32>
    %74 = arith.addf %69, %73 : vector<32x128xf32>
    %75 = vector.extract_strided_slice %65 {offsets = [64, 0], sizes = [32, 64], strides = [1, 1]} : vector<96x64xf32> to vector<32x64xf32>
    %c2_65 = arith.constant 2 : index
    %c0_66 = arith.constant 0 : index
    %c0_67 = arith.constant 0 : index
    %76 = vector.load %arg10[%c2_65, %c0_66, %c0_67] : memref<3x64x128xbf16, #tpu.memory_space<vmem>>, vector<1x64x128xbf16>
    %77 = vector.shape_cast %76 : vector<1x64x128xbf16> to vector<64x128xbf16>
    %cst_68 = arith.constant dense<0.000000e+00> : vector<32x128xf32>
    %78 = tpu.matmul %75, %77, %cst_68 {dimension_numbers = #tpu.dot_dimension_numbers<[1], [0], [0], [1], [0, 0, 1, 1], [], []>} : vector<32x64xf32>, vector<64x128xbf16>, vector<32x128xf32> -> vector<32x128xf32>
    %79 = arith.addf %74, %78 : vector<32x128xf32>
    %c0_69 = arith.constant 0 : index
    %c0_70 = arith.constant 0 : index
    %80 = vector.load %arg17[%c0_69, %c0_70] : memref<1x128xf32, #tpu.memory_space<vmem>>, vector<1x128xf32>
    %81 = vector.broadcast %80 : vector<1x128xf32> to vector<32x128xf32>
    %82 = arith.addf %79, %81 : vector<32x128xf32>
    %83 = arith.mulf %63, %82 : vector<32x128xf32>
    %84 = arith.mulf %83, %5 : vector<32x128xf32>
    %c0_71 = arith.constant 0 : index
    %c0_72 = arith.constant 0 : index
    %85 = vector.load %arg5[%c0_71, %c0_72] : memref<96x16xf32, #tpu.memory_space<vmem>>, vector<96x16xf32>
    %cst_73 = arith.constant dense<0.000000e+00> : vector<96x128xf32>
    %86 = tpu.matmul %85, %46, %cst_73 {dimension_numbers = #tpu.dot_dimension_numbers<[1], [0], [0], [1], [0, 0, 1, 1], [], []>} : vector<96x16xf32>, vector<16x128xf32>, vector<96x128xf32> -> vector<96x128xf32>
    %87 = vector.extract_strided_slice %86 {offsets = [0, 0], sizes = [32, 128], strides = [1, 1]} : vector<96x128xf32> to vector<32x128xf32>
    %c0_74 = arith.constant 0 : index
    %c0_75 = arith.constant 0 : index
    %c0_76 = arith.constant 0 : index
    %88 = vector.load %arg12[%c0_74, %c0_75, %c0_76] : memref<3x128x256xbf16, #tpu.memory_space<vmem>>, vector<1x128x256xbf16>
    %89 = vector.shape_cast %88 : vector<1x128x256xbf16> to vector<128x256xbf16>
    %cst_77 = arith.constant dense<0.000000e+00> : vector<32x256xf32>
    %90 = tpu.matmul %87, %89, %cst_77 {dimension_numbers = #tpu.dot_dimension_numbers<[1], [0], [0], [1], [0, 0, 1, 1], [], []>} : vector<32x128xf32>, vector<128x256xbf16>, vector<32x256xf32> -> vector<32x256xf32>
    %91 = vector.extract_strided_slice %86 {offsets = [32, 0], sizes = [32, 128], strides = [1, 1]} : vector<96x128xf32> to vector<32x128xf32>
    %c1_78 = arith.constant 1 : index
    %c0_79 = arith.constant 0 : index
    %c0_80 = arith.constant 0 : index
    %92 = vector.load %arg12[%c1_78, %c0_79, %c0_80] : memref<3x128x256xbf16, #tpu.memory_space<vmem>>, vector<1x128x256xbf16>
    %93 = vector.shape_cast %92 : vector<1x128x256xbf16> to vector<128x256xbf16>
    %cst_81 = arith.constant dense<0.000000e+00> : vector<32x256xf32>
    %94 = tpu.matmul %91, %93, %cst_81 {dimension_numbers = #tpu.dot_dimension_numbers<[1], [0], [0], [1], [0, 0, 1, 1], [], []>} : vector<32x128xf32>, vector<128x256xbf16>, vector<32x256xf32> -> vector<32x256xf32>
    %95 = arith.addf %90, %94 : vector<32x256xf32>
    %96 = vector.extract_strided_slice %86 {offsets = [64, 0], sizes = [32, 128], strides = [1, 1]} : vector<96x128xf32> to vector<32x128xf32>
    %c2_82 = arith.constant 2 : index
    %c0_83 = arith.constant 0 : index
    %c0_84 = arith.constant 0 : index
    %97 = vector.load %arg12[%c2_82, %c0_83, %c0_84] : memref<3x128x256xbf16, #tpu.memory_space<vmem>>, vector<1x128x256xbf16>
    %98 = vector.shape_cast %97 : vector<1x128x256xbf16> to vector<128x256xbf16>
    %cst_85 = arith.constant dense<0.000000e+00> : vector<32x256xf32>
    %99 = tpu.matmul %96, %98, %cst_85 {dimension_numbers = #tpu.dot_dimension_numbers<[1], [0], [0], [1], [0, 0, 1, 1], [], []>} : vector<32x128xf32>, vector<128x256xbf16>, vector<32x256xf32> -> vector<32x256xf32>
    %100 = arith.addf %95, %99 : vector<32x256xf32>
    %c0_86 = arith.constant 0 : index
    %c0_87 = arith.constant 0 : index
    %101 = vector.load %arg19[%c0_86, %c0_87] : memref<1x256xf32, #tpu.memory_space<vmem>>, vector<1x256xf32>
    %102 = vector.broadcast %101 : vector<1x256xf32> to vector<32x256xf32>
    %103 = arith.addf %100, %102 : vector<32x256xf32>
    %104 = tpu.concatenate %84, %103 in 1 : vector<32x128xf32>, vector<32x256xf32> -> vector<32x384xf32>
    %c0_88 = arith.constant 0 : index
    %c0_89 = arith.constant 0 : index
    %105 = vector.load %arg7[%c0_88, %c0_89] : memref<96x32xf32, #tpu.memory_space<vmem>>, vector<96x32xf32>
    %cst_90 = arith.constant dense<0.000000e+00> : vector<96x384xf32>
    %106 = tpu.matmul %105, %104, %cst_90 {dimension_numbers = #tpu.dot_dimension_numbers<[1], [0], [0], [1], [0, 0, 1, 1], [], []>} : vector<96x32xf32>, vector<32x384xf32>, vector<96x384xf32> -> vector<96x384xf32>
    %107 = vector.extract_strided_slice %106 {offsets = [0, 0], sizes = [32, 384], strides = [1, 1]} : vector<96x384xf32> to vector<32x384xf32>
    %c0_91 = arith.constant 0 : index
    %c0_92 = arith.constant 0 : index
    %c0_93 = arith.constant 0 : index
    %108 = vector.load %arg13[%c0_91, %c0_92, %c0_93] : memref<3x384x384xbf16, #tpu.memory_space<vmem>>, vector<1x384x384xbf16>
    %109 = vector.shape_cast %108 : vector<1x384x384xbf16> to vector<384x384xbf16>
    %cst_94 = arith.constant dense<0.000000e+00> : vector<32x384xf32>
    %110 = tpu.matmul %107, %109, %cst_94 {dimension_numbers = #tpu.dot_dimension_numbers<[1], [0], [0], [1], [0, 0, 1, 1], [], []>} : vector<32x384xf32>, vector<384x384xbf16>, vector<32x384xf32> -> vector<32x384xf32>
    %111 = vector.extract_strided_slice %106 {offsets = [32, 0], sizes = [32, 384], strides = [1, 1]} : vector<96x384xf32> to vector<32x384xf32>
    %c1_95 = arith.constant 1 : index
    %c0_96 = arith.constant 0 : index
    %c0_97 = arith.constant 0 : index
    %112 = vector.load %arg13[%c1_95, %c0_96, %c0_97] : memref<3x384x384xbf16, #tpu.memory_space<vmem>>, vector<1x384x384xbf16>
    %113 = vector.shape_cast %112 : vector<1x384x384xbf16> to vector<384x384xbf16>
    %cst_98 = arith.constant dense<0.000000e+00> : vector<32x384xf32>
    %114 = tpu.matmul %111, %113, %cst_98 {dimension_numbers = #tpu.dot_dimension_numbers<[1], [0], [0], [1], [0, 0, 1, 1], [], []>} : vector<32x384xf32>, vector<384x384xbf16>, vector<32x384xf32> -> vector<32x384xf32>
    %115 = arith.addf %110, %114 : vector<32x384xf32>
    %116 = vector.extract_strided_slice %106 {offsets = [64, 0], sizes = [32, 384], strides = [1, 1]} : vector<96x384xf32> to vector<32x384xf32>
    %c2_99 = arith.constant 2 : index
    %c0_100 = arith.constant 0 : index
    %c0_101 = arith.constant 0 : index
    %117 = vector.load %arg13[%c2_99, %c0_100, %c0_101] : memref<3x384x384xbf16, #tpu.memory_space<vmem>>, vector<1x384x384xbf16>
    %118 = vector.shape_cast %117 : vector<1x384x384xbf16> to vector<384x384xbf16>
    %cst_102 = arith.constant dense<0.000000e+00> : vector<32x384xf32>
    %119 = tpu.matmul %116, %118, %cst_102 {dimension_numbers = #tpu.dot_dimension_numbers<[1], [0], [0], [1], [0, 0, 1, 1], [], []>} : vector<32x384xf32>, vector<384x384xbf16>, vector<32x384xf32> -> vector<32x384xf32>
    %120 = arith.addf %115, %119 : vector<32x384xf32>
    %c0_103 = arith.constant 0 : index
    %c0_104 = arith.constant 0 : index
    %121 = vector.load %arg20[%c0_103, %c0_104] : memref<1x384xf32, #tpu.memory_space<vmem>>, vector<1x384xf32>
    %122 = vector.broadcast %121 : vector<1x384xf32> to vector<32x384xf32>
    %123 = arith.addf %120, %122 : vector<32x384xf32>
    %c0_105 = arith.constant 0 : index
    %c0_106 = arith.constant 0 : index
    %124 = vector.load %arg7[%c0_105, %c0_106] : memref<96x32xf32, #tpu.memory_space<vmem>>, vector<96x32xf32>
    %cst_107 = arith.constant dense<0.000000e+00> : vector<96x384xf32>
    %125 = tpu.matmul %124, %123, %cst_107 {dimension_numbers = #tpu.dot_dimension_numbers<[1], [0], [0], [1], [0, 0, 1, 1], [], []>} : vector<96x32xf32>, vector<32x384xf32>, vector<96x384xf32> -> vector<96x384xf32>
    %126 = vector.extract_strided_slice %125 {offsets = [0, 0], sizes = [32, 384], strides = [1, 1]} : vector<96x384xf32> to vector<32x384xf32>
    %c0_108 = arith.constant 0 : index
    %c0_109 = arith.constant 0 : index
    %c0_110 = arith.constant 0 : index
    %127 = vector.load %arg14[%c0_108, %c0_109, %c0_110] : memref<3x384x128xbf16, #tpu.memory_space<vmem>>, vector<1x384x128xbf16>
    %128 = vector.shape_cast %127 : vector<1x384x128xbf16> to vector<384x128xbf16>
    %cst_111 = arith.constant dense<0.000000e+00> : vector<32x128xf32>
    %129 = tpu.matmul %126, %128, %cst_111 {dimension_numbers = #tpu.dot_dimension_numbers<[1], [0], [0], [1], [0, 0, 1, 1], [], []>} : vector<32x384xf32>, vector<384x128xbf16>, vector<32x128xf32> -> vector<32x128xf32>
    %130 = vector.extract_strided_slice %125 {offsets = [32, 0], sizes = [32, 384], strides = [1, 1]} : vector<96x384xf32> to vector<32x384xf32>
    %c1_112 = arith.constant 1 : index
    %c0_113 = arith.constant 0 : index
    %c0_114 = arith.constant 0 : index
    %131 = vector.load %arg14[%c1_112, %c0_113, %c0_114] : memref<3x384x128xbf16, #tpu.memory_space<vmem>>, vector<1x384x128xbf16>
    %132 = vector.shape_cast %131 : vector<1x384x128xbf16> to vector<384x128xbf16>
    %cst_115 = arith.constant dense<0.000000e+00> : vector<32x128xf32>
    %133 = tpu.matmul %130, %132, %cst_115 {dimension_numbers = #tpu.dot_dimension_numbers<[1], [0], [0], [1], [0, 0, 1, 1], [], []>} : vector<32x384xf32>, vector<384x128xbf16>, vector<32x128xf32> -> vector<32x128xf32>
    %134 = arith.addf %129, %133 : vector<32x128xf32>
    %135 = vector.extract_strided_slice %125 {offsets = [64, 0], sizes = [32, 384], strides = [1, 1]} : vector<96x384xf32> to vector<32x384xf32>
    %c2_116 = arith.constant 2 : index
    %c0_117 = arith.constant 0 : index
    %c0_118 = arith.constant 0 : index
    %136 = vector.load %arg14[%c2_116, %c0_117, %c0_118] : memref<3x384x128xbf16, #tpu.memory_space<vmem>>, vector<1x384x128xbf16>
    %137 = vector.shape_cast %136 : vector<1x384x128xbf16> to vector<384x128xbf16>
    %cst_119 = arith.constant dense<0.000000e+00> : vector<32x128xf32>
    %138 = tpu.matmul %135, %137, %cst_119 {dimension_numbers = #tpu.dot_dimension_numbers<[1], [0], [0], [1], [0, 0, 1, 1], [], []>} : vector<32x384xf32>, vector<384x128xbf16>, vector<32x128xf32> -> vector<32x128xf32>
    %139 = arith.addf %134, %138 : vector<32x128xf32>
    %c0_120 = arith.constant 0 : index
    %c0_121 = arith.constant 0 : index
    %140 = vector.load %arg21[%c0_120, %c0_121] : memref<1x128xf32, #tpu.memory_space<vmem>>, vector<1x128xf32>
    %141 = vector.broadcast %140 : vector<1x128xf32> to vector<32x128xf32>
    %142 = arith.addf %139, %141 : vector<32x128xf32>
    %c0_122 = arith.constant 0 : index
    %c0_123 = arith.constant 0 : index
    %c0_124 = arith.constant 0 : index
    %143 = vector.load %arg22[%c0_122, %c0_123, %c0_124] : memref<1x32x128xf32, #tpu.memory_space<vmem>>, vector<1x32x128xf32>
    %144 = vector.shape_cast %143 : vector<1x32x128xf32> to vector<32x128xf32>
    %145 = vector.shape_cast %142 : vector<32x128xf32> to vector<1x32x128xf32>
    tpu.vector_store %arg22[%c0_122, %c0_123, %c0_124], %145 {strides = array<i32>} : memref<1x32x128xf32, #tpu.memory_space<vmem>>, vector<1x32x128xf32>,
    return
  }
  func.func @transform_0(%arg0: i32) -> (i32, i32, i32) {
    %c0_i32 = arith.constant 0 : i32
    %c0_i32_0 = arith.constant 0 : i32
    %c0_i32_1 = arith.constant 0 : i32
    return %arg0, %c0_i32, %c0_i32_0 : i32, i32, i32
  }
  func.func @transform_1(%arg0: i32) -> (i32, i32, i32) {
    %c0_i32 = arith.constant 0 : i32
    %c0_i32_0 = arith.constant 0 : i32
    %c0_i32_1 = arith.constant 0 : i32
    return %arg0, %c0_i32, %c0_i32_0 : i32, i32, i32
  }
  func.func @transform_2(%arg0: i32) -> (i32, i32, i32) {
    %c0_i32 = arith.constant 0 : i32
    %c0_i32_0 = arith.constant 0 : i32
    %c0_i32_1 = arith.constant 0 : i32
    return %arg0, %c0_i32, %c0_i32_0 : i32, i32, i32
  }
  func.func @transform_3(%arg0: i32) -> (i32, i32) {
    %c0_i32 = arith.constant 0 : i32
    %c0_i32_0 = arith.constant 0 : i32
    %c0_i32_1 = arith.constant 0 : i32
    return %c0_i32, %c0_i32_0 : i32, i32
  }
  func.func @transform_4(%arg0: i32) -> (i32, i32) {
    %c0_i32 = arith.constant 0 : i32
    %c0_i32_0 = arith.constant 0 : i32
    %c0_i32_1 = arith.constant 0 : i32
    return %c0_i32, %c0_i32_0 : i32, i32
  }
  func.func @transform_5(%arg0: i32) -> (i32, i32) {
    %c0_i32 = arith.constant 0 : i32
    %c0_i32_0 = arith.constant 0 : i32
    %c0_i32_1 = arith.constant 0 : i32
    return %c0_i32, %c0_i32_0 : i32, i32
  }
  func.func @transform_6(%arg0: i32) -> (i32, i32) {
    %c0_i32 = arith.constant 0 : i32
    %c0_i32_0 = arith.constant 0 : i32
    %c0_i32_1 = arith.constant 0 : i32
    return %c0_i32, %c0_i32_0 : i32, i32
  }
  func.func @transform_7(%arg0: i32) -> (i32, i32, i32) {
    %c0_i32 = arith.constant 0 : i32
    %c0_i32_0 = arith.constant 0 : i32
    %c0_i32_1 = arith.constant 0 : i32
    %c0_i32_2 = arith.constant 0 : i32
    return %c0_i32, %c0_i32_0, %c0_i32_1 : i32, i32, i32
  }
  func.func @transform_8(%arg0: i32) -> (i32, i32, i32) {
    %c0_i32 = arith.constant 0 : i32
    %c0_i32_0 = arith.constant 0 : i32
    %c0_i32_1 = arith.constant 0 : i32
    %c0_i32_2 = arith.constant 0 : i32
    return %c0_i32, %c0_i32_0, %c0_i32_1 : i32, i32, i32
  }
  func.func @transform_9(%arg0: i32) -> (i32, i32, i32) {
    %c0_i32 = arith.constant 0 : i32
    %c0_i32_0 = arith.constant 0 : i32
    %c0_i32_1 = arith.constant 0 : i32
    %c0_i32_2 = arith.constant 0 : i32
    return %c0_i32, %c0_i32_0, %c0_i32_1 : i32, i32, i32
  }
  func.func @transform_10(%arg0: i32) -> (i32, i32, i32) {
    %c0_i32 = arith.constant 0 : i32
    %c0_i32_0 = arith.constant 0 : i32
    %c0_i32_1 = arith.constant 0 : i32
    %c0_i32_2 = arith.constant 0 : i32
    return %c0_i32, %c0_i32_0, %c0_i32_1 : i32, i32, i32
  }
  func.func @transform_11(%arg0: i32) -> (i32, i32, i32) {
    %c0_i32 = arith.constant 0 : i32
    %c0_i32_0 = arith.constant 0 : i32
    %c0_i32_1 = arith.constant 0 : i32
    %c0_i32_2 = arith.constant 0 : i32
    return %c0_i32, %c0_i32_0, %c0_i32_1 : i32, i32, i32
  }
  func.func @transform_12(%arg0: i32) -> (i32, i32, i32) {
    %c0_i32 = arith.constant 0 : i32
    %c0_i32_0 = arith.constant 0 : i32
    %c0_i32_1 = arith.constant 0 : i32
    %c0_i32_2 = arith.constant 0 : i32
    return %c0_i32, %c0_i32_0, %c0_i32_1 : i32, i32, i32
  }
  func.func @transform_13(%arg0: i32) -> (i32, i32, i32) {
    %c0_i32 = arith.constant 0 : i32
    %c0_i32_0 = arith.constant 0 : i32
    %c0_i32_1 = arith.constant 0 : i32
    %c0_i32_2 = arith.constant 0 : i32
    return %c0_i32, %c0_i32_0, %c0_i32_1 : i32, i32, i32
  }
  func.func @transform_14(%arg0: i32) -> (i32, i32) {
    %c0_i32 = arith.constant 0 : i32
    %c0_i32_0 = arith.constant 0 : i32
    %c0_i32_1 = arith.constant 0 : i32
    return %c0_i32, %c0_i32_0 : i32, i32
  }
  func.func @transform_15(%arg0: i32) -> (i32, i32) {
    %c0_i32 = arith.constant 0 : i32
    %c0_i32_0 = arith.constant 0 : i32
    %c0_i32_1 = arith.constant 0 : i32
    return %c0_i32, %c0_i32_0 : i32, i32
  }
  func.func @transform_16(%arg0: i32) -> (i32, i32) {
    %c0_i32 = arith.constant 0 : i32
    %c0_i32_0 = arith.constant 0 : i32
    %c0_i32_1 = arith.constant 0 : i32
    return %c0_i32, %c0_i32_0 : i32, i32
  }
  func.func @transform_17(%arg0: i32) -> (i32, i32) {
    %c0_i32 = arith.constant 0 : i32
    %c0_i32_0 = arith.constant 0 : i32
    %c0_i32_1 = arith.constant 0 : i32
    return %c0_i32, %c0_i32_0 : i32, i32
  }
  func.func @transform_18(%arg0: i32) -> (i32, i32) {
    %c0_i32 = arith.constant 0 : i32
    %c0_i32_0 = arith.constant 0 : i32
    %c0_i32_1 = arith.constant 0 : i32
    return %c0_i32, %c0_i32_0 : i32, i32
  }
  func.func @transform_19(%arg0: i32) -> (i32, i32) {
    %c0_i32 = arith.constant 0 : i32
    %c0_i32_0 = arith.constant 0 : i32
    %c0_i32_1 = arith.constant 0 : i32
    return %c0_i32, %c0_i32_0 : i32, i32
  }
  func.func @transform_20(%arg0: i32) -> (i32, i32) {
    %c0_i32 = arith.constant 0 : i32
    %c0_i32_0 = arith.constant 0 : i32
    %c0_i32_1 = arith.constant 0 : i32
    return %c0_i32, %c0_i32_0 : i32, i32
  }
  func.func @transform_21(%arg0: i32) -> (i32, i32, i32) {
    %c0_i32 = arith.constant 0 : i32
    %c0_i32_0 = arith.constant 0 : i32
    %c0_i32_1 = arith.constant 0 : i32
    return %arg0, %c0_i32, %c0_i32_0 : i32, i32, i32
  }
}

</mosaic_0001>

<bundles_post_ra>
// kernel: aggregation_forward_pallas.1
= control target key start
LH: loop header
LB: loop body
LE: loop exit
PB: predicated region body
PF: predicated region fallthrough
CT: control target
= control target key end

     0   :  { %s11067_s0 = inlined_call_operand.vmem [shape: f32[2,8,32], index: 0, kind: input, shape index: {}]   ;;  %s11068_s1 = inlined_call_operand.vmem [shape: f32[2,16,64], index: 1, kind: input, shape index: {}]   ;;  %s11069_s2 = inlined_call_operand.vmem [shape: f32[2,32,128], index: 2, kind: input, shape index: {}]   ;;  %s11070_s3 = inlined_call_operand.vmem [shape: f32[144,8], index: 3, kind: input, shape index: {}]   ;;  %s11071_s4 = inlined_call_operand.vmem [shape: f32[96,16], index: 4, kind: input, shape index: {}]   ;;  %s11072_s5 = inlined_call_operand.vmem [shape: f32[48,16], index: 5, kind: input, shape index: {}]   ;;  %s11073_s6 = inlined_call_operand.vmem [shape: f32[96,32], index: 6, kind: input, shape index: {}]   ;;  %s11074_s7 = inlined_call_operand.vmem [shape: bf16[3,32,128], index: 7, kind: input, shape index: {}]   ;;  %s11075_s8 = inlined_call_operand.vmem [shape: bf16[3,32,128], index: 8, kind: input, shape index: {}]   ;;  %s11076_s9 = inlined_call_operand.vmem [shape: bf16[3,64,128], index: 9, kind: input, shape index: {}]   ;;  %s11077_s10 = inlined_call_operand.vmem [shape: bf16[3,128,128], index: 10, kind: input, shape index: {}]   ;;  %s11078_s11 = inlined_call_operand.vmem [shape: bf16[3,128,256], index: 11, kind: input, shape index: {}]   ;;  %s11079_s12 = inlined_call_operand.vmem [shape: bf16[3,384,384], index: 12, kind: input, shape index: {}]   ;;  %s11080_s13 = inlined_call_operand.vmem [shape: bf16[3,384,128], index: 13, kind: input, shape index: {}]   ;;  %s11081_s14 = inlined_call_operand.vmem [shape: f32[1,128], index: 14, kind: input, shape index: {}]   ;;  %s11082_s15 = inlined_call_operand.vmem [shape: f32[1,128], index: 15, kind: input, shape index: {}]   ;;  %s11083_s16 = inlined_call_operand.vmem [shape: f32[1,128], index: 16, kind: input, shape index: {}]   ;;  %s11084_s17 = inlined_call_operand.vmem [shape: f32[1,128], index: 17, kind: input, shape index: {}]   ;;  %s11085_s18 = inlined_call_operand.vmem [shape: f32[1,256], index: 18, kind: input, shape index: {}]   ;;  %s11086_s19 = inlined_call_operand.vmem [shape: f32[1,384], index: 19, kind: input, shape index: {}]   ;;  %s11087_s20 = inlined_call_operand.vmem [shape: f32[1,128], index: 20, kind: input, shape index: {}]   ;;  %s11088_s21 = inlined_call_operand.vmem [shape: f32[2,32,128], index: 21, kind: output, shape index: {}]  }
   0x1   :  { %11093 = sst [smem:[#allocation2_spill]] %s11067_s0 }
   0x2   :  { %11094 = sst [smem:[#allocation3_spill]] %s11068_s1 }
   0x3   :  { %11095 = sst [smem:[#allocation4_spill]] %s11069_s2  ;;  %s9201_s2 = smov 0  }
   0x4   :  { %11096 = sst [smem:[#allocation5_spill]] %s11070_s3 }
   0x5   :  { %11097 = sst [smem:[#allocation6_spill]] %s11071_s4 }
   0x6   :  { %11098 = sst [smem:[#allocation7_spill]] %s11072_s5 }
   0x7 LB: > { %s6670_s25 = sadd.s32 4294967295, %s9088_s2   ;;  %p6674_p0 = scmp.ge.s32.totalorder %s9088_s2, 1  ;;  %s9088_s2 = sphi %s9201_s2, %s31_s2  }
   0x8   : > { %p606_p1 = scmp.lt.s32.totalorder %s9088_s2, 3 }
   0xa   : > { %p607_p2 = pnand %p6674_p0, %p606_p1 }
   0xb   : > { %p675_p3 = scmp.lt.s32.totalorder (!%p607_p2), %s6670_s25, 1  ;;  %s11099_s3 = sld [smem:[#allocation5_spill]] (!%p607_p2)  ;;  %vm720_vm0 = vcmask (!%p607_p2), 64512   ;;  %v8590_v1 = vld [vmem:[%s11074_s7 + $0x10] sm:$0xff] (!%p607_p2)   ;;  %v8591_v8 = vld [vmem:[%s11074_s7 + $0x18] sm:$0xff] (!%p607_p2)   ;;  %v8592_v9 = vld [vmem:[%s11074_s7] sm:$0xff] (!%p607_p2)  }
   0xc   : > { %610 = sbr.rel (%p607_p2) target bundleno = 2753 (0xac1), region = 104  ;;  %8026 = vmatprep.subr.bf16.mxu1 (!%p607_p2), %v8590_v1  ;;  %s11100_s23 = sld [smem:[#allocation2_spill]] (!%p607_p2)  ;;  %vm951_vm1 = vcmask (!%p607_p2), 261120   ;;  %v8593_v26 = vld [vmem:[%s11074_s7 + $0x8] sm:$0xff] (!%p607_p2)   ;;  %v8594_v28 = vld [vmem:[%s11074_s7 + $0x20] sm:$0xff] (!%p607_p2)   ;;  %vm1150_vm2 = vcmask (!%p607_p2), 130048  }
   0xd   : > { %8027 = vmatpush3.bf16.msra.mxu1 (!%p607_p2), %v8590_v1  ;;  %v8595_v30 = vld [vmem:[%s11074_s7 + $0x28] sm:$0xff] (!%p607_p2)   ;;  %s11101_s5 = sld [smem:[#allocation7_spill]] (!%p607_p2)  ;;  %v8602_v44 = vld [vmem:[%s11077_s10 + $0x40] sm:$0xff] (!%p607_p2)   ;;  %v8604_v46 = vld [vmem:[%s11077_s10 + $0x50] sm:$0xff] (!%p607_p2)   ;;  %s11102_s28 = sld [smem:[#allocation3_spill]] (!%p607_p2)  ;;  %vm1139_vm3 = vcmask (!%p607_p2), 523264  }
   0xe   : > { %8028 = vmatprep.subr.bf16.mxu1 (!%p607_p2), %v8591_v8  ;;  %v8603_v45 = vld [vmem:[%s11077_s10 + $0x48] sm:$0xff] (!%p607_p2)   ;;  %v8605_v47 = vld [vmem:[%s11077_s10 + $0x58] sm:$0xff] (!%p607_p2)   ;;  %v8606_v48 = vld [vmem:[%s11077_s10 + $0x60] sm:$0xff] (!%p607_p2)  }
   0xf   : > { %v8607_v49 = vld [vmem:[%s11077_s10 + $0x68] sm:$0xff] (!%p607_p2)   ;;  %v8608_v50 = vld [vmem:[%s11077_s10 + $0x70] sm:$0xff] (!%p607_p2)   ;;  %v6720_v52 = vld [vmem:[%s11081_s14] ss:$0 sm:$0xff] (!%p607_p2) }
  0x10   : > { %v8596_v63 = vld [vmem:[%s11075_s8 + $0x10] sm:$0xff] (!%p607_p2)  }
  0x11   : > { %v702_v0 = vld [vmem:[%s11099_s3] sm:$0xff] (!%p607_p2)  ;;  %v703_v2 = vld [vmem:[%s11099_s3 + $0x8] sm:$0xff] (!%p607_p2)  ;;  %v704_v3 = vld [vmem:[%s11099_s3 + $0x10] sm:$0xff] (!%p607_p2)  ;;  %8029 = vmatpush3.bf16.msra.mxu1 (!%p607_p2), %v8591_v8 }
  0x12   : > { %7999 = vmatprep.mubr.msk.f32.mxu0 (!%p607_p2), %vm720_vm0, %v702_v0  ;;  %v705_v5 = vld [vmem:[%s11099_s3 + $0x18] sm:$0xff] (!%p607_p2)  ;;  %v706_v6 = vld [vmem:[%s11099_s3 + $0x20] sm:$0xff] (!%p607_p2)  ;;  %v707_v7 = vld [vmem:[%s11099_s3 + $0x28] sm:$0xff] (!%p607_p2)  ;;  %8033 = vmatprep.subr.bf16.mxu1 (!%p607_p2), %v8592_v9 }
  0x13   : > { %s11106_s25 = smov (!%p675_p3, %s6670_s25), 1  ;;  %v708_v10 = vld [vmem:[%s11099_s3 + $0x30] sm:$0xff]  ;;  %v709_v11 = vld [vmem:[%s11099_s3 + $0x38] sm:$0xff]  ;;  %v710_v12 = vld [vmem:[%s11099_s3 + $0x40] sm:$0xff] }
  0x14   : > { %s6675_s0 = sshll.u32 %s11106_s25, 3  ;;  %v711_v13 = vld [vmem:[%s11099_s3 + $0x48] sm:$0xff]  ;;  %v712_v14 = vld [vmem:[%s11099_s3 + $0x50] sm:$0xff]  ;;  %v713_v15 = vld [vmem:[%s11099_s3 + $0x58] sm:$0xff]  ;;  %s7583_s24 = sshll.u32 %s11106_s25, 4 }
  0x15   : > { %s678_s1 = scalar_lea.vmem %s11100_s23, %s6675_s0  ;;  %v714_v16 = vld [vmem:[%s11099_s3 + $0x60] sm:$0xff]  ;;  %v715_v17 = vld [vmem:[%s11099_s3 + $0x68] sm:$0xff]  ;;  %v716_v18 = vld [vmem:[%s11099_s3 + $0x70] sm:$0xff]  ;;  %s683_s29 = scalar_lea.vmem %s11102_s28, %s7583_s24 }
  0x16   : > { %v695_v4 = vld [vmem:[%s678_s1] sm:$0xff]  ;;  %v717_v19 = vld [vmem:[%s11099_s3 + $0x78] sm:$0xff]  ;;  %v719_v21 = vld [vmem:[%s11099_s3 + $0x88] sm:$0xff]  ;;  %s11103_s23 = sld [smem:[#allocation6_spill]]  ;;  %s7584_s26 = sshll.u32 %s11106_s25, 5 }
  0x17   : > { %7997 = vmatprep.subr.mxu0 %v695_v4  ;;  %v718_v20 = vld [vmem:[%s11099_s3 + $0x80] sm:$0xff]  ;;  %v697_v51 = vld [vmem:[%s683_s29 + $0x8] sm:$0xff]  ;;  %v1146_v1 = vld [vmem:[%s11101_s5 + $0x10] sm:$0xff]  ;;  %s11104_s24 = sld [smem:[#allocation4_spill]]  ;;  %s693_s22 = scalar_lea.vmem %s11088_s21, %s7584_s26 }
  0x18   : > { %7998 = vmatpush3.msra.mxu0 %v695_v4  ;;  %v1144_v31 = vld [vmem:[%s11101_s5] sm:$0xff]  ;;  %v1141_v55 = vsel %vm1139_vm3, %v697_v51, 1.0  ;;  %v1145_v0 = vld [vmem:[%s11101_s5 + $0x8] sm:$0xff] }
  0x19   : > { %8000 = vmatmul.mubr.msk.f32.vlgmr.msra.gmra.mrb[0].mxu0 %vm720_vm0, %v703_v2  ;;  %8060 = vmatprep.subr.bf16.mxu0 %v8602_v44  ;;  %v696_v53 = vld [vmem:[%s683_s29] sm:$0xff]  ;;  %v8597_v2 = vld [vmem:[%s11075_s8 + $0x18] sm:$0xff]  }
  0x1a   : > { %8002 = vmatprep.mubr.msk.f32.mxu0 %vm720_vm0, %v704_v3  ;;  %8061 = vmatpush3.bf16.msra.mxu0 %v8602_v44  ;;  %v1140_v58 = vsel %vm1139_vm3, %v696_v53, 1.0  ;;  %v1147_v3 = vld [vmem:[%s11101_s5 + $0x18] sm:$0xff]  ;;  %v1148_v4 = vld [vmem:[%s11101_s5 + $0x20] sm:$0xff] }
  0x1b   : > { %8062 = vmatprep.subr.bf16.mxu0 %v8603_v45  ;;  %v8600_v8 = vld [vmem:[%s11075_s8 + $0x20] sm:$0xff]  }
  0x1d   : > { %8003 = vmatmul.mubr.msk.f32.gmra.mrb[2].mxu0 %vm720_vm0, %v705_v5  ;;  %v8598_v5 = vld [vmem:[%s11075_s8] sm:$0xff]   ;;  %s9646_s3 = scalar_lea.vmem %s11104_s24, %s7584_s26 }
  0x1e   : > { %8005 = vmatprep.mubr.msk.f32.mxu0 %vm720_vm0, %v706_v6  ;;  %8063 = vmatpush3.bf16.msra.mxu0 %v8603_v45  ;;  %v1149_v6 = vld [vmem:[%s11101_s5 + $0x28] sm:$0xff] }
  0x1f   : > { %8064 = vmatprep.subr.bf16.mxu0 %v8604_v46 }
  0x21   : > { %8006 = vmatmul.mubr.msk.f32.gmra.mrb[4].mxu0 %vm720_vm0, %v707_v7  ;;  %v8599_v7 = vld [vmem:[%s11075_s8 + $0x8] sm:$0xff]  }
  0x22   : > { %8008 = vmatprep.mubr.msk.f32.mxu0 %vm720_vm0, %v708_v10  ;;  %8065 = vmatpush3.bf16.msra.mxu0 %v8604_v46  ;;  %v8421_v10 = vpack.c.bf16 %v697_v51, %v696_v53  ;;  %v8618_v46 = vld [vmem:[%s11077_s10 + $0x80] sm:$0xff]  }
  0x23   : > { %8066 = vmatprep.subr.bf16.mxu0 %v8605_v47 }
  0x25   : > { %8009 = vmatmul.mubr.msk.f32.gmra.mrb[6].mxu0 %vm720_vm0, %v709_v11  ;;  %v9432_v11 = vld [vmem:[%s11103_s23] sm:$0xff] }
  0x26   : > { %8011 = vmatprep.mubr.msk.f32.mxu0 %vm720_vm0, %v710_v12  ;;  %8067 = vmatpush3.bf16.msra.mxu0 %v8605_v47  ;;  %v9441_v12 = vld [vmem:[%s11103_s23 + $0x8] sm:$0xff] }
  0x27   : > { %8068 = vmatprep.subr.bf16.mxu0 %v8606_v48 }
  0x29   : > { %8012 = vmatmul.mubr.msk.f32.gmra.mrb[8].mxu0 %vm720_vm0, %v711_v13  ;;  %v9446_v13 = vld [vmem:[%s11103_s23 + $0x10] sm:$0xff] }
  0x2a   : > { %8014 = vmatprep.mubr.msk.f32.mxu0 %vm720_vm0, %v712_v14  ;;  %8069 = vmatpush3.bf16.msra.mxu0 %v8606_v48  ;;  %v9455_v14 = vld [vmem:[%s11103_s23 + $0x18] sm:$0xff] }
  0x2b   : > { %8070 = vmatprep.subr.bf16.mxu0 %v8607_v49 }
  0x2d   : > { %8015 = vmatmul.mubr.msk.f32.gmra.mrb[10].mxu0 %vm720_vm0, %v713_v15  ;;  %v9460_v15 = vld [vmem:[%s11103_s23 + $0x20] sm:$0xff] }
  0x2e   : > { %8017 = vmatprep.mubr.msk.f32.mxu0 %vm720_vm0, %v714_v16  ;;  %8071 = vmatpush3.bf16.msra.mxu0 %v8607_v49  ;;  %v9469_v16 = vld [vmem:[%s11103_s23 + $0x28] sm:$0xff] }
  0x2f   : > { %8072 = vmatprep.subr.bf16.mxu0 %v8608_v50  ;;  %v8619_v49 = vld [vmem:[%s11077_s10 + $0x88] sm:$0xff]  }
  0x31   : > { %8018 = vmatmul.mubr.msk.f32.gmra.mrb[12].mxu0 %vm720_vm0, %v715_v17  ;;  %v9474_v17 = vld [vmem:[%s11103_s23 + $0x30] sm:$0xff] }
  0x32   : > { %8020 = vmatprep.mubr.msk.f32.mxu0 %vm720_vm0, %v716_v18  ;;  %8073 = vmatpush3.bf16.msra.mxu0 %v8608_v50  ;;  %v9483_v18 = vld [vmem:[%s11103_s23 + $0x38] sm:$0xff] }
  0x35   : > { %8021 = vmatmul.mubr.msk.f32.gmra.mrb[14].mxu0 %vm720_vm0, %v717_v19  ;;  %v9488_v19 = vld [vmem:[%s11103_s23 + $0x40] sm:$0xff] }
  0x36   : > { %8023 = vmatprep.mubr.msk.f32.mxu0 %vm720_vm0, %v718_v20  ;;  %v9497_v20 = vld [vmem:[%s11103_s23 + $0x48] sm:$0xff] }
  0x39   : > { %8024 = vmatmul.mubr.msk.f32.gmra.mrb[16].mxu0 %vm720_vm0, %v719_v21  ;;  %v9502_v21 = vld [vmem:[%s11103_s23 + $0x50] sm:$0xff] }
  0xec   : > { %v8001_v22 = vpop.f32.mrb[0].mxu0 }
  0xed   : > { %v841_v23 = vpop.f32.mrb[1].mxu0 }
  0xf0   : > { %v8004_v24 = vpop.f32.mrb[2].mxu0 }
  0xf1   : > { %v851_v25 = vpop.f32.mrb[3].mxu0 }
  0xf2   : > { %8030 = vmatprep.mubr.msk.f32.mxu1 %vm951_vm1, %v851_v25  ;;  %v8626_v25 = vld [vmem:[%s11076_s9 + $0x20] sm:$0xff]  }
  0xf3   : > { %8031 = vmatmul.mubr.msk.f32.vlgmr.msra.gmra.mrb[0].mxu1 %vm951_vm1, %v8004_v24  ;;  %v8610_v24 = vld [vmem:[%s11077_s10] sm:$0xff]  }
  0xf4   : > { %8034 = vmatpush3.bf16.msra.mxu1 %v8592_v9  ;;  %8037 = vmatprep.mubr.msk.f32.mxu1 %vm951_vm1, %v841_v23  ;;  %v8007_v27 = vpop.f32.mrb[4].mxu0  ;;  %v8601_v9 = vld [vmem:[%s11075_s8 + $0x28] sm:$0xff]   ;;  %v8609_v23 = vld [vmem:[%s11077_s10 + $0x78] sm:$0xff]  }
  0xf5   : > { %8035 = vmatprep.subr.bf16.mxu1 %v8593_v26  ;;  %v861_v29 = vpop.f32.mrb[5].mxu0  ;;  %8074 = vmatprep.subr.bf16.mxu0 %v8609_v23 }
  0xf6   : > { %8075 = vmatpush3.bf16.msra.mxu0 %v8609_v23 }
  0xf7   : > { %8079 = vmatprep.subr.bf16.mxu0 %v8610_v24 }
  0xf8   : > { %8036 = vmatpush3.bf16.msra.mxu1 %v8593_v26  ;;  %v9315_v32 = vpop.f32.mrb[6].mxu0  ;;  %v8627_v26 = vld [vmem:[%s11076_s9 + $0x28] sm:$0xff]  }
  0xf9   : > { %8040 = vmatprep.subr.bf16.mxu1 %v8594_v28  ;;  %v9317_v33 = vpop.f32.mrb[7].mxu0 }
  0xfb   : > { %8038 = vmatmul.mubr.msk.f32.vlgmr.msra.gmra.mrb[0].mxu1 %vm951_vm1, %v8001_v22  ;;  %v9511_v22 = vld [vmem:[%s11103_s23 + $0x58] sm:$0xff] }
  0xfc   : > { %8041 = vmatpush3.bf16.msra.mxu1 %v8594_v28  ;;  %8044 = vmatprep.mubr.msk.f32.mxu1 %vm951_vm1, %v861_v29  ;;  %v9319_v34 = vpop.f32.mrb[8].mxu0  ;;  %v8629_v28 = vld [vmem:[%s11076_s9 + $0x38] sm:$0xff]   ;;  %v8630_v29 = vld [vmem:[%s11076_s9] sm:$0xff]  }
  0xfd   : > { %8042 = vmatprep.subr.bf16.mxu1 %v8595_v30  ;;  %v9321_v35 = vpop.f32.mrb[9].mxu0 }
 0x100   : > { %8043 = vmatpush3.bf16.msra.mxu1 %v8595_v30  ;;  %v9323_v36 = vpop.f32.mrb[10].mxu0 }
 0x101   : > { %v9325_v37 = vpop.f32.mrb[11].mxu0 }
 0x103   : > { %8045 = vmatmul.mubr.msk.f32.vlgmr.msra.gmra.mrb[0].mxu1 %vm951_vm1, %v8007_v27  ;;  %v8628_v27 = vld [vmem:[%s11076_s9 + $0x30] sm:$0xff]  }
 0x104   : > { %8051 = vmatprep.mubr.msk.f32.mxu1 %vm1150_vm2, %v1144_v31  ;;  %v9327_v38 = vpop.f32.mrb[12].mxu0 }
 0x105   : > { %v9329_v39 = vpop.f32.mrb[13].mxu0 }
 0x108   : > { %v9331_v40 = vpop.f32.mrb[14].mxu0 }
 0x109   : > { %v9333_v41 = vpop.f32.mrb[15].mxu0 }
 0x10c   : > { %v9335_v42 = vpop.f32.mrb[16].mxu0 }
 0x10d   : > { %v9337_v43 = vpop.f32.mrb[17].mxu0 }
 0x1d6   : > { %v8046_v54 = vpop.f32.mrb[0].mxu1 }
 0x1d7   : > { %v1138_v56 = vadd.f32 %v8046_v54, %v6720_v52  ;;  %v1119_v57 = vpop.f32.mrb[1].mxu1 }
 0x1d8   : > { %v1137_v59 = vadd.f32 %v6720_v52, %v1119_v57  ;;  %v8620_v52 = vld [vmem:[%s11077_s10 + $0x90] sm:$0xff]   ;;  %v8631_v57 = vld [vmem:[%s11076_s9 + $0x8] sm:$0xff]  }
 0x1d9   : > { %v1143_v60 = vmul.f32 %v1141_v55, %v1138_v56  ;;  %v8621_v55 = vld [vmem:[%s11077_s10 + $0x98] sm:$0xff]  }
 0x1da   : > { %v1142_v61 = vmul.f32 %v1140_v58, %v1137_v59  ;;  %v8622_v59 = vld [vmem:[%s11077_s10 + $0xa0] sm:$0xff]  }
 0x1dc   : > { %v8417_v62 = vpack.c.bf16 %v1143_v60, %v1142_v61  ;;  %v8632_v60 = vld [vmem:[%s11076_s9 + $0x10] sm:$0xff]  }
 0x1de   : > { %8418 = vmatprep.subr.bf16.mxu1 %v8417_v62 }
 0x1df   : > { %8420 = vmatpush3.bf16.msra.mxu1 %v8417_v62 }
 0x1e0   : > { %8117 = vmatprep.subr.bf16.mxu1 %v8596_v63 }
 0x1e2   : > { %8052 = vmatmul.mubr.msk.f32.vlgmr.msra.gmra.mrb[2].mxu1 %vm1150_vm2, %v1145_v0  ;;  %v8633_v0 = vld [vmem:[%s11076_s9 + $0x18] sm:$0xff]  }
 0x1e3   : > { %8054 = vmatprep.mubr.msk.f32.mxu1 %vm1150_vm2, %v1146_v1  ;;  %8118 = vmatpush3.bf16.msra.mxu1 %v8596_v63  ;;  %v8623_v63 = vld [vmem:[%s11077_s10 + $0xa8] sm:$0xff]  }
 0x1e4   : > { %8119 = vmatprep.subr.bf16.mxu1 %v8597_v2 }
 0x1e6   : > { %8055 = vmatmul.mubr.msk.f32.gmra.mrb[4].mxu1 %vm1150_vm2, %v1147_v3  ;;  %v8624_v3 = vld [vmem:[%s11077_s10 + $0xb0] sm:$0xff]  }
 0x1e7   : > { %8057 = vmatprep.mubr.msk.f32.mxu1 %vm1150_vm2, %v1148_v4  ;;  %8120 = vmatpush3.bf16.msra.mxu1 %v8597_v2  ;;  %v8634_v4 = vld [vmem:[%s11076_s9 + $0x40] sm:$0xff]  }
 0x1e8   : > { %8127 = vmatprep.subr.bf16.mxu1 %v8598_v5 }
 0x1ea   : > { %8058 = vmatmul.mubr.msk.f32.gmra.mrb[6].mxu1 %vm1150_vm2, %v1149_v6  ;;  %v8625_v6 = vld [vmem:[%s11077_s10 + $0xb8] sm:$0xff]  }
 0x1eb   : > { %8121 = vmatprep.mubr.msk.f32.mxu1 %vm951_vm1, %v9325_v37 }
 0x1ee   : > { %8122 = vmatmul.mubr.msk.f32.vlgmr.msra.gmra.mrb[8].mxu1 %vm951_vm1, %v9323_v36  ;;  %v8612_v36 = vld [vmem:[%s11077_s10 + $0x10] sm:$0xff]  }
 0x1ef   : > { %8128 = vmatpush3.bf16.msra.mxu1 %v8598_v5  ;;  %8124 = vmatprep.mubr.msk.f32.mxu1 %vm951_vm1, %v9329_v39  ;;  %v8614_v39 = vld [vmem:[%s11077_s10 + $0x20] sm:$0xff]  }
 0x1f0   : > { %8129 = vmatprep.subr.bf16.mxu1 %v8599_v7 }
 0x1f2   : > { %8125 = vmatmul.mubr.msk.f32.gmra.mrb[10].mxu1 %vm951_vm1, %v9327_v38  ;;  %v8613_v38 = vld [vmem:[%s11077_s10 + $0x18] sm:$0xff]  }
 0x1f3   : > { %8130 = vmatpush3.bf16.msra.mxu1 %v8599_v7  ;;  %8131 = vmatprep.mubr.msk.f32.mxu1 %vm951_vm1, %v9317_v33  ;;  %v8635_v7 = vld [vmem:[%s11076_s9 + $0x48] sm:$0xff]  }
 0x1f4   : > { %8137 = vmatprep.subr.bf16.mxu1 %v8600_v8 }
 0x1f6   : > { %8132 = vmatmul.mubr.msk.f32.vlgmr.msra.gmra.mrb[8].mxu1 %vm951_vm1, %v9315_v32 }
 0x1f7   : > { %8138 = vmatpush3.bf16.msra.mxu1 %v8600_v8  ;;  %8134 = vmatprep.mubr.msk.f32.mxu1 %vm951_vm1, %v9321_v35  ;;  %v8636_v8 = vld [vmem:[%s11076_s9 + $0x50] sm:$0xff]  }
 0x1f8   : > { %8139 = vmatprep.subr.bf16.mxu1 %v8601_v9 }
 0x1fa   : > { %8135 = vmatmul.mubr.msk.f32.gmra.mrb[10].mxu1 %vm951_vm1, %v9319_v34  ;;  %v8611_v34 = vld [vmem:[%s11077_s10 + $0x8] sm:$0xff]  }
 0x1fb   : > { %8140 = vmatpush3.bf16.msra.mxu1 %v8601_v9  ;;  %8141 = vmatprep.mubr.msk.f32.mxu1 %vm951_vm1, %v9333_v41  ;;  %v8616_v41 = vld [vmem:[%s11077_s10 + $0x30] sm:$0xff]   ;;  %v8637_v9 = vld [vmem:[%s11076_s9 + $0x58] sm:$0xff]  }
 0x1fc   : > { %8422 = vmatprep.subr.bf16.mxu1 %v8421_v10 }
 0x1fe   : > { %8142 = vmatmul.mubr.msk.f32.vlgmr.msra.gmra.mrb[8].mxu1 %vm951_vm1, %v9331_v40  ;;  %v8615_v40 = vld [vmem:[%s11077_s10 + $0x28] sm:$0xff]  }
 0x1ff   : > { %8144 = vmatprep.mubr.msk.f32.mxu1 %vm951_vm1, %v9337_v43  ;;  %8424 = vmatpush3.bf16.msra.mxu1 %v8421_v10  ;;  %v8617_v43 = vld [vmem:[%s11077_s10 + $0x38] sm:$0xff]   ;;  %v6783_v10 = vld [vmem:[%s11084_s17] ss:$0 sm:$0xff] }
 0x200   : > { %8169 = vmatprep.subr.bf16.mxu1 %v8626_v25 }
 0x202   : > { %8145 = vmatmul.mubr.msk.f32.gmra.mrb[10].mxu1 %vm951_vm1, %v9335_v42 }
 0x203   : > { %8151 = vmatprep.mubr.msk.f32.mxu1 %vm1150_vm2, %v9432_v11 }
 0x206   : > { %8152 = vmatmul.mubr.msk.f32.vlgmr.msra.gmra.mrb[12].mxu1 %vm1150_vm2, %v9441_v12 }
 0x207   : > { %8154 = vmatprep.mubr.msk.f32.mxu1 %vm1150_vm2, %v9446_v13  ;;  %8170 = vmatpush3.bf16.msra.mxu1 %v8626_v25 }
 0x208   : > { %8171 = vmatprep.subr.bf16.mxu1 %v8627_v26 }
 0x20a   : > { %8155 = vmatmul.mubr.msk.f32.gmra.mrb[14].mxu1 %vm1150_vm2, %v9455_v14 }
 0x20b   : > { %8157 = vmatprep.mubr.msk.f32.mxu1 %vm1150_vm2, %v9460_v15  ;;  %8172 = vmatpush3.bf16.msra.mxu1 %v8627_v26 }
 0x20c   : > { %8173 = vmatprep.subr.bf16.mxu1 %v8628_v27 }
 0x20e   : > { %8158 = vmatmul.mubr.msk.f32.gmra.mrb[16].mxu1 %vm1150_vm2, %v9469_v16 }
 0x20f   : > { %8160 = vmatprep.mubr.msk.f32.mxu1 %vm1150_vm2, %v9474_v17  ;;  %8174 = vmatpush3.bf16.msra.mxu1 %v8628_v27 }
 0x210   : > { %8175 = vmatprep.subr.bf16.mxu1 %v8629_v28 }
 0x212   : > { %8161 = vmatmul.mubr.msk.f32.gmra.mrb[18].mxu1 %vm1150_vm2, %v9483_v18 }
 0x213   : > { %8163 = vmatprep.mubr.msk.f32.mxu1 %vm1150_vm2, %v9488_v19  ;;  %8176 = vmatpush3.bf16.msra.mxu1 %v8629_v28  ;;  %v8640_v28 = vld [vmem:[%s11078_s11 + $0x84] ss:$8 sps:$4 sm:$0xff]  }
 0x214   : > { %8183 = vmatprep.subr.bf16.mxu1 %v8630_v29 }
 0x216   : > { %8164 = vmatmul.mubr.msk.f32.gmra.mrb[20].mxu1 %vm1150_vm2, %v9497_v20 }
 0x217   : > { %8166 = vmatprep.mubr.msk.f32.mxu1 %vm1150_vm2, %v9502_v21 }
 0x21a   : > { %8167 = vmatmul.mubr.msk.f32.gmra.mrb[22].mxu1 %vm1150_vm2, %v9511_v22 }
 0x2b5   : > { %v8053_v30 = vpop.f32.mrb[2].mxu1 }
 0x2b6   : > { %v1235_v31 = vpop.f32.mrb[3].mxu1 }
 0x2b9   : > { %v8056_v32 = vpop.f32.mrb[4].mxu1 }
 0x2ba   : > { %v1245_v33 = vpop.f32.mrb[5].mxu1 }
 0x2bb   : > { %8076 = vmatprep.mubr.f32.mxu0 %v1245_v33 }
 0x2bc   : > { %8077 = vmatmul.mubr.f32.vlgmr.msra.gmra.mrb[18].mxu0 %v8056_v32 }
 0x2bd   : > { %8080 = vmatpush3.bf16.msra.mxu0 %v8610_v24  ;;  %8095 = vmatprep.mubr.f32.mxu0 %v1235_v31  ;;  %v9539_v35 = vpop.f32.mrb[6].mxu1  ;;  %v8638_v31 = vld [vmem:[%s11078_s11 + $0x80] ss:$8 sps:$4 sm:$0xff]  }
 0x2be   : > { %8081 = vmatprep.subr.bf16.mxu0 %v8611_v34  ;;  %v1255_v37 = vpop.f32.mrb[7].mxu1 }
 0x2c1   : > { %8082 = vmatpush3.bf16.msra.mxu0 %v8611_v34  ;;  %v8643_v34 = vld [vmem:[%s11078_s11 + $0x94] ss:$8 sps:$4 sm:$0xff]  }
 0x2c2   : > { %8083 = vmatprep.subr.bf16.mxu0 %v8612_v36 }
 0x2c5   : > { %8084 = vmatpush3.bf16.msra.mxu0 %v8612_v36 }
 0x2c6   : > { %8085 = vmatprep.subr.bf16.mxu0 %v8613_v38 }
 0x2c9   : > { %8086 = vmatpush3.bf16.msra.mxu0 %v8613_v38 }
 0x2ca   : > { %8087 = vmatprep.subr.bf16.mxu0 %v8614_v39 }
 0x2cd   : > { %8088 = vmatpush3.bf16.msra.mxu0 %v8614_v39 }
 0x2ce   : > { %8089 = vmatprep.subr.bf16.mxu0 %v8615_v40 }
 0x2d1   : > { %8090 = vmatpush3.bf16.msra.mxu0 %v8615_v40  ;;  %v9556_v42 = vpop.f32.mrb[8].mxu1 }
 0x2d2   : > { %8091 = vmatprep.subr.bf16.mxu0 %v8616_v41  ;;  %v9561_v44 = vpop.f32.mrb[9].mxu1 }
 0x2d5   : > { %8092 = vmatpush3.bf16.msra.mxu0 %v8616_v41  ;;  %v9563_v45 = vpop.f32.mrb[10].mxu1  ;;  %v698_v41 = vld [vmem:[%s9646_s3] sm:$0xff] }
 0x2d6   : > { %8093 = vmatprep.subr.bf16.mxu0 %v8617_v43  ;;  %v9568_v47 = vpop.f32.mrb[11].mxu1 }
 0x2d9   : > { %8094 = vmatpush3.bf16.msra.mxu0 %v8617_v43  ;;  %v8153_v48 = vpop.f32.mrb[12].mxu1 }
 0x2da   : > { %8098 = vmatprep.subr.bf16.mxu0 %v8618_v46  ;;  %v1972_v50 = vpop.f32.mrb[13].mxu1 }
 0x2dc   : > { %8096 = vmatmul.mubr.f32.vlgmr.msra.gmra.mrb[18].mxu0 %v8053_v30 }
 0x2dd   : > { %8099 = vmatpush3.bf16.msra.mxu0 %v8618_v46  ;;  %8114 = vmatprep.mubr.f32.mxu0 %v1255_v37  ;;  %v8156_v51 = vpop.f32.mrb[14].mxu1  ;;  %v699_v37 = vld [vmem:[%s9646_s3 + $0x8] sm:$0xff] }
 0x2de   : > { %8100 = vmatprep.subr.bf16.mxu0 %v8619_v49  ;;  %v1982_v53 = vpop.f32.mrb[15].mxu1 }
 0x2e1   : > { %8101 = vmatpush3.bf16.msra.mxu0 %v8619_v49  ;;  %v8159_v54 = vpop.f32.mrb[16].mxu1 }
 0x2e2   : > { %8102 = vmatprep.subr.bf16.mxu0 %v8620_v52  ;;  %v1992_v56 = vpop.f32.mrb[17].mxu1 }
 0x2e3   : > { %8177 = vmatprep.mubr.msk.f32.mxu1 %vm1139_vm3, %v1992_v56 }
 0x2e4   : > { %8178 = vmatmul.mubr.msk.f32.vlgmr.msra.gmra.mrb[24].mxu1 %vm1139_vm3, %v8159_v54 }
 0x2e5   : > { %8103 = vmatpush3.bf16.msra.mxu0 %v8620_v52  ;;  %8184 = vmatpush3.bf16.msra.mxu1 %v8630_v29  ;;  %v8162_v58 = vpop.f32.mrb[18].mxu1  ;;  %v6863_v29 = vld [vmem:[%s11083_s16] ss:$0 sm:$0xff]  ;;  %v700_v52 = vld [vmem:[%s9646_s3 + $0x10] sm:$0xff] }
 0x2e6   : > { %8104 = vmatprep.subr.bf16.mxu0 %v8621_v55  ;;  %8185 = vmatprep.subr.bf16.mxu1 %v8631_v57  ;;  %v2002_v61 = vpop.f32.mrb[19].mxu1 }
 0x2e7   : > { %8180 = vmatprep.mubr.msk.f32.mxu1 %vm1139_vm3, %v2002_v61  ;;  %v9090_v61 = vmov 0.0  }
 0x2e8   : > { %8181 = vmatmul.mubr.msk.f32.gmra.mrb[26].mxu1 %vm1139_vm3, %v8162_v58 }
 0x2e9   : > { %8105 = vmatpush3.bf16.msra.mxu0 %v8621_v55  ;;  %8186 = vmatpush3.bf16.msra.mxu1 %v8631_v57  ;;  %v8165_v62 = vpop.f32.mrb[20].mxu1  ;;  %v8647_v57 = vld [vmem:[%s11078_s11 + $0xb0] ss:$8 sps:$4 sm:$0xff]  }
 0x2ea   : > { %8106 = vmatprep.subr.bf16.mxu0 %v8622_v59  ;;  %8187 = vmatprep.subr.bf16.mxu1 %v8632_v60  ;;  %v2012_v1 = vpop.f32.mrb[21].mxu1 }
 0x2eb   : > { %8191 = vmatprep.mubr.msk.f32.mxu1 %vm1139_vm3, %v1972_v50  ;;  %v701_v50 = vld [vmem:[%s9646_s3 + $0x18] sm:$0xff] }
 0x2ed   : > { %8107 = vmatpush3.bf16.msra.mxu0 %v8622_v59  ;;  %8188 = vmatpush3.bf16.msra.mxu1 %v8632_v60  ;;  %v8168_v2 = vpop.f32.mrb[22].mxu1  ;;  %v8652_v59 = vld [vmem:[%s11078_s11 + $0xc4] ss:$8 sps:$4 sm:$0xff]   ;;  %v8659_v60 = vld [vmem:[%s11078_s11 + $0xf0] ss:$8 sps:$4 sm:$0xff]  }
 0x2ee   : > { %8108 = vmatprep.subr.bf16.mxu0 %v8623_v63  ;;  %8189 = vmatprep.subr.bf16.mxu1 %v8633_v0  ;;  %v2022_v5 = vpop.f32.mrb[23].mxu1 }
 0x2f1   : > { %8109 = vmatpush3.bf16.msra.mxu0 %v8623_v63  ;;  %8190 = vmatpush3.bf16.msra.mxu1 %v8633_v0 }
 0x2f2   : > { %8110 = vmatprep.subr.bf16.mxu0 %v8624_v3  ;;  %8197 = vmatprep.subr.bf16.mxu1 %v8634_v4 }
 0x2f4   : > { %8192 = vmatmul.mubr.msk.f32.vlgmr.msra.gmra.mrb[24].mxu1 %vm1139_vm3, %v8153_v48 }
 0x2f5   : > { %8111 = vmatpush3.bf16.msra.mxu0 %v8624_v3  ;;  %8198 = vmatpush3.bf16.msra.mxu1 %v8634_v4  ;;  %v8667_v4 = vld [vmem:[%s11078_s11 + $0x14] ss:$8 sps:$4 sm:$0xff]  }
 0x2f6   : > { %8112 = vmatprep.subr.bf16.mxu0 %v8625_v6  ;;  %8199 = vmatprep.subr.bf16.mxu1 %v8635_v7 }
 0x2f7   : > { %8194 = vmatprep.mubr.msk.f32.mxu1 %vm1139_vm3, %v1982_v53  ;;  %v8644_v53 = vld [vmem:[%s11078_s11 + $0xa0] ss:$8 sps:$4 sm:$0xff]  }
 0x2f8   : > { %8195 = vmatmul.mubr.msk.f32.gmra.mrb[26].mxu1 %vm1139_vm3, %v8156_v51 }
 0x2f9   : > { %8113 = vmatpush3.bf16.msra.mxu0 %v8625_v6  ;;  %8200 = vmatpush3.bf16.msra.mxu1 %v8635_v7  ;;  %v8665_v6 = vld [vmem:[%s11078_s11 + $0x10] ss:$8 sps:$4 sm:$0xff]   ;;  %v8670_v7 = vld [vmem:[%s11078_s11 + $0x24] ss:$8 sps:$4 sm:$0xff]  }
 0x2fa   : > { %8201 = vmatprep.subr.bf16.mxu1 %v8636_v8  ;;  %8205 = vmatprep.mubr.msk.f32.mxu1 %vm1139_vm3, %v2012_v1 }
 0x2fc   : > { %8115 = vmatmul.mubr.f32.vlgmr.msra.gmra.mrb[18].mxu0 %v9539_v35 }
 0x2fd   : > { %8202 = vmatpush3.bf16.msra.mxu1 %v8636_v8  ;;  %8215 = vmatprep.mubr.msk.f32.mxu0 %vm1150_vm2, %v9432_v11  ;;  %v6810_v11 = vld [vmem:[%s11082_s15] ss:$0 sm:$0xff] }
 0x2fe   : > { %8203 = vmatprep.subr.bf16.mxu1 %v8637_v9  ;;  %v1855_v30 = vadd.f32 %v9556_v42, %v6810_v11  ;;  %v1854_v32 = vadd.f32 %v6810_v11, %v9561_v44  ;;  %v1857_v39 = vadd.f32 %v9563_v45, %v6810_v11  ;;  %v8641_v42 = vld [vmem:[%s11078_s11 + $0x90] ss:$8 sps:$4 sm:$0xff]   ;;  %v1856_v43 = vadd.f32 %v6810_v11, %v9568_v47  ;;  %v8646_v45 = vld [vmem:[%s11078_s11 + $0xa4] ss:$8 sps:$4 sm:$0xff]  }
 0x2ff   : > { %v8676_v11 = vld [vmem:[%s11078_s11 + $0x44] ss:$8 sps:$4 sm:$0xff]  }
 0x301   : > { %8204 = vmatpush3.bf16.msra.mxu1 %v8637_v9 }
 0x304   : > { %8206 = vmatmul.mubr.msk.f32.vlgmr.msra.gmra.mrb[24].mxu1 %vm1139_vm3, %v8165_v62 }
 0x305   : > { %8208 = vmatprep.mubr.msk.f32.mxu1 %vm1139_vm3, %v2022_v5 }
 0x308   : > { %8209 = vmatmul.mubr.msk.f32.gmra.mrb[26].mxu1 %vm1139_vm3, %v8168_v2  ;;  %v8662_v2 = vld [vmem:[%s11078_s11] ss:$8 sps:$4 sm:$0xff]  }
 0x309   : > { %3073 = vmatprep.mubr.f32.mxu1 %v9090_v61 }
 0x3cf   : > { %v8116_v23 = vpop.f32.mrb[18].mxu0 }
 0x3d0   : > { %v1597_v24 = vadd.f32 %v8116_v23, %v6783_v10  ;;  %v1578_v25 = vpop.f32.mrb[19].mxu0  ;;  %v8673_v23 = vld [vmem:[%s11078_s11 + $0x34] ss:$8 sps:$4 sm:$0xff]  }
 0x3d1   : > { %v1596_v26 = vadd.f32 %v6783_v10, %v1578_v25  ;;  %v8668_v10 = vld [vmem:[%s11078_s11 + $0x20] ss:$8 sps:$4 sm:$0xff]  }
 0x3d3   : > { %v8425_v27 = vpack.c.bf16 %v1597_v24, %v1596_v26  ;;  %v8671_v26 = vld [vmem:[%s11078_s11 + $0x30] ss:$8 sps:$4 sm:$0xff]  }
 0x3d5   : > { %8426 = vmatprep.subr.bf16.mxu0 %v8425_v27 }
 0x3d6   : > { %8428 = vmatpush3.bf16.msra.mxu0 %v8425_v27 }
 0x3d7   : > { %v8207_v33 = vpop.f32.mrb[24].mxu1  ;;  %2585 = vmatprep.subr.bf16.mxu0 %v8640_v28 }
 0x3d8   : > { %v2336_v35 = vadd.f32 %v8207_v33, %v6863_v29  ;;  %v2305_v36 = vpop.f32.mrb[25].mxu1  ;;  %v8680_v33 = vld [vmem:[%s11078_s11 + $0x60] ss:$8 sps:$4 sm:$0xff]  }
 0x3d9   : > { %8216 = vmatmul.mubr.msk.f32.vlgmr.msra.gmra.mrb[20].mxu0 %vm1150_vm2, %v9441_v12  ;;  %v2335_v38 = vadd.f32 %v6863_v29, %v2305_v36  ;;  %v8688_v36 = vld [vmem:[%s11078_s11 + $0x104] ss:$8 sps:$4 sm:$0xff]  }
 0x3da   : > { %8218 = vmatprep.mubr.msk.f32.mxu0 %vm1150_vm2, %v9446_v13  ;;  %v2340_v40 = vmul.f32 %v2336_v35, %v1855_v30  ;;  %2586 = vmatpush1.bf16.msra.mxu0 %v8638_v31  ;;  %v8679_v30 = vld [vmem:[%s11078_s11 + $0x54] ss:$8 sps:$4 sm:$0xff]   ;;  %v8677_v31 = vld [vmem:[%s11078_s11 + $0x50] ss:$8 sps:$4 sm:$0xff]  }
 0x3db   : > { %v2339_v44 = vmul.f32 %v2335_v38, %v1854_v32  ;;  %v8210_v12 = vpop.f32.mrb[26].mxu1  ;;  %2587 = vmatprep.subr.bf16.mxu0 %v8643_v34  ;;  %v8682_v32 = vld [vmem:[%s11078_s11 + $0x64] ss:$8 sps:$4 sm:$0xff]   ;;  %v8685_v34 = vld [vmem:[%s11078_s11 + $0x74] ss:$8 sps:$4 sm:$0xff]  }
 0x3dc   : > { %v9669_v46 = vmul.f32 %v2340_v40, %v699_v37  ;;  %v2338_v13 = vadd.f32 %v8210_v12, %v6863_v29  ;;  %v2315_v48 = vpop.f32.mrb[27].mxu1  ;;  %v8683_v35 = vld [vmem:[%s11078_s11 + $0x70] ss:$8 sps:$4 sm:$0xff]   ;;  %v8686_v37 = vld [vmem:[%s11078_s11 + $0x100] ss:$8 sps:$4 sm:$0xff]  }
 0x3dd   : > { %8219 = vmatmul.mubr.msk.f32.gmra.mrb[22].mxu0 %vm1150_vm2, %v9455_v14  ;;  %v9673_v49 = vmul.f32 %v2339_v44, %v698_v41  ;;  %v2337_v51 = vadd.f32 %v6863_v29, %v2315_v48  ;;  %v8649_v14 = vld [vmem:[%s11078_s11 + $0xb4] ss:$8 sps:$4 sm:$0xff]   ;;  %v8674_v29 = vld [vmem:[%s11078_s11 + $0x40] ss:$8 sps:$4 sm:$0xff]   ;;  %v8694_v40 = vld [vmem:[%s11078_s11 + $0x124] ss:$8 sps:$4 sm:$0xff]  }
 0x3de   : > { %8221 = vmatprep.mubr.msk.f32.mxu0 %vm1150_vm2, %v9460_v15  ;;  %v2342_v47 = vmul.f32 %v2338_v13, %v1857_v39  ;;  %2588 = vmatpush1.bf16.msra.mxu0 %v8641_v42  ;;  %v8691_v38 = vld [vmem:[%s11078_s11 + $0x114] ss:$8 sps:$4 sm:$0xff]   ;;  %v8689_v39 = vld [vmem:[%s11078_s11 + $0x110] ss:$8 sps:$4 sm:$0xff]   ;;  %v8692_v41 = vld [vmem:[%s11078_s11 + $0x120] ss:$8 sps:$4 sm:$0xff]  }
 0x3df   : > { %v8431_v54 = vpack.c.bf16 %v9669_v46, %v9673_v49  ;;  %v2341_v55 = vmul.f32 %v2337_v51, %v1856_v43  ;;  %2589 = vmatprep.subr.bf16.mxu0 %v8646_v45  ;;  %v8697_v42 = vld [vmem:[%s11078_s11 + $0x134] ss:$8 sps:$4 sm:$0xff]   ;;  %v8695_v43 = vld [vmem:[%s11078_s11 + $0x130] ss:$8 sps:$4 sm:$0xff]   ;;  %v8700_v44 = vld [vmem:[%s11078_s11 + $0x144] ss:$8 sps:$4 sm:$0xff]  }
 0x3e0   : > { %v9687_v56 = vmul.f32 %v2342_v47, %v701_v50  ;;  %v8698_v12 = vld [vmem:[%s11078_s11 + $0x140] ss:$8 sps:$4 sm:$0xff]   ;;  %v8703_v45 = vld [vmem:[%s11078_s11 + $0x154] ss:$8 sps:$4 sm:$0xff]   ;;  %v8701_v13 = vld [vmem:[%s11078_s11 + $0x150] ss:$8 sps:$4 sm:$0xff]  }
 0x3e1   : > { %8222 = vmatmul.mubr.msk.f32.gmra.mrb[24].mxu0 %vm1150_vm2, %v9469_v16  ;;  %v9691_v15 = vmul.f32 %v2341_v55, %v700_v52  ;;  %v8650_v16 = vld [vmem:[%s11078_s11 + $0xc0] ss:$8 sps:$4 sm:$0xff]   ;;  %v8706_v48 = vld [vmem:[%s11078_s11 + $0x164] ss:$8 sps:$4 sm:$0xff]   ;;  %v8709_v51 = vld [vmem:[%s11078_s11 + $0x174] ss:$8 sps:$4 sm:$0xff]  }
 0x3e2   : > { %8224 = vmatprep.mubr.msk.f32.mxu0 %vm1150_vm2, %v9474_v17  ;;  %2590 = vmatpush1.bf16.msra.mxu0 %v8644_v53  ;;  %v8655_v17 = vld [vmem:[%s11078_s11 + $0xd4] ss:$8 sps:$4 sm:$0xff]   ;;  %v8704_v50 = vld [vmem:[%s11078_s11 + $0x160] ss:$8 sps:$4 sm:$0xff]   ;;  %v8707_v47 = vld [vmem:[%s11078_s11 + $0x170] ss:$8 sps:$4 sm:$0xff]  }
 0x3e3   : > { %v8435_v58 = vpack.c.bf16 %v9687_v56, %v9691_v15  ;;  %2591 = vmatprep.subr.bf16.mxu0 %v8649_v14  ;;  %v8737_v52 = vld [vmem:[%s11079_s12 + $0x308] ss:$12 sps:$4 sm:$0xff]   ;;  %v8742_v55 = vld [vmem:[%s11079_s12 + $0x320] ss:$12 sps:$4 sm:$0xff]   ;;  %v8712_v49 = vld [vmem:[%s11079_s12 + $0x244] ss:$12 sps:$4 sm:$0xff]  }
 0x3e4   : > { %v8738_v53 = vld [vmem:[%s11079_s12 + $0x248] ss:$12 sps:$4 sm:$0xff]   ;;  %v8743_v14 = vld [vmem:[%s11079_s12 + $0x260] ss:$12 sps:$4 sm:$0xff]   ;;  %v2964_v56 = vld [vmem:[%s11073_s6 + $0x18] sm:$0xff] }
 0x3e5   : > { %8225 = vmatmul.mubr.msk.f32.gmra.mrb[26].mxu0 %vm1150_vm2, %v9483_v18  ;;  %v8653_v18 = vld [vmem:[%s11078_s11 + $0xd0] ss:$8 sps:$4 sm:$0xff]   ;;  %v2962_v46 = vld [vmem:[%s11073_s6 + $0x8] sm:$0xff]  ;;  %v2965_v15 = vld [vmem:[%s11073_s6 + $0x20] sm:$0xff] }
 0x3e6   : > { %8227 = vmatprep.mubr.msk.f32.mxu0 %vm1150_vm2, %v9488_v19  ;;  %2592 = vmatpush1.bf16.msra.mxu0 %v8647_v57  ;;  %v8658_v19 = vld [vmem:[%s11078_s11 + $0xe4] ss:$8 sps:$4 sm:$0xff]  }
 0x3e7   : > { %2593 = vmatprep.subr.bf16.mxu0 %v8652_v59  ;;  %v8747_v57 = vld [vmem:[%s11079_s12 + $0x338] ss:$12 sps:$4 sm:$0xff]  }
 0x3e8   : > { %v8748_v59 = vld [vmem:[%s11079_s12 + $0x278] ss:$12 sps:$4 sm:$0xff]  }
 0x3e9   : > { %8228 = vmatmul.mubr.msk.f32.gmra.mrb[28].mxu0 %vm1150_vm2, %v9497_v20  ;;  %v8656_v20 = vld [vmem:[%s11078_s11 + $0xe0] ss:$8 sps:$4 sm:$0xff]  }
 0x3ea   : > { %8230 = vmatprep.mubr.msk.f32.mxu0 %vm1150_vm2, %v9502_v21  ;;  %2594 = vmatpush1.bf16.msra.mxu0 %v8650_v16  ;;  %v8661_v21 = vld [vmem:[%s11078_s11 + $0xf4] ss:$8 sps:$4 sm:$0xff]  }
 0x3eb   : > { %2595 = vmatprep.subr.bf16.mxu0 %v8655_v17  ;;  %v8752_v16 = vld [vmem:[%s11079_s12 + $0x350] ss:$12 sps:$4 sm:$0xff]   ;;  %v2943_v17 = vlaneseq }
 0x3ed   : > { %8231 = vmatmul.mubr.msk.f32.gmra.mrb[30].mxu0 %vm1150_vm2, %v9511_v22  ;;  %v8664_v22 = vld [vmem:[%s11078_s11 + $0x4] ss:$8 sps:$4 sm:$0xff]  }
 0x3ee   : > { %2596 = vmatpush1.bf16.msra.mxu0 %v8653_v18  ;;  %2617 = vmatprep.mubr.f32.mxu0 %v9090_v61  ;;  %v9876_v18 = vshrl.u32 %v2943_v17, 7  ;;  %v8758_v17 = vld [vmem:[%s11079_s12 + $0x2a8] ss:$12 sps:$4 sm:$0xff]  }
 0x3ef   : > { %2597 = vmatprep.subr.bf16.mxu0 %v8658_v19 }
 0x3f0   : > { %v2945_v19 = vsub.s32 0, %v9876_v18 }
 0x3f2   : > { %2598 = vmatpush1.bf16.msra.mxu0 %v8656_v20  ;;  %v2941_v20 = vld [vmem:[%s11085_s18] sm:$0x3] }
 0x3f3   : > { %2599 = vmatprep.subr.bf16.mxu0 %v8661_v21  ;;  %v2949_v21 = vsub.s32 1, %v9876_v18 }
 0x3f6   : > { %2600 = vmatpush1.bf16.msra.mxu0 %v8659_v60 }
 0x3f7   : > { %2722 = vmatprep.subr.bf16.mxu0 %v8664_v22  ;;  %v2946_v22 = vrot.slane %v2941_v20, %v2945_v19 }
 0x4ac   : > { %v8217_v62 = vpop.f32.mrb[20].mxu0 }
 0x4ad   : > { %v2413_v63 = vpop.f32.mrb[21].mxu0 }
 0x4b0   : > { %v9739_v0 = vpop.f32.mrb[22].mxu0 }
 0x4b1   : > { %v2423_v1 = vpop.f32.mrb[23].mxu0 }
 0x4b4   : > { %v8223_v3 = vpop.f32.mrb[24].mxu0 }
 0x4b5   : > { %v2433_v5 = vpop.f32.mrb[25].mxu0 }
 0x4b6   : > { %2618 = vmatmul.mubr.f32.vlgmr.msra.gmra.mrb[32].mxu0 %v2433_v5 }
 0x4b7   : > { %2723 = vmatpush1.bf16.msra.mxu0 %v8662_v2  ;;  %2623 = vmatprep.mubr.f32.mxu0 %v9090_v61 }
 0x4b8   : > { %2724 = vmatprep.subr.bf16.mxu0 %v8667_v4  ;;  %v8226_v8 = vpop.f32.mrb[26].mxu0 }
 0x4b9   : > { %v2443_v9 = vpop.f32.mrb[27].mxu0 }
 0x4ba   : > { %2624 = vmatmul.mubr.f32.gmra.mrb[34].mxu0 %v8223_v3 }
 0x4bb   : > { %2725 = vmatpush1.bf16.msra.mxu0 %v8665_v6  ;;  %2629 = vmatprep.mubr.f32.mxu0 %v9090_v61 }
 0x4bc   : > { %2726 = vmatprep.subr.bf16.mxu0 %v8670_v7  ;;  %v9761_v24 = vpop.f32.mrb[28].mxu0 }
 0x4bd   : > { %v9763_v25 = vpop.f32.mrb[29].mxu0 }
 0x4be   : > { %2630 = vmatmul.mubr.f32.gmra.mrb[36].mxu0 %v2443_v9 }
 0x4bf   : > { %2727 = vmatpush1.bf16.msra.mxu0 %v8668_v10  ;;  %2635 = vmatprep.mubr.f32.mxu0 %v9090_v61 }
 0x4c0   : > { %2728 = vmatprep.subr.bf16.mxu0 %v8673_v23  ;;  %v9772_v27 = vpop.f32.mrb[30].mxu0 }
 0x4c1   : > { %v2463_v28 = vpop.f32.mrb[31].mxu0 }
 0x4c2   : > { %2636 = vmatmul.mubr.f32.gmra.mrb[38].mxu0 %v8226_v8 }
 0x4c3   : > { %2729 = vmatpush1.bf16.msra.mxu0 %v8671_v26  ;;  %2754 = vmatprep.mubr.f32.mxu0 %v9090_v61 }
 0x4c4   : > { %2730 = vmatprep.subr.bf16.mxu0 %v8676_v11 }
 0x4c7   : > { %2731 = vmatpush1.bf16.msra.mxu0 %v8674_v29  ;;  %v2961_v29 = vld [vmem:[%s11073_s6] sm:$0xff] }
 0x4c8   : > { %2732 = vmatprep.subr.bf16.mxu0 %v8679_v30  ;;  %v2967_v30 = vld [vmem:[%s11073_s6 + $0x30] sm:$0xff] }
 0x4cb   : > { %2733 = vmatpush1.bf16.msra.mxu0 %v8677_v31  ;;  %v2968_v31 = vld [vmem:[%s11073_s6 + $0x38] sm:$0xff] }
 0x4cc   : > { %2734 = vmatprep.subr.bf16.mxu0 %v8682_v32  ;;  %v2969_v32 = vld [vmem:[%s11073_s6 + $0x40] sm:$0xff] }
 0x4cf   : > { %2735 = vmatpush1.bf16.msra.mxu0 %v8680_v33  ;;  %v2970_v33 = vld [vmem:[%s11073_s6 + $0x48] sm:$0xff] }
 0x4d0   : > { %2736 = vmatprep.subr.bf16.mxu0 %v8685_v34  ;;  %v2971_v34 = vld [vmem:[%s11073_s6 + $0x50] sm:$0xff] }
 0x4d3   : > { %2737 = vmatpush1.bf16.msra.mxu0 %v8683_v35  ;;  %v2972_v35 = vld [vmem:[%s11073_s6 + $0x58] sm:$0xff] }
 0x4d4   : > { %2876 = vmatprep.subr.bf16.mxu0 %v8688_v36  ;;  %v8710_v36 = vld [vmem:[%s11079_s12 + $0x240] ss:$12 sps:$4 sm:$0xff]  }
 0x4d6   : > { %2755 = vmatmul.mubr.f32.vlgmr.msra.gmra.mrb[32].mxu0 %v2413_v63  ;;  %v2950_v63 = vrot.slane %v2941_v20, %v2949_v21  ;;  %v8751_v20 = vld [vmem:[%s11079_s12 + $0x34c] ss:$12 sps:$4 sm:$0xff]  }
 0x4d7   : > { %2877 = vmatpush1.bf16.msra.mxu0 %v8686_v37  ;;  %2760 = vmatprep.mubr.f32.mxu0 %v9090_v61  ;;  %v8715_v37 = vld [vmem:[%s11079_s12 + $0x25c] ss:$12 sps:$4 sm:$0xff]  }
 0x4d8   : > { %2878 = vmatprep.subr.bf16.mxu0 %v8691_v38  ;;  %v8713_v38 = vld [vmem:[%s11079_s12 + $0x258] ss:$12 sps:$4 sm:$0xff]  }
 0x4da   : > { %2761 = vmatmul.mubr.f32.gmra.mrb[34].mxu0 %v8217_v62 }
 0x4db   : > { %2879 = vmatpush1.bf16.msra.mxu0 %v8689_v39  ;;  %2766 = vmatprep.mubr.f32.mxu0 %v9090_v61  ;;  %v8718_v39 = vld [vmem:[%s11079_s12 + $0x274] ss:$12 sps:$4 sm:$0xff]  }
 0x4dc   : > { %2880 = vmatprep.subr.bf16.mxu0 %v8694_v40  ;;  %v8716_v40 = vld [vmem:[%s11079_s12 + $0x270] ss:$12 sps:$4 sm:$0xff]  }
 0x4de   : > { %2767 = vmatmul.mubr.f32.gmra.mrb[36].mxu0 %v2423_v1 }
 0x4df   : > { %2881 = vmatpush1.bf16.msra.mxu0 %v8692_v41  ;;  %2772 = vmatprep.mubr.f32.mxu0 %v9090_v61  ;;  %v8721_v41 = vld [vmem:[%s11079_s12 + $0x28c] ss:$12 sps:$4 sm:$0xff]  }
 0x4e0   : > { %2882 = vmatprep.subr.bf16.mxu0 %v8697_v42  ;;  %v8719_v42 = vld [vmem:[%s11079_s12 + $0x288] ss:$12 sps:$4 sm:$0xff]  }
 0x4e2   : > { %2773 = vmatmul.mubr.f32.gmra.mrb[38].mxu0 %v9739_v0 }
 0x4e3   : > { %2883 = vmatpush1.bf16.msra.mxu0 %v8695_v43  ;;  %2908 = vmatprep.mubr.f32.mxu0 %v9090_v61  ;;  %v8724_v43 = vld [vmem:[%s11079_s12 + $0x2a4] ss:$12 sps:$4 sm:$0xff]  }
 0x4e4   : > { %2884 = vmatprep.subr.bf16.mxu0 %v8700_v44  ;;  %v8722_v44 = vld [vmem:[%s11079_s12 + $0x2a0] ss:$12 sps:$4 sm:$0xff]  }
 0x4e7   : > { %2885 = vmatpush1.bf16.msra.mxu0 %v8698_v12  ;;  %v8727_v12 = vld [vmem:[%s11079_s12 + $0x2bc] ss:$12 sps:$4 sm:$0xff]  }
 0x4e8   : > { %2886 = vmatprep.subr.bf16.mxu0 %v8703_v45  ;;  %v8725_v45 = vld [vmem:[%s11079_s12 + $0x2b8] ss:$12 sps:$4 sm:$0xff]  }
 0x4eb   : > { %2887 = vmatpush1.bf16.msra.mxu0 %v8701_v13  ;;  %v8730_v13 = vld [vmem:[%s11079_s12 + $0x2d4] ss:$12 sps:$4 sm:$0xff]  }
 0x4ec   : > { %2888 = vmatprep.subr.bf16.mxu0 %v8706_v48  ;;  %v8728_v48 = vld [vmem:[%s11079_s12 + $0x2d0] ss:$12 sps:$4 sm:$0xff]  }
 0x4ef   : > { %2889 = vmatpush1.bf16.msra.mxu0 %v8704_v50  ;;  %v8733_v50 = vld [vmem:[%s11079_s12 + $0x2ec] ss:$12 sps:$4 sm:$0xff]  }
 0x4f0   : > { %2890 = vmatprep.subr.bf16.mxu0 %v8709_v51  ;;  %v8731_v51 = vld [vmem:[%s11079_s12 + $0x2e8] ss:$12 sps:$4 sm:$0xff]  }
 0x4f3   : > { %2891 = vmatpush1.bf16.msra.mxu0 %v8707_v47  ;;  %v8736_v47 = vld [vmem:[%s11079_s12 + $0x304] ss:$12 sps:$4 sm:$0xff]  }
 0x4f4   : > { %7741 = vmatprep.subr.bf16.mxu0 %v8737_v52  ;;  %v8734_v52 = vld [vmem:[%s11079_s12 + $0x300] ss:$12 sps:$4 sm:$0xff]  }
 0x4f6   : > { %2909 = vmatmul.mubr.f32.vlgmr.msra.gmra.mrb[32].mxu0 %v9763_v25 }
 0x4f7   : > { %2914 = vmatprep.mubr.f32.mxu0 %v9090_v61  ;;  %7742 = vmatpush3.bf16.msra.mxu0 %v8738_v53  ;;  %v8741_v53 = vld [vmem:[%s11079_s12 + $0x31c] ss:$12 sps:$4 sm:$0xff]  }
 0x4f8   : > { %7743 = vmatprep.subr.bf16.mxu0 %v8742_v55  ;;  %v8739_v55 = vld [vmem:[%s11079_s12 + $0x318] ss:$12 sps:$4 sm:$0xff]  }
 0x4fa   : > { %2915 = vmatmul.mubr.f32.gmra.mrb[34].mxu0 %v9761_v24 }
 0x4fb   : > { %2920 = vmatprep.mubr.f32.mxu0 %v9090_v61  ;;  %7744 = vmatpush3.bf16.msra.mxu0 %v8743_v14  ;;  %v8753_v14 = vld [vmem:[%s11079_s12 + $0x290] ss:$12 sps:$4 sm:$0xff]  }
 0x4fc   : > { %7745 = vmatprep.subr.bf16.mxu0 %v8747_v57  ;;  %v8746_v57 = vld [vmem:[%s11079_s12 + $0x334] ss:$12 sps:$4 sm:$0xff]  }
 0x4fe   : > { %2921 = vmatmul.mubr.f32.gmra.mrb[36].mxu0 %v2463_v28 }
 0x4ff   : > { %2926 = vmatprep.mubr.f32.mxu0 %v9090_v61  ;;  %7746 = vmatpush3.bf16.msra.mxu0 %v8748_v59  ;;  %v8757_v59 = vld [vmem:[%s11079_s12 + $0x368] ss:$12 sps:$4 sm:$0xff]  }
 0x500   : > { %7747 = vmatprep.subr.bf16.mxu0 %v8752_v16  ;;  %v8744_v16 = vld [vmem:[%s11079_s12 + $0x330] ss:$12 sps:$4 sm:$0xff]  }
 0x502   : > { %2927 = vmatmul.mubr.f32.gmra.mrb[38].mxu0 %v9772_v27 }
 0x503   : > { %7748 = vmatpush3.bf16.msra.mxu0 %v8753_v14  ;;  %v8801_v14 = vld [vmem:[%s11079_s12 + $0x458] ss:$12 sps:$4 sm:$0xff]  }
 0x504   : > { %7749 = vmatprep.subr.bf16.mxu0 %v8757_v59  ;;  %v8798_v59 = vld [vmem:[%s11079_s12 + $0x450] ss:$12 sps:$4 sm:$0xff]  }
 0x507   : > { %7750 = vmatpush3.bf16.msra.mxu0 %v8758_v17  ;;  %v8804_v17 = vld [vmem:[%s11079_s12 + $0x46c] ss:$12 sps:$4 sm:$0xff]  }
 0x5c9   : > { %v2910_v60 = vpop.f32.mrb[32].mxu0 }
 0x5ca   : > { %v2912_v62 = vpop.f32.mrb[33].mxu0  ;;  %v2953_v1 = vadd.f32 %v2946_v22, %v2910_v60  ;;  %v8762_v60 = vld [vmem:[%s11079_s12 + $0x380] ss:$12 sps:$4 sm:$0xff]  }
 0x5cb   : > { %v2954_v4 = vadd.f32 %v2950_v63, %v2912_v62  ;;  %v8763_v62 = vld [vmem:[%s11079_s12 + $0x2c0] ss:$12 sps:$4 sm:$0xff]   ;;  %7751 = vmatprep.subr.bf16.mxu0 %v8762_v60 }
 0x5cc   : > { %7752 = vmatpush3.bf16.msra.mxu0 %v8763_v62 }
 0x5cd   : > { %v2916_v0 = vpop.f32.mrb[34].mxu0 }
 0x5ce   : > { %v2955_v2 = vadd.f32 %v2946_v22, %v2916_v0  ;;  %v2918_v3 = vpop.f32.mrb[35].mxu0  ;;  %v8767_v0 = vld [vmem:[%s11079_s12 + $0x398] ss:$12 sps:$4 sm:$0xff]  }
 0x5cf   : > { %v2956_v5 = vadd.f32 %v2950_v63, %v2918_v3  ;;  %v8761_v3 = vld [vmem:[%s11079_s12 + $0x37c] ss:$12 sps:$4 sm:$0xff]   ;;  %7753 = vmatprep.subr.bf16.mxu0 %v8767_v0 }
 0x5d0   : > { %v8429_v6 = vpack.c.bf16 %v2955_v2, %v2953_v1  ;;  %v8754_v1 = vld [vmem:[%s11079_s12 + $0x360] ss:$12 sps:$4 sm:$0xff]   ;;  %v8768_v2 = vld [vmem:[%s11079_s12 + $0x2d8] ss:$12 sps:$4 sm:$0xff]   ;;  %v8809_v0 = vld [vmem:[%s11079_s12 + $0xc8] ss:$12 sps:$4 sm:$0xff]  }
 0x5d1   : > { %v8437_v7 = vpack.c.bf16 %v2956_v5, %v2954_v4  ;;  %v2922_v8 = vpop.f32.mrb[36].mxu0  ;;  %7754 = vmatpush3.bf16.msra.mxu0 %v8768_v2  ;;  %v8772_v4 = vld [vmem:[%s11079_s12 + $0x3b0] ss:$12 sps:$4 sm:$0xff]   ;;  %v8759_v5 = vld [vmem:[%s11079_s12 + $0x378] ss:$12 sps:$4 sm:$0xff]  }
 0x5d2   : > { %v2924_v9 = vpop.f32.mrb[37].mxu0  ;;  %8430 = vmatprep.subr.bf16.mxu1 %v8429_v6  ;;  %v2957_v23 = vadd.f32 %v2946_v22, %v2922_v8  ;;  %v8773_v6 = vld [vmem:[%s11079_s12 + $0x2f0] ss:$12 sps:$4 sm:$0xff]   ;;  %7755 = vmatprep.subr.bf16.mxu0 %v8772_v4 }
 0x5d3   : > { %8432 = vmatpush1.bf16.msra.mxu1 %v8431_v54  ;;  %v2958_v26 = vadd.f32 %v2950_v63, %v2924_v9  ;;  %v2963_v54 = vld [vmem:[%s11073_s6 + $0x10] sm:$0xff]  ;;  %v8771_v9 = vld [vmem:[%s11079_s12 + $0x3ac] ss:$12 sps:$4 sm:$0xff]  }
 0x5d4   : > { %v8764_v8 = vld [vmem:[%s11079_s12 + $0x390] ss:$12 sps:$4 sm:$0xff]  }
 0x5d5   : > { %v2928_v10 = vpop.f32.mrb[38].mxu0  ;;  %7756 = vmatpush3.bf16.msra.mxu0 %v8773_v6 }
 0x5d6   : > { %v2959_v24 = vadd.f32 %v2946_v22, %v2928_v10  ;;  %v2930_v25 = vpop.f32.mrb[39].mxu0  ;;  %v8749_v22 = vld [vmem:[%s11079_s12 + $0x348] ss:$12 sps:$4 sm:$0xff]  }
 0x5d7   : > { %v2960_v11 = vadd.f32 %v2950_v63, %v2930_v25  ;;  %v8756_v63 = vld [vmem:[%s11079_s12 + $0x364] ss:$12 sps:$4 sm:$0xff]   ;;  %v8769_v10 = vld [vmem:[%s11079_s12 + $0x3a8] ss:$12 sps:$4 sm:$0xff]  }
 0x5d8   : > { %v8433_v27 = vpack.c.bf16 %v2959_v24, %v2957_v23  ;;  %v8776_v23 = vld [vmem:[%s11079_s12 + $0x3c4] ss:$12 sps:$4 sm:$0xff]   ;;  %v8777_v24 = vld [vmem:[%s11079_s12 + $0x3c8] ss:$12 sps:$4 sm:$0xff]  }
 0x5d9   : > { %v8441_v28 = vpack.c.bf16 %v2960_v11, %v2958_v26  ;;  %8259 = vmatprep.subr.bf16.mxu0 %v8777_v24 }
 0x5da   : > { %8434 = vmatprep.subr.bf16.mxu1 %v8433_v27 }
 0x5db   : > { %8436 = vmatpush1.bf16.msra.mxu1 %v8435_v58  ;;  %v2966_v58 = vld [vmem:[%s11073_s6 + $0x28] sm:$0xff] }
 0x5dc   : > { %8438 = vmatprep.subr.bf16.mxu1 %v8437_v7 }
 0x5de   : > { %6956 = vmatmul.mubr.msk.f32.vlgmr.msra.gmra.mrb[28].mxu1 %vm951_vm1, %v2961_v29 }
 0x5df   : > { %8440 = vmatpush3.bf16.msra.mxu1 %v8437_v7  ;;  %3079 = vmatprep.mubr.f32.mxu1 %v9090_v61  ;;  %v8766_v7 = vld [vmem:[%s11079_s12 + $0x394] ss:$12 sps:$4 sm:$0xff]  }
 0x5e0   : > { %8442 = vmatprep.subr.bf16.mxu1 %v8441_v28 }
 0x5e2   : > { %6957 = vmatmul.mubr.msk.f32.gmra.mrb[30].mxu1 %vm951_vm1, %v2962_v46 }
 0x5e3   : > { %8444 = vmatpush3.bf16.msra.mxu1 %v8441_v28  ;;  %3085 = vmatprep.mubr.f32.mxu1 %v9090_v61 }
 0x5e4   : > { %3848 = vmatprep.subr.bf16.mxu1 %v8712_v49 }
 0x5e6   : > { %6958 = vmatmul.mubr.msk.f32.gmra.mrb[32].mxu1 %vm951_vm1, %v2963_v54 }
 0x5e7   : > { %3091 = vmatprep.mubr.f32.mxu1 %v9090_v61 }
 0x5ea   : > { %6959 = vmatmul.mubr.msk.f32.gmra.mrb[34].mxu1 %vm951_vm1, %v2964_v56 }
 0x5eb   : > { %3097 = vmatprep.mubr.f32.mxu1 %v9090_v61 }
 0x5ee   : > { %6960 = vmatmul.mubr.msk.f32.gmra.mrb[36].mxu1 %vm951_vm1, %v2965_v15 }
 0x5ef   : > { %3103 = vmatprep.mubr.f32.mxu1 %v9090_v61 }
 0x5f2   : > { %6961 = vmatmul.mubr.msk.f32.gmra.mrb[38].mxu1 %vm951_vm1, %v2966_v58 }
 0x5f3   : > { %3109 = vmatprep.mubr.f32.mxu1 %v9090_v61 }
 0x5f6   : > { %6962 = vmatmul.mubr.msk.f32.gmra.mrb[40].mxu1 %vm951_vm1, %v2967_v30 }
 0x5f7   : > { %3115 = vmatprep.mubr.f32.mxu1 %v9090_v61 }
 0x5fa   : > { %6963 = vmatmul.mubr.msk.f32.gmra.mrb[42].mxu1 %vm951_vm1, %v2968_v31 }
 0x5fb   : > { %3121 = vmatprep.mubr.f32.mxu1 %v9090_v61 }
 0x5fe   : > { %6964 = vmatmul.mubr.msk.f32.gmra.mrb[44].mxu1 %vm951_vm1, %v2969_v32 }
 0x5ff   : > { %3127 = vmatprep.mubr.f32.mxu1 %v9090_v61 }
 0x602   : > { %6965 = vmatmul.mubr.msk.f32.gmra.mrb[46].mxu1 %vm951_vm1, %v2970_v33 }
 0x603   : > { %3133 = vmatprep.mubr.f32.mxu1 %v9090_v61 }
 0x606   : > { %6966 = vmatmul.mubr.msk.f32.gmra.mrb[48].mxu1 %vm951_vm1, %v2971_v34 }
 0x607   : > { %3139 = vmatprep.mubr.f32.mxu1 %v9090_v61 }
 0x60a   : > { %6967 = vmatmul.mubr.msk.f32.gmra.mrb[50].mxu1 %vm951_vm1, %v2972_v35 }
 0x60b   : > { %8241 = vmatprep.mubr.msk.f32.mxu1 %vm951_vm1, %v2961_v29 }
 0x60e   : > { %8242 = vmatmul.mubr.msk.f32.vlgmr.msra.gmra.mrb[52].mxu1 %vm951_vm1, %v2962_v46 }
 0x60f   : > { %8244 = vmatprep.mubr.msk.f32.mxu1 %vm951_vm1, %v2963_v54  ;;  %3849 = vmatpush1.bf16.msra.mxu1 %v8710_v36 }
 0x610   : > { %3850 = vmatprep.subr.bf16.mxu1 %v8715_v37  ;;  %v8782_v37 = vld [vmem:[%s11079_s12 + $0x3f0] ss:$12 sps:$4 sm:$0xff]  }
 0x612   : > { %8245 = vmatmul.mubr.msk.f32.gmra.mrb[54].mxu1 %vm951_vm1, %v2964_v56  ;;  %v8774_v56 = vld [vmem:[%s11079_s12 + $0x3c0] ss:$12 sps:$4 sm:$0xff]  }
 0x613   : > { %8247 = vmatprep.mubr.msk.f32.mxu1 %vm951_vm1, %v2965_v15  ;;  %3851 = vmatpush1.bf16.msra.mxu1 %v8713_v38 }
 0x614   : > { %3852 = vmatprep.subr.bf16.mxu1 %v8718_v39  ;;  %v8788_v39 = vld [vmem:[%s11079_s12 + $0x40c] ss:$12 sps:$4 sm:$0xff]  }
 0x616   : > { %8248 = vmatmul.mubr.msk.f32.gmra.mrb[56].mxu1 %vm951_vm1, %v2966_v58  ;;  %v8780_v58 = vld [vmem:[%s11079_s12 + $0x3dc] ss:$12 sps:$4 sm:$0xff]  }
 0x617   : > { %8250 = vmatprep.mubr.msk.f32.mxu1 %vm951_vm1, %v2967_v30  ;;  %3853 = vmatpush1.bf16.msra.mxu1 %v8716_v40  ;;  %v8781_v30 = vld [vmem:[%s11079_s12 + $0x3e0] ss:$12 sps:$4 sm:$0xff]   ;;  %v8789_v40 = vld [vmem:[%s11079_s12 + $0x410] ss:$12 sps:$4 sm:$0xff]  }
 0x618   : > { %3854 = vmatprep.subr.bf16.mxu1 %v8721_v41 }
 0x61a   : > { %8251 = vmatmul.mubr.msk.f32.gmra.mrb[58].mxu1 %vm951_vm1, %v2968_v31 }
 0x61b   : > { %3855 = vmatpush1.bf16.msra.mxu1 %v8719_v42  ;;  %8253 = vmatprep.mubr.msk.f32.mxu1 %vm951_vm1, %v2969_v32  ;;  %v8778_v32 = vld [vmem:[%s11079_s12 + $0x3d8] ss:$12 sps:$4 sm:$0xff]   ;;  %v8786_v42 = vld [vmem:[%s11079_s12 + $0x408] ss:$12 sps:$4 sm:$0xff]  }
 0x61c   : > { %3856 = vmatprep.subr.bf16.mxu1 %v8724_v43 }
 0x61e   : > { %8254 = vmatmul.mubr.msk.f32.gmra.mrb[60].mxu1 %vm951_vm1, %v2970_v33 }
 0x61f   : > { %3857 = vmatpush1.bf16.msra.mxu1 %v8722_v44  ;;  %8256 = vmatprep.mubr.msk.f32.mxu1 %vm951_vm1, %v2971_v34  ;;  %v8784_v34 = vld [vmem:[%s11079_s12 + $0x3f4] ss:$12 sps:$4 sm:$0xff]   ;;  %v8792_v44 = vld [vmem:[%s11079_s12 + $0x424] ss:$12 sps:$4 sm:$0xff]  }
 0x620   : > { %3858 = vmatprep.subr.bf16.mxu1 %v8727_v12  ;;  %v8793_v12 = vld [vmem:[%s11079_s12 + $0x428] ss:$12 sps:$4 sm:$0xff]  }
 0x622   : > { %8257 = vmatmul.mubr.msk.f32.gmra.mrb[62].mxu1 %vm951_vm1, %v2972_v35  ;;  %v8785_v35 = vld [vmem:[%s11079_s12 + $0x3f8] ss:$12 sps:$4 sm:$0xff]  }
 0x623   : > { %3859 = vmatpush1.bf16.msra.mxu1 %v8725_v45 }
 0x624   : > { %3860 = vmatprep.subr.bf16.mxu1 %v8730_v13  ;;  %v8790_v13 = vld [vmem:[%s11079_s12 + $0x420] ss:$12 sps:$4 sm:$0xff]  }
 0x627   : > { %3861 = vmatpush1.bf16.msra.mxu1 %v8728_v48 }
 0x628   : > { %3862 = vmatprep.subr.bf16.mxu1 %v8733_v50  ;;  %v8796_v50 = vld [vmem:[%s11079_s12 + $0x43c] ss:$12 sps:$4 sm:$0xff]  }
 0x62b   : > { %3863 = vmatpush1.bf16.msra.mxu1 %v8731_v51  ;;  %v8797_v51 = vld [vmem:[%s11079_s12 + $0x440] ss:$12 sps:$4 sm:$0xff]  }
 0x62c   : > { %3864 = vmatprep.subr.bf16.mxu1 %v8736_v47 }
 0x62f   : > { %3865 = vmatpush1.bf16.msra.mxu1 %v8734_v52  ;;  %v8794_v52 = vld [vmem:[%s11079_s12 + $0x438] ss:$12 sps:$4 sm:$0xff]  }
 0x630   : > { %3866 = vmatprep.subr.bf16.mxu1 %v8741_v53 }
 0x633   : > { %3867 = vmatpush1.bf16.msra.mxu1 %v8739_v55  ;;  %v8800_v55 = vld [vmem:[%s11079_s12 + $0x454] ss:$12 sps:$4 sm:$0xff]  }
 0x634   : > { %3868 = vmatprep.subr.bf16.mxu1 %v8746_v57 }
 0x637   : > { %3869 = vmatpush1.bf16.msra.mxu1 %v8744_v16 }
 0x638   : > { %3870 = vmatprep.subr.bf16.mxu1 %v8751_v20  ;;  %v8805_v20 = vld [vmem:[%s11079_s12 + $0x470] ss:$12 sps:$4 sm:$0xff]  }
 0x63b   : > { %3871 = vmatpush1.bf16.msra.mxu1 %v8749_v22  ;;  %v8802_v22 = vld [vmem:[%s11079_s12 + $0x468] ss:$12 sps:$4 sm:$0xff]  }
 0x63c   : > { %3872 = vmatprep.subr.bf16.mxu1 %v8756_v63  ;;  %v8808_v63 = vld [vmem:[%s11079_s12 + $0x4] ss:$12 sps:$4 sm:$0xff]  }
 0x63f   : > { %3873 = vmatpush1.bf16.msra.mxu1 %v8754_v1 }
 0x640   : > { %3874 = vmatprep.subr.bf16.mxu1 %v8761_v3 }
 0x643   : > { %3875 = vmatpush1.bf16.msra.mxu1 %v8759_v5  ;;  %v8806_v5 = vld [vmem:[%s11079_s12] ss:$12 sps:$4 sm:$0xff]  }
 0x644   : > { %3876 = vmatprep.subr.bf16.mxu1 %v8766_v7  ;;  %v8810_v7 = vld [vmem:[%s11079_s12 + $0x8] ss:$12 sps:$4 sm:$0xff]  }
 0x647   : > { %3877 = vmatpush1.bf16.msra.mxu1 %v8764_v8 }
 0x648   : > { %3878 = vmatprep.subr.bf16.mxu1 %v8771_v9  ;;  %v8813_v9 = vld [vmem:[%s11079_s12 + $0x1c] ss:$12 sps:$4 sm:$0xff]  }
 0x64b   : > { %3879 = vmatpush1.bf16.msra.mxu1 %v8769_v10  ;;  %v8814_v10 = vld [vmem:[%s11079_s12 + $0xe0] ss:$12 sps:$4 sm:$0xff]  }
 0x64c   : > { %3905 = vmatprep.subr.bf16.mxu1 %v8776_v23  ;;  %v8811_v23 = vld [vmem:[%s11079_s12 + $0x18] ss:$12 sps:$4 sm:$0xff]  }
 0x6b1   : > { %v10093_v25 = vpop.f32.mrb[28].mxu1 }
 0x6b2   : > { %v10095_v26 = vpop.f32.mrb[29].mxu1 }
 0x6b5   : > { %v10097_v11 = vpop.f32.mrb[30].mxu1 }
 0x6b6   : > { %v10099_v27 = vpop.f32.mrb[31].mxu1 }
 0x6b9   : > { %v10101_v28 = vpop.f32.mrb[32].mxu1 }
 0x6ba   : > { %v10103_v29 = vpop.f32.mrb[33].mxu1 }
 0x6bd   : > { %v10105_v46 = vpop.f32.mrb[34].mxu1 }
 0x6be   : > { %v10107_v49 = vpop.f32.mrb[35].mxu1 }
 0x6c1   : > { %v3099_v54 = vpop.f32.mrb[36].mxu1 }
 0x6c2   : > { %v3101_v15 = vpop.f32.mrb[37].mxu1 }
 0x6c3   : > { %3880 = vmatprep.mubr.f32.mxu1 %v3101_v15  ;;  %3994 = vmatprep.mubr.f32.mxu0 %v3101_v15  ;;  %v8818_v15 = vld [vmem:[%s11079_s12 + $0x34] ss:$12 sps:$4 sm:$0xff]  }
 0x6c4   : > { %3881 = vmatmul.mubr.f32.vlgmr.msra.gmra.mrb[64].mxu1 %v3099_v54  ;;  %3995 = vmatmul.mubr.f32.vlgmr.msra.gmra.mrb[40].mxu0 %v3099_v54  ;;  %v8815_v54 = vld [vmem:[%s11079_s12 + $0x20] ss:$12 sps:$4 sm:$0xff]  }
 0x6c5   : > { %v3105_v31 = vpop.f32.mrb[38].mxu1  ;;  %3906 = vmatpush1.bf16.msra.mxu1 %v8774_v56  ;;  %8260 = vmatpush3.bf16.msra.mxu0 %v8777_v24 }
 0x6c6   : > { %v3107_v33 = vpop.f32.mrb[39].mxu1  ;;  %3907 = vmatprep.subr.bf16.mxu1 %v8780_v58  ;;  %8261 = vmatprep.subr.bf16.mxu0 %v8781_v30  ;;  %v8819_v58 = vld [vmem:[%s11079_s12 + $0xf8] ss:$12 sps:$4 sm:$0xff]  }
 0x6c7   : > { %3886 = vmatprep.mubr.f32.mxu1 %v3107_v33  ;;  %3999 = vmatprep.mubr.f32.mxu0 %v3107_v33 }
 0x6c8   : > { %3887 = vmatmul.mubr.f32.gmra.mrb[66].mxu1 %v3105_v31  ;;  %4000 = vmatmul.mubr.f32.gmra.mrb[42].mxu0 %v3105_v31  ;;  %v8820_v31 = vld [vmem:[%s11079_s12 + $0x38] ss:$12 sps:$4 sm:$0xff]  }
 0x6c9   : > { %v3111_v36 = vpop.f32.mrb[40].mxu1  ;;  %3908 = vmatpush1.bf16.msra.mxu1 %v8778_v32  ;;  %8262 = vmatpush3.bf16.msra.mxu0 %v8781_v30  ;;  %v8816_v30 = vld [vmem:[%s11079_s12 + $0x30] ss:$12 sps:$4 sm:$0xff]   ;;  %v8823_v32 = vld [vmem:[%s11079_s12 + $0x4c] ss:$12 sps:$4 sm:$0xff]  }
 0x6ca   : > { %v3113_v38 = vpop.f32.mrb[41].mxu1  ;;  %3909 = vmatprep.subr.bf16.mxu1 %v8784_v34  ;;  %8263 = vmatprep.subr.bf16.mxu0 %v8785_v35  ;;  %v8824_v34 = vld [vmem:[%s11079_s12 + $0x110] ss:$12 sps:$4 sm:$0xff]  }
 0x6cb   : > { %3892 = vmatprep.mubr.f32.mxu1 %v3113_v38  ;;  %4004 = vmatprep.mubr.f32.mxu0 %v3113_v38  ;;  %v8828_v38 = vld [vmem:[%s11079_s12 + $0x64] ss:$12 sps:$4 sm:$0xff]  }
 0x6cc   : > { %3893 = vmatmul.mubr.f32.gmra.mrb[68].mxu1 %v3111_v36  ;;  %4005 = vmatmul.mubr.f32.gmra.mrb[44].mxu0 %v3111_v36  ;;  %v8821_v36 = vld [vmem:[%s11079_s12 + $0x48] ss:$12 sps:$4 sm:$0xff]  }
 0x6cd   : > { %v3117_v41 = vpop.f32.mrb[42].mxu1  ;;  %3910 = vmatpush1.bf16.msra.mxu1 %v8782_v37  ;;  %8264 = vmatpush3.bf16.msra.mxu0 %v8785_v35  ;;  %v8825_v37 = vld [vmem:[%s11079_s12 + $0x50] ss:$12 sps:$4 sm:$0xff]  }
 0x6ce   : > { %v3119_v43 = vpop.f32.mrb[43].mxu1  ;;  %3911 = vmatprep.subr.bf16.mxu1 %v8788_v39  ;;  %8265 = vmatprep.subr.bf16.mxu0 %v8789_v40 }
 0x6cf   : > { %3898 = vmatprep.mubr.f32.mxu1 %v3119_v43  ;;  %4009 = vmatprep.mubr.f32.mxu0 %v3119_v43  ;;  %v8830_v43 = vld [vmem:[%s11079_s12 + $0x68] ss:$12 sps:$4 sm:$0xff]  }
 0x6d0   : > { %3899 = vmatmul.mubr.f32.gmra.mrb[70].mxu1 %v3117_v41  ;;  %4010 = vmatmul.mubr.f32.gmra.mrb[46].mxu0 %v3117_v41 }
 0x6d1   : > { %v10145_v45 = vpop.f32.mrb[44].mxu1  ;;  %3912 = vmatpush1.bf16.msra.mxu1 %v8786_v42  ;;  %8266 = vmatpush3.bf16.msra.mxu0 %v8789_v40  ;;  %v8829_v40 = vld [vmem:[%s11079_s12 + $0x128] ss:$12 sps:$4 sm:$0xff]   ;;  %v8826_v42 = vld [vmem:[%s11079_s12 + $0x60] ss:$12 sps:$4 sm:$0xff]  }
 0x6d2   : > { %v10150_v48 = vpop.f32.mrb[45].mxu1  ;;  %3913 = vmatprep.subr.bf16.mxu1 %v8792_v44  ;;  %8267 = vmatprep.subr.bf16.mxu0 %v8793_v12  ;;  %v8833_v44 = vld [vmem:[%s11079_s12 + $0x7c] ss:$12 sps:$4 sm:$0xff]  }
 0x6d3   : > { %3937 = vmatprep.mubr.f32.mxu1 %v9090_v61 }
 0x6d5   : > { %v10159_v47 = vpop.f32.mrb[46].mxu1  ;;  %3914 = vmatpush1.bf16.msra.mxu1 %v8790_v13  ;;  %8268 = vmatpush3.bf16.msra.mxu0 %v8793_v12  ;;  %v8834_v12 = vld [vmem:[%s11079_s12 + $0x140] ss:$12 sps:$4 sm:$0xff]  }
 0x6d6   : > { %v10164_v53 = vpop.f32.mrb[47].mxu1  ;;  %3915 = vmatprep.subr.bf16.mxu1 %v8796_v50  ;;  %8269 = vmatprep.subr.bf16.mxu0 %v8797_v51  ;;  %v8835_v13 = vld [vmem:[%s11079_s12 + $0x80] ss:$12 sps:$4 sm:$0xff]  }
 0x6d7   : > { %v8838_v50 = vld [vmem:[%s11079_s12 + $0x94] ss:$12 sps:$4 sm:$0xff]  }
 0x6d9   : > { %v10172_v57 = vpop.f32.mrb[48].mxu1  ;;  %3916 = vmatpush1.bf16.msra.mxu1 %v8794_v52  ;;  %8270 = vmatpush3.bf16.msra.mxu0 %v8797_v51  ;;  %v8839_v51 = vld [vmem:[%s11079_s12 + $0x158] ss:$12 sps:$4 sm:$0xff]   ;;  %v8836_v52 = vld [vmem:[%s11079_s12 + $0x90] ss:$12 sps:$4 sm:$0xff]  }
 0x6da   : > { %v10177_v16 = vpop.f32.mrb[49].mxu1  ;;  %3917 = vmatprep.subr.bf16.mxu1 %v8800_v55  ;;  %8271 = vmatprep.subr.bf16.mxu0 %v8801_v14  ;;  %v8840_v55 = vld [vmem:[%s11079_s12 + $0x98] ss:$12 sps:$4 sm:$0xff]  }
 0x6dd   : > { %v10185_v60 = vpop.f32.mrb[50].mxu1  ;;  %3918 = vmatpush1.bf16.msra.mxu1 %v8798_v59  ;;  %8272 = vmatpush3.bf16.msra.mxu0 %v8801_v14  ;;  %v8843_v14 = vld [vmem:[%s11079_s12 + $0xac] ss:$12 sps:$4 sm:$0xff]   ;;  %v8844_v59 = vld [vmem:[%s11079_s12 + $0x170] ss:$12 sps:$4 sm:$0xff]  }
 0x6de   : > { %v10190_v62 = vpop.f32.mrb[51].mxu1  ;;  %3919 = vmatprep.subr.bf16.mxu1 %v8804_v17  ;;  %8273 = vmatprep.subr.bf16.mxu0 %v8805_v20  ;;  %v8841_v17 = vld [vmem:[%s11079_s12 + $0xa8] ss:$12 sps:$4 sm:$0xff]  }
 0x6e1   : > { %v10198_v1 = vpop.f32.mrb[52].mxu1  ;;  %3920 = vmatpush1.bf16.msra.mxu1 %v8802_v22  ;;  %8274 = vmatpush3.bf16.msra.mxu0 %v8805_v20  ;;  %v8845_v20 = vld [vmem:[%s11079_s12 + $0xb0] ss:$12 sps:$4 sm:$0xff]  }
 0x6e2   : > { %v10200_v2 = vpop.f32.mrb[53].mxu1  ;;  %4452 = vmatprep.subr.bf16.mxu1 %v8808_v63  ;;  %7781 = vmatprep.subr.bf16.mxu0 %v8809_v0  ;;  %v8848_v22 = vld [vmem:[%s11079_s12 + $0xc4] ss:$12 sps:$4 sm:$0xff]   ;;  %v8849_v63 = vld [vmem:[%s11079_s12 + $0x188] ss:$12 sps:$4 sm:$0xff]  }
 0x6e3   : > { %v8846_v0 = vld [vmem:[%s11079_s12 + $0xc0] ss:$12 sps:$4 sm:$0xff]  }
 0x6e5   : > { %v10202_v3 = vpop.f32.mrb[54].mxu1 }
 0x6e6   : > { %v10204_v4 = vpop.f32.mrb[55].mxu1 }
 0x6e9   : > { %v8249_v6 = vpop.f32.mrb[56].mxu1 }
 0x6ea   : > { %v3232_v8 = vpop.f32.mrb[57].mxu1 }
 0x6eb   : > { %3938 = vmatmul.mubr.f32.vlgmr.msra.gmra.mrb[64].mxu1 %v3232_v8  ;;  %8275 = vmatprep.mubr.f32.mxu0 %v3232_v8  ;;  %v8856_v8 = vld [vmem:[%s11079_s12 + $0xf4] ss:$12 sps:$4 sm:$0xff]  }
 0x6ec   : > { %4453 = vmatpush1.bf16.msra.mxu1 %v8806_v5  ;;  %8276 = vmatmul.mubr.f32.vlgmr.msra.gmra.mrb[48].mxu0 %v8249_v6  ;;  %v8852_v5 = vld [vmem:[%s11079_s12 + $0xdc] ss:$12 sps:$4 sm:$0xff]  }
 0x6ed   : > { %7782 = vmatpush3.bf16.msra.mxu0 %v8810_v7  ;;  %v8252_v24 = vpop.f32.mrb[58].mxu1  ;;  %3943 = vmatprep.mubr.f32.mxu1 %v9090_v61  ;;  %v8850_v7 = vld [vmem:[%s11079_s12 + $0xd8] ss:$12 sps:$4 sm:$0xff]  }
 0x6ee   : > { %v3242_v56 = vpop.f32.mrb[59].mxu1  ;;  %4454 = vmatprep.subr.bf16.mxu1 %v8813_v9  ;;  %7783 = vmatprep.subr.bf16.mxu0 %v8814_v10  ;;  %v8857_v9 = vld [vmem:[%s11079_s12 + $0x1b8] ss:$12 sps:$4 sm:$0xff]   ;;  %v8854_v10 = vld [vmem:[%s11079_s12 + $0xf0] ss:$12 sps:$4 sm:$0xff]  }
 0x6ef   : > { %3944 = vmatmul.mubr.f32.gmra.mrb[66].mxu1 %v8249_v6  ;;  %8278 = vmatprep.mubr.f32.mxu0 %v3242_v56  ;;  %v8853_v6 = vld [vmem:[%s11079_s12 + $0x1a0] ss:$12 sps:$4 sm:$0xff]  }
 0x6f0   : > { %4455 = vmatpush1.bf16.msra.mxu1 %v8811_v23  ;;  %8279 = vmatmul.mubr.f32.gmra.mrb[50].mxu0 %v8252_v24  ;;  %v8860_v23 = vld [vmem:[%s11079_s12 + $0x10c] ss:$12 sps:$4 sm:$0xff]  }
 0x6f1   : > { %7784 = vmatpush3.bf16.msra.mxu0 %v8815_v54  ;;  %4598 = vmatprep.mubr.f32.mxu0 %v10095_v26  ;;  %v10241_v33 = vpop.f32.mrb[60].mxu1  ;;  %v8858_v54 = vld [vmem:[%s11079_s12 + $0x108] ss:$12 sps:$4 sm:$0xff]  }
 0x6f2   : > { %3949 = vmatprep.mubr.f32.mxu1 %v9090_v61  ;;  %4456 = vmatprep.subr.bf16.mxu1 %v8818_v15  ;;  %v10247_v35 = vpop.f32.mrb[61].mxu1  ;;  %v8865_v15 = vld [vmem:[%s11079_s12 + $0x1e8] ss:$12 sps:$4 sm:$0xff]  }
 0x6f3   : > { %3950 = vmatmul.mubr.f32.gmra.mrb[68].mxu1 %v3242_v56  ;;  %7785 = vmatprep.subr.bf16.mxu0 %v8819_v58  ;;  %v8864_v56 = vld [vmem:[%s11079_s12 + $0x124] ss:$12 sps:$4 sm:$0xff]   ;;  %v8862_v58 = vld [vmem:[%s11079_s12 + $0x120] ss:$12 sps:$4 sm:$0xff]  }
 0x6f4   : > { %4457 = vmatpush1.bf16.msra.mxu1 %v8816_v30  ;;  %3955 = vmatprep.mubr.f32.mxu1 %v9090_v61  ;;  %v8868_v30 = vld [vmem:[%s11079_s12 + $0x13c] ss:$12 sps:$4 sm:$0xff]  }
 0x6f5   : > { %7786 = vmatpush3.bf16.msra.mxu0 %v8820_v31  ;;  %4458 = vmatprep.subr.bf16.mxu1 %v8823_v32  ;;  %v10259_v39 = vpop.f32.mrb[62].mxu1  ;;  %v8869_v31 = vld [vmem:[%s11079_s12 + $0x200] ss:$12 sps:$4 sm:$0xff]   ;;  %v8866_v32 = vld [vmem:[%s11079_s12 + $0x138] ss:$12 sps:$4 sm:$0xff]  }
 0x6f6   : > { %7787 = vmatprep.subr.bf16.mxu0 %v8824_v34  ;;  %v10264_v41 = vpop.f32.mrb[63].mxu1  ;;  %v8872_v34 = vld [vmem:[%s11079_s12 + $0x154] ss:$12 sps:$4 sm:$0xff]  }
 0x6f7   : > { %3956 = vmatmul.mubr.f32.gmra.mrb[70].mxu1 %v8252_v24  ;;  %v8861_v24 = vld [vmem:[%s11079_s12 + $0x1d0] ss:$12 sps:$4 sm:$0xff]  }
 0x6f8   : > { %4459 = vmatpush1.bf16.msra.mxu1 %v8821_v36  ;;  %4484 = vmatprep.mubr.f32.mxu1 %v10095_v26  ;;  %v8831_v26 = vld [vmem:[%s11079_s12 + $0x78] ss:$12 sps:$4 sm:$0xff]  }
 0x6f9   : > { %7788 = vmatpush3.bf16.msra.mxu0 %v8825_v37  ;;  %4460 = vmatprep.subr.bf16.mxu1 %v8828_v38  ;;  %v8873_v36 = vld [vmem:[%s11079_s12 + $0x218] ss:$12 sps:$4 sm:$0xff]   ;;  %v8870_v37 = vld [vmem:[%s11079_s12 + $0x150] ss:$12 sps:$4 sm:$0xff]  }
 0x6fa   : > { %7789 = vmatprep.subr.bf16.mxu0 %v8829_v40  ;;  %v8876_v38 = vld [vmem:[%s11079_s12 + $0x16c] ss:$12 sps:$4 sm:$0xff]   ;;  %v8877_v40 = vld [vmem:[%s11079_s12 + $0x230] ss:$12 sps:$4 sm:$0xff]  }
 0x6fc   : > { %4461 = vmatpush1.bf16.msra.mxu1 %v8826_v42  ;;  %v8874_v42 = vld [vmem:[%s11079_s12 + $0x168] ss:$12 sps:$4 sm:$0xff]  }
 0x6fd   : > { %7790 = vmatpush3.bf16.msra.mxu0 %v8830_v43  ;;  %4462 = vmatprep.subr.bf16.mxu1 %v8833_v44  ;;  %v8880_v43 = vld [vmem:[%s11079_s12 + $0x184] ss:$12 sps:$4 sm:$0xff]   ;;  %v8881_v44 = vld [vmem:[%s11079_s12 + $0x548] ss:$12 sps:$4 sm:$0xff]  }
 0x6fe   : > { %7791 = vmatprep.subr.bf16.mxu0 %v8834_v12  ;;  %v8878_v12 = vld [vmem:[%s11079_s12 + $0x180] ss:$12 sps:$4 sm:$0xff]  }
 0x700   : > { %4463 = vmatpush1.bf16.msra.mxu1 %v8831_v26  ;;  %v8885_v26 = vld [vmem:[%s11079_s12 + $0x19c] ss:$12 sps:$4 sm:$0xff]  }
 0x701   : > { %7792 = vmatpush3.bf16.msra.mxu0 %v8835_v13  ;;  %4464 = vmatprep.subr.bf16.mxu1 %v8838_v50  ;;  %v8882_v13 = vld [vmem:[%s11079_s12 + $0x488] ss:$12 sps:$4 sm:$0xff]   ;;  %v8886_v50 = vld [vmem:[%s11079_s12 + $0x560] ss:$12 sps:$4 sm:$0xff]  }
 0x702   : > { %7793 = vmatprep.subr.bf16.mxu0 %v8839_v51  ;;  %v8883_v51 = vld [vmem:[%s11079_s12 + $0x198] ss:$12 sps:$4 sm:$0xff]  }
 0x704   : > { %4465 = vmatpush1.bf16.msra.mxu1 %v8836_v52  ;;  %v8890_v52 = vld [vmem:[%s11079_s12 + $0x1b4] ss:$12 sps:$4 sm:$0xff]  }
 0x705   : > { %7794 = vmatpush3.bf16.msra.mxu0 %v8840_v55  ;;  %4466 = vmatprep.subr.bf16.mxu1 %v8843_v14  ;;  %v8888_v55 = vld [vmem:[%s11079_s12 + $0x1b0] ss:$12 sps:$4 sm:$0xff]   ;;  %v8895_v14 = vld [vmem:[%s11079_s12 + $0x1cc] ss:$12 sps:$4 sm:$0xff]  }
 0x706   : > { %7795 = vmatprep.subr.bf16.mxu0 %v8844_v59  ;;  %v8893_v59 = vld [vmem:[%s11079_s12 + $0x1c8] ss:$12 sps:$4 sm:$0xff]  }
 0x708   : > { %4467 = vmatpush1.bf16.msra.mxu1 %v8841_v17  ;;  %v8900_v17 = vld [vmem:[%s11079_s12 + $0x1e4] ss:$12 sps:$4 sm:$0xff]  }
 0x709   : > { %7796 = vmatpush3.bf16.msra.mxu0 %v8845_v20  ;;  %4468 = vmatprep.subr.bf16.mxu1 %v8848_v22  ;;  %v8898_v20 = vld [vmem:[%s11079_s12 + $0x1e0] ss:$12 sps:$4 sm:$0xff]   ;;  %v8905_v22 = vld [vmem:[%s11079_s12 + $0x1fc] ss:$12 sps:$4 sm:$0xff]  }
 0x70a   : > { %8281 = vmatprep.subr.bf16.mxu0 %v8849_v63 }
 0x70c   : > { %4469 = vmatpush1.bf16.msra.mxu1 %v8846_v0  ;;  %4599 = vmatmul.mubr.f32.vlgmr.msra.gmra.mrb[52].mxu0 %v10093_v25  ;;  %v8903_v0 = vld [vmem:[%s11079_s12 + $0x1f8] ss:$12 sps:$4 sm:$0xff]  }
 0x70d   : > { %4603 = vmatprep.mubr.f32.mxu0 %v10099_v27  ;;  %8282 = vmatpush3.bf16.msra.mxu0 %v8849_v63  ;;  %v8906_v63 = vld [vmem:[%s11079_s12 + $0x5c0] ss:$12 sps:$4 sm:$0xff]  }
 0x70e   : > { %4470 = vmatprep.subr.bf16.mxu1 %v8852_v5  ;;  %8283 = vmatprep.subr.bf16.mxu0 %v8853_v6  ;;  %v8910_v5 = vld [vmem:[%s11079_s12 + $0x214] ss:$12 sps:$4 sm:$0xff]  }
 0x710   : > { %4471 = vmatpush1.bf16.msra.mxu1 %v8850_v7  ;;  %4604 = vmatmul.mubr.f32.gmra.mrb[54].mxu0 %v10097_v11  ;;  %v8911_v7 = vld [vmem:[%s11079_s12 + $0x5d8] ss:$12 sps:$4 sm:$0xff]  }
 0x711   : > { %4608 = vmatprep.mubr.f32.mxu0 %v10103_v29  ;;  %8284 = vmatpush3.bf16.msra.mxu0 %v8853_v6  ;;  %v8907_v6 = vld [vmem:[%s11079_s12 + $0x500] ss:$12 sps:$4 sm:$0xff]  }
 0x712   : > { %4472 = vmatprep.subr.bf16.mxu1 %v8856_v8  ;;  %8285 = vmatprep.subr.bf16.mxu0 %v8857_v9  ;;  %v8908_v8 = vld [vmem:[%s11079_s12 + $0x210] ss:$12 sps:$4 sm:$0xff]  }
 0x714   : > { %4473 = vmatpush1.bf16.msra.mxu1 %v8854_v10  ;;  %4609 = vmatmul.mubr.f32.gmra.mrb[56].mxu0 %v10101_v28  ;;  %v8912_v10 = vld [vmem:[%s11079_s12 + $0x518] ss:$12 sps:$4 sm:$0xff]  }
 0x715   : > { %4613 = vmatprep.mubr.f32.mxu0 %v10107_v49  ;;  %8286 = vmatpush3.bf16.msra.mxu0 %v8857_v9  ;;  %v8915_v9 = vld [vmem:[%s11079_s12 + $0x22c] ss:$12 sps:$4 sm:$0xff]  }
 0x716   : > { %4474 = vmatprep.subr.bf16.mxu1 %v8860_v23  ;;  %8287 = vmatprep.subr.bf16.mxu0 %v8861_v24  ;;  %v8916_v23 = vld [vmem:[%s11079_s12 + $0x5f0] ss:$12 sps:$4 sm:$0xff]  }
 0x718   : > { %4475 = vmatpush1.bf16.msra.mxu1 %v8858_v54  ;;  %4614 = vmatmul.mubr.f32.gmra.mrb[58].mxu0 %v10105_v46  ;;  %v8920_v54 = vld [vmem:[%s11079_s12 + $0x484] ss:$12 sps:$4 sm:$0xff]  }
 0x719   : > { %8288 = vmatpush3.bf16.msra.mxu0 %v8861_v24  ;;  %8297 = vmatprep.mubr.f32.mxu0 %v10200_v2  ;;  %v8913_v24 = vld [vmem:[%s11079_s12 + $0x228] ss:$12 sps:$4 sm:$0xff]  }
 0x71a   : > { %4476 = vmatprep.subr.bf16.mxu1 %v8864_v56  ;;  %8289 = vmatprep.subr.bf16.mxu0 %v8865_v15  ;;  %v8917_v56 = vld [vmem:[%s11079_s12 + $0x530] ss:$12 sps:$4 sm:$0xff]  }
 0x71c   : > { %4477 = vmatpush1.bf16.msra.mxu1 %v8862_v58  ;;  %v8918_v58 = vld [vmem:[%s11079_s12 + $0x480] ss:$12 sps:$4 sm:$0xff]  }
 0x71d   : > { %8290 = vmatpush3.bf16.msra.mxu0 %v8865_v15  ;;  %4478 = vmatprep.subr.bf16.mxu1 %v8868_v30  ;;  %v8921_v15 = vld [vmem:[%s11079_s12 + $0x608] ss:$12 sps:$4 sm:$0xff]  }
 0x71e   : > { %8291 = vmatprep.subr.bf16.mxu0 %v8869_v31  ;;  %v8924_v30 = vld [vmem:[%s11079_s12 + $0x49c] ss:$12 sps:$4 sm:$0xff]  }
 0x720   : > { %4479 = vmatpush1.bf16.msra.mxu1 %v8866_v32  ;;  %v8922_v32 = vld [vmem:[%s11079_s12 + $0x498] ss:$12 sps:$4 sm:$0xff]  }
 0x721   : > { %8292 = vmatpush3.bf16.msra.mxu0 %v8869_v31  ;;  %4480 = vmatprep.subr.bf16.mxu1 %v8872_v34  ;;  %v8925_v31 = vld [vmem:[%s11079_s12 + $0x620] ss:$12 sps:$4 sm:$0xff]  }
 0x722   : > { %8293 = vmatprep.subr.bf16.mxu0 %v8873_v36  ;;  %v8928_v34 = vld [vmem:[%s11079_s12 + $0x4b4] ss:$12 sps:$4 sm:$0xff]  }
 0x724   : > { %4481 = vmatpush1.bf16.msra.mxu1 %v8870_v37  ;;  %v8932_v37 = vld [vmem:[%s11079_s12 + $0x4cc] ss:$12 sps:$4 sm:$0xff]  }
 0x725   : > { %8294 = vmatpush3.bf16.msra.mxu0 %v8873_v36  ;;  %4482 = vmatprep.subr.bf16.mxu1 %v8876_v38  ;;  %v8926_v36 = vld [vmem:[%s11079_s12 + $0x4b0] ss:$12 sps:$4 sm:$0xff]   ;;  %v8930_v38 = vld [vmem:[%s11079_s12 + $0x4c8] ss:$12 sps:$4 sm:$0xff]  }
 0x726   : > { %8295 = vmatprep.subr.bf16.mxu0 %v8877_v40 }
 0x728   : > { %4483 = vmatpush1.bf16.msra.mxu1 %v8874_v42  ;;  %v8934_v42 = vld [vmem:[%s11079_s12 + $0x4e0] ss:$12 sps:$4 sm:$0xff]  }
 0x729   : > { %8296 = vmatpush3.bf16.msra.mxu0 %v8877_v40  ;;  %4509 = vmatprep.subr.bf16.mxu1 %v8880_v43  ;;  %v8936_v40 = vld [vmem:[%s11079_s12 + $0x4e4] ss:$12 sps:$4 sm:$0xff]   ;;  %v8940_v43 = vld [vmem:[%s11079_s12 + $0x4fc] ss:$12 sps:$4 sm:$0xff]  }
 0x72a   : > { %7821 = vmatprep.subr.bf16.mxu0 %v8881_v44  ;;  %v8944_v44 = vld [vmem:[%s11079_s12 + $0x514] ss:$12 sps:$4 sm:$0xff]  }
 0x72b   : > { %4485 = vmatmul.mubr.f32.vlgmr.msra.gmra.mrb[64].mxu1 %v10093_v25  ;;  %v8887_v25 = vld [vmem:[%s11079_s12 + $0x4a0] ss:$12 sps:$4 sm:$0xff]  }
 0x72c   : > { %4490 = vmatprep.mubr.f32.mxu1 %v10099_v27  ;;  %4510 = vmatpush1.bf16.msra.mxu1 %v8878_v12  ;;  %v8891_v27 = vld [vmem:[%s11079_s12 + $0x578] ss:$12 sps:$4 sm:$0xff]  }
 0x72d   : > { %8298 = vmatmul.mubr.f32.vlgmr.msra.gmra.mrb[48].mxu0 %v10198_v1  ;;  %4511 = vmatprep.subr.bf16.mxu1 %v8885_v26  ;;  %v8945_v12 = vld [vmem:[%s11079_s12 + $0x698] ss:$12 sps:$4 sm:$0xff]   ;;  %v8942_v26 = vld [vmem:[%s11079_s12 + $0x510] ss:$12 sps:$4 sm:$0xff]  }
 0x72e   : > { %8300 = vmatprep.mubr.f32.mxu0 %v10204_v4  ;;  %7822 = vmatpush3.bf16.msra.mxu0 %v8882_v13  ;;  %v8948_v13 = vld [vmem:[%s11079_s12 + $0x52c] ss:$12 sps:$4 sm:$0xff]  }
 0x72f   : > { %4491 = vmatmul.mubr.f32.gmra.mrb[66].mxu1 %v10097_v11  ;;  %7823 = vmatprep.subr.bf16.mxu0 %v8886_v50  ;;  %v8892_v11 = vld [vmem:[%s11079_s12 + $0x4b8] ss:$12 sps:$4 sm:$0xff]   ;;  %v8949_v50 = vld [vmem:[%s11079_s12 + $0x6b0] ss:$12 sps:$4 sm:$0xff]  }
 0x730   : > { %4496 = vmatprep.mubr.f32.mxu1 %v10103_v29  ;;  %4512 = vmatpush1.bf16.msra.mxu1 %v8883_v51  ;;  %v8896_v29 = vld [vmem:[%s11079_s12 + $0x590] ss:$12 sps:$4 sm:$0xff]   ;;  %v8946_v51 = vld [vmem:[%s11079_s12 + $0x528] ss:$12 sps:$4 sm:$0xff]  }
 0x731   : > { %8301 = vmatmul.mubr.f32.gmra.mrb[50].mxu0 %v10202_v3  ;;  %4513 = vmatprep.subr.bf16.mxu1 %v8890_v52  ;;  %v8952_v52 = vld [vmem:[%s11079_s12 + $0x544] ss:$12 sps:$4 sm:$0xff]  }
 0x732   : > { %7824 = vmatpush3.bf16.msra.mxu0 %v8887_v25  ;;  %5299 = vmatprep.mubr.f32.mxu0 %v10150_v48  ;;  %v8950_v25 = vld [vmem:[%s11079_s12 + $0x540] ss:$12 sps:$4 sm:$0xff]  }
 0x733   : > { %4497 = vmatmul.mubr.f32.gmra.mrb[68].mxu1 %v10101_v28  ;;  %7825 = vmatprep.subr.bf16.mxu0 %v8891_v27  ;;  %v8897_v28 = vld [vmem:[%s11079_s12 + $0x4d0] ss:$12 sps:$4 sm:$0xff]  }
 0x734   : > { %4502 = vmatprep.mubr.f32.mxu1 %v10107_v49  ;;  %4514 = vmatpush1.bf16.msra.mxu1 %v8888_v55  ;;  %v8901_v49 = vld [vmem:[%s11079_s12 + $0x5a8] ss:$12 sps:$4 sm:$0xff]   ;;  %v8953_v55 = vld [vmem:[%s11079_s12 + $0x558] ss:$12 sps:$4 sm:$0xff]  }
 0x735   : > { %4515 = vmatprep.subr.bf16.mxu1 %v8895_v14  ;;  %v8955_v27 = vld [vmem:[%s11079_s12 + $0x55c] ss:$12 sps:$4 sm:$0xff]   ;;  %v8958_v14 = vld [vmem:[%s11079_s12 + $0x574] ss:$12 sps:$4 sm:$0xff]  }
 0x736   : > { %7826 = vmatpush3.bf16.msra.mxu0 %v8892_v11  ;;  %v8956_v11 = vld [vmem:[%s11079_s12 + $0x570] ss:$12 sps:$4 sm:$0xff]  }
 0x737   : > { %4503 = vmatmul.mubr.f32.gmra.mrb[70].mxu1 %v10105_v46  ;;  %7827 = vmatprep.subr.bf16.mxu0 %v8896_v29  ;;  %v8902_v46 = vld [vmem:[%s11079_s12 + $0x4e8] ss:$12 sps:$4 sm:$0xff]   ;;  %v8961_v29 = vld [vmem:[%s11079_s12 + $0x58c] ss:$12 sps:$4 sm:$0xff]  }
 0x738   : > { %4516 = vmatpush1.bf16.msra.mxu1 %v8893_v59  ;;  %4541 = vmatprep.mubr.f32.mxu1 %v9090_v61  ;;  %v8959_v59 = vld [vmem:[%s11079_s12 + $0x588] ss:$12 sps:$4 sm:$0xff]  }
 0x739   : > { %4517 = vmatprep.subr.bf16.mxu1 %v8900_v17  ;;  %v8964_v17 = vld [vmem:[%s11079_s12 + $0x5a4] ss:$12 sps:$4 sm:$0xff]  }
 0x73a   : > { %7828 = vmatpush3.bf16.msra.mxu0 %v8897_v28  ;;  %v8962_v28 = vld [vmem:[%s11079_s12 + $0x5a0] ss:$12 sps:$4 sm:$0xff]  }
 0x73b   : > { %7829 = vmatprep.subr.bf16.mxu0 %v8901_v49  ;;  %v8967_v49 = vld [vmem:[%s11079_s12 + $0x5bc] ss:$12 sps:$4 sm:$0xff]  }
 0x73c   : > { %4518 = vmatpush1.bf16.msra.mxu1 %v8898_v20  ;;  %v8965_v20 = vld [vmem:[%s11079_s12 + $0x5b8] ss:$12 sps:$4 sm:$0xff]  }
 0x73d   : > { %4519 = vmatprep.subr.bf16.mxu1 %v8905_v22  ;;  %v8970_v22 = vld [vmem:[%s11079_s12 + $0x5d4] ss:$12 sps:$4 sm:$0xff]  }
 0x73e   : > { %7830 = vmatpush3.bf16.msra.mxu0 %v8902_v46  ;;  %v8968_v46 = vld [vmem:[%s11079_s12 + $0x5d0] ss:$12 sps:$4 sm:$0xff]  }
 0x73f   : > { %7831 = vmatprep.subr.bf16.mxu0 %v8906_v63  ;;  %v8973_v63 = vld [vmem:[%s11079_s12 + $0x5ec] ss:$12 sps:$4 sm:$0xff]  }
 0x740   : > { %4520 = vmatpush1.bf16.msra.mxu1 %v8903_v0  ;;  %v8971_v0 = vld [vmem:[%s11079_s12 + $0x5e8] ss:$12 sps:$4 sm:$0xff]  }
 0x741   : > { %4521 = vmatprep.subr.bf16.mxu1 %v8910_v5  ;;  %v8976_v5 = vld [vmem:[%s11079_s12 + $0x604] ss:$12 sps:$4 sm:$0xff]  }
 0x742   : > { %7832 = vmatpush3.bf16.msra.mxu0 %v8907_v6  ;;  %v8974_v6 = vld [vmem:[%s11079_s12 + $0x600] ss:$12 sps:$4 sm:$0xff]  }
 0x743   : > { %7833 = vmatprep.subr.bf16.mxu0 %v8911_v7  ;;  %v8979_v7 = vld [vmem:[%s11079_s12 + $0x61c] ss:$12 sps:$4 sm:$0xff]  }
 0x744   : > { %4522 = vmatpush1.bf16.msra.mxu1 %v8908_v8  ;;  %v8977_v8 = vld [vmem:[%s11079_s12 + $0x618] ss:$12 sps:$4 sm:$0xff]  }
 0x745   : > { %4523 = vmatprep.subr.bf16.mxu1 %v8915_v9  ;;  %v8982_v9 = vld [vmem:[%s11079_s12 + $0x634] ss:$12 sps:$4 sm:$0xff]  }
 0x746   : > { %7834 = vmatpush3.bf16.msra.mxu0 %v8912_v10 }
 0x747   : > { %7835 = vmatprep.subr.bf16.mxu0 %v8916_v23 }
 0x748   : > { %4524 = vmatpush1.bf16.msra.mxu1 %v8913_v24  ;;  %v8991_v24 = vld [vmem:[%s11079_s12 + $0x67c] ss:$12 sps:$4 sm:$0xff]  }
 0x749   : > { %5153 = vmatprep.subr.bf16.mxu1 %v8920_v54 }
 0x74a   : > { %7836 = vmatpush3.bf16.msra.mxu0 %v8917_v56 }
 0x74b   : > { %4542 = vmatmul.mubr.f32.vlgmr.msra.gmra.mrb[64].mxu1 %v10200_v2  ;;  %8303 = vmatprep.subr.bf16.mxu0 %v8921_v15  ;;  %v8929_v2 = vld [vmem:[%s11079_s12 + $0x638] ss:$12 sps:$4 sm:$0xff]  }
 0x74c   : > { %5154 = vmatpush1.bf16.msra.mxu1 %v8918_v58  ;;  %4547 = vmatprep.mubr.f32.mxu1 %v9090_v61  ;;  %v8994_v58 = vld [vmem:[%s11079_s12 + $0x694] ss:$12 sps:$4 sm:$0xff]  }
 0x74d   : > { %5300 = vmatmul.mubr.f32.vlgmr.msra.gmra.mrb[60].mxu0 %v10145_v45  ;;  %5155 = vmatprep.subr.bf16.mxu1 %v8924_v30 }
 0x74e   : > { %5304 = vmatprep.mubr.f32.mxu0 %v10164_v53  ;;  %8304 = vmatpush3.bf16.msra.mxu0 %v8921_v15 }
 0x74f   : > { %4548 = vmatmul.mubr.f32.gmra.mrb[66].mxu1 %v10198_v1  ;;  %8305 = vmatprep.subr.bf16.mxu0 %v8925_v31  ;;  %v8933_v1 = vld [vmem:[%s11079_s12 + $0x650] ss:$12 sps:$4 sm:$0xff]  }
 0x750   : > { %5156 = vmatpush1.bf16.msra.mxu1 %v8922_v32  ;;  %4553 = vmatprep.mubr.f32.mxu1 %v9090_v61  ;;  %v8992_v32 = vld [vmem:[%s11079_s12 + $0x690] ss:$12 sps:$4 sm:$0xff]  }
 0x751   : > { %5305 = vmatmul.mubr.f32.gmra.mrb[62].mxu0 %v10159_v47  ;;  %5157 = vmatprep.subr.bf16.mxu1 %v8928_v34 }
 0x752   : > { %5309 = vmatprep.mubr.f32.mxu0 %v10177_v16  ;;  %8306 = vmatpush3.bf16.msra.mxu0 %v8925_v31 }
 0x753   : > { %4554 = vmatmul.mubr.f32.gmra.mrb[68].mxu1 %v10204_v4  ;;  %8307 = vmatprep.subr.bf16.mxu0 %v8929_v2  ;;  %v8937_v4 = vld [vmem:[%s11079_s12 + $0x668] ss:$12 sps:$4 sm:$0xff]  }
 0x754   : > { %5158 = vmatpush1.bf16.msra.mxu1 %v8926_v36  ;;  %4559 = vmatprep.mubr.f32.mxu1 %v9090_v61 }
 0x755   : > { %5310 = vmatmul.mubr.f32.gmra.mrb[64].mxu0 %v10172_v57  ;;  %5159 = vmatprep.subr.bf16.mxu1 %v8932_v37 }
 0x756   : > { %5314 = vmatprep.mubr.f32.mxu0 %v10190_v62  ;;  %8308 = vmatpush3.bf16.msra.mxu0 %v8929_v2  ;;  %v8997_v2 = vld [vmem:[%s11079_s12 + $0x6ac] ss:$12 sps:$4 sm:$0xff]  }
 0x757   : > { %4560 = vmatmul.mubr.f32.gmra.mrb[70].mxu1 %v10202_v3  ;;  %8309 = vmatprep.subr.bf16.mxu0 %v8933_v1  ;;  %v8941_v3 = vld [vmem:[%s11079_s12 + $0x680] ss:$12 sps:$4 sm:$0xff]  }
 0x758   : > { %5160 = vmatpush1.bf16.msra.mxu1 %v8930_v38  ;;  %5185 = vmatprep.mubr.f32.mxu1 %v10150_v48  ;;  %v8938_v48 = vld [vmem:[%s11079_s12 + $0x4f8] ss:$12 sps:$4 sm:$0xff]  }
 0x759   : > { %5315 = vmatmul.mubr.f32.gmra.mrb[66].mxu0 %v10185_v60  ;;  %5161 = vmatprep.subr.bf16.mxu1 %v8936_v40 }
 0x75a   : > { %8310 = vmatpush3.bf16.msra.mxu0 %v8933_v1  ;;  %8319 = vmatprep.mubr.f32.mxu0 %v10247_v35  ;;  %v8995_v1 = vld [vmem:[%s11079_s12 + $0x6a8] ss:$12 sps:$4 sm:$0xff]  }
 0x75b   : > { %8311 = vmatprep.subr.bf16.mxu0 %v8937_v4 }
 0x75c   : > { %5162 = vmatpush1.bf16.msra.mxu1 %v8934_v42 }
 0x75d   : > { %5163 = vmatprep.subr.bf16.mxu1 %v8940_v43 }
 0x75e   : > { %8312 = vmatpush3.bf16.msra.mxu0 %v8937_v4 }
 0x75f   : > { %8313 = vmatprep.subr.bf16.mxu0 %v8941_v3 }
 0x760   : > { %5164 = vmatpush1.bf16.msra.mxu1 %v8938_v48 }
 0x761   : > { %5165 = vmatprep.subr.bf16.mxu1 %v8944_v44 }
 0x762   : > { %8314 = vmatpush3.bf16.msra.mxu0 %v8941_v3 }
 0x763   : > { %8315 = vmatprep.subr.bf16.mxu0 %v8945_v12 }
 0x764   : > { %5166 = vmatpush1.bf16.msra.mxu1 %v8942_v26 }
 0x765   : > { %5167 = vmatprep.subr.bf16.mxu1 %v8948_v13 }
 0x766   : > { %8316 = vmatpush3.bf16.msra.mxu0 %v8945_v12 }
 0x767   : > { %8317 = vmatprep.subr.bf16.mxu0 %v8949_v50 }
 0x768   : > { %5168 = vmatpush1.bf16.msra.mxu1 %v8946_v51 }
 0x769   : > { %5169 = vmatprep.subr.bf16.mxu1 %v8952_v52 }
 0x76a   : > { %8318 = vmatpush3.bf16.msra.mxu0 %v8949_v50 }
 0x76c   : > { %5170 = vmatpush1.bf16.msra.mxu1 %v8950_v25 }
 0x76d   : > { %8320 = vmatmul.mubr.f32.vlgmr.msra.gmra.mrb[48].mxu0 %v10241_v33  ;;  %5171 = vmatprep.subr.bf16.mxu1 %v8955_v27 }
 0x76e   : > { %8322 = vmatprep.mubr.f32.mxu0 %v10264_v41 }
 0x770   : > { %5172 = vmatpush1.bf16.msra.mxu1 %v8953_v55 }
 0x771   : > { %8323 = vmatmul.mubr.f32.gmra.mrb[50].mxu0 %v10259_v39  ;;  %5173 = vmatprep.subr.bf16.mxu1 %v8958_v14 }
 0x772   : > { %5478 = vmatprep.mubr.f32.mxu0 %v9090_v61 }
 0x774   : > { %5174 = vmatpush1.bf16.msra.mxu1 %v8956_v11 }
 0x775   : > { %5175 = vmatprep.subr.bf16.mxu1 %v8961_v29 }
 0x778   : > { %5176 = vmatpush1.bf16.msra.mxu1 %v8959_v59 }
 0x779   : > { %5177 = vmatprep.subr.bf16.mxu1 %v8964_v17 }
 0x77c   : > { %5178 = vmatpush1.bf16.msra.mxu1 %v8962_v28 }
 0x77d   : > { %5179 = vmatprep.subr.bf16.mxu1 %v8967_v49 }
 0x780   : > { %5180 = vmatpush1.bf16.msra.mxu1 %v8965_v20 }
 0x781   : > { %5181 = vmatprep.subr.bf16.mxu1 %v8970_v22 }
 0x784   : > { %5182 = vmatpush1.bf16.msra.mxu1 %v8968_v46 }
 0x785   : > { %5183 = vmatprep.subr.bf16.mxu1 %v8973_v63 }
 0x788   : > { %5184 = vmatpush1.bf16.msra.mxu1 %v8971_v0 }
 0x789   : > { %5210 = vmatprep.subr.bf16.mxu1 %v8976_v5  ;;  %v5397_v5 = vsub.s32 2, %v9876_v18 }
 0x78b   : > { %5186 = vmatmul.mubr.f32.vlgmr.msra.gmra.mrb[64].mxu1 %v10145_v45  ;;  %v8980_v45 = vld [vmem:[%s11079_s12 + $0x630] ss:$12 sps:$4 sm:$0xff]  }
 0x78c   : > { %5191 = vmatprep.mubr.f32.mxu1 %v10164_v53  ;;  %5211 = vmatpush1.bf16.msra.mxu1 %v8974_v6  ;;  %v8985_v53 = vld [vmem:[%s11079_s12 + $0x64c] ss:$12 sps:$4 sm:$0xff]   ;;  %v5385_v6 = vld [vmem:[%s11086_s19] sm:$0x7] }
 0x78d   : > { %5212 = vmatprep.subr.bf16.mxu1 %v8979_v7  ;;  %v5398_v7 = vrot.slane %v5385_v6, %v5397_v5  ;;  %v9011_v5 = vld [vmem:[%s11080_s13 + $0xf0] sm:$0xff]  }
 0x78f   : > { %5192 = vmatmul.mubr.f32.gmra.mrb[66].mxu1 %v10159_v47  ;;  %v8983_v47 = vld [vmem:[%s11079_s12 + $0x648] ss:$12 sps:$4 sm:$0xff]  }
 0x790   : > { %5197 = vmatprep.mubr.f32.mxu1 %v10177_v16  ;;  %5213 = vmatpush1.bf16.msra.mxu1 %v8977_v8  ;;  %v8988_v16 = vld [vmem:[%s11079_s12 + $0x664] ss:$12 sps:$4 sm:$0xff]  }
 0x791   : > { %5214 = vmatprep.subr.bf16.mxu1 %v8982_v9 }
 0x793   : > { %5198 = vmatmul.mubr.f32.gmra.mrb[68].mxu1 %v10172_v57  ;;  %v8986_v57 = vld [vmem:[%s11079_s12 + $0x660] ss:$12 sps:$4 sm:$0xff]  }
 0x794   : > { %5203 = vmatprep.mubr.f32.mxu1 %v10190_v62  ;;  %5215 = vmatpush1.bf16.msra.mxu1 %v8980_v45 }
 0x795   : > { %5216 = vmatprep.subr.bf16.mxu1 %v8985_v53 }
 0x797   : > { %5204 = vmatmul.mubr.f32.gmra.mrb[70].mxu1 %v10185_v60  ;;  %v7757_v10 = vpop.f32.mrb[40].mxu0  ;;  %v8989_v60 = vld [vmem:[%s11079_s12 + $0x678] ss:$12 sps:$4 sm:$0xff]  }
 0x798   : > { %5217 = vmatpush1.bf16.msra.mxu1 %v8983_v47  ;;  %v7758_v23 = vpop.f32.mrb[41].mxu0  ;;  %5242 = vmatprep.mubr.f32.mxu1 %v9090_v61 }
 0x799   : > { %v7759_v62 = vadd.f32 %v7758_v23, %v7757_v10  ;;  %5218 = vmatprep.subr.bf16.mxu1 %v8988_v16 }
 0x79b   : > { %v7760_v54 = vpop.f32.mrb[42].mxu0 }
 0x79c   : > { %5219 = vmatpush1.bf16.msra.mxu1 %v8986_v57  ;;  %v7761_v56 = vpop.f32.mrb[43].mxu0 }
 0x79d   : > { %v7762_v15 = vadd.f32 %v7761_v56, %v7760_v54  ;;  %5220 = vmatprep.subr.bf16.mxu1 %v8991_v24 }
 0x79f   : > { %v7763_v30 = vpop.f32.mrb[44].mxu0 }
 0x7a0   : > { %5221 = vmatpush1.bf16.msra.mxu1 %v8989_v60  ;;  %v7764_v31 = vpop.f32.mrb[45].mxu0 }
 0x7a1   : > { %v7765_v34 = vadd.f32 %v7764_v31, %v7763_v30  ;;  %5222 = vmatprep.subr.bf16.mxu1 %v8994_v58  ;;  %v5390_v58 = vrot.slane %v5385_v6, %v2945_v19  ;;  %v5394_v31 = vrot.slane %v5385_v6, %v2949_v21  ;;  %v9012_v6 = vld [vmem:[%s11080_s13 + $0x138] sm:$0xff]  }
 0x7a3   : > { %v7766_v36 = vpop.f32.mrb[46].mxu0 }
 0x7a4   : > { %5223 = vmatpush1.bf16.msra.mxu1 %v8992_v32  ;;  %v7767_v37 = vpop.f32.mrb[47].mxu0 }
 0x7a5   : > { %v7768_v38 = vadd.f32 %v7767_v37, %v7766_v36  ;;  %5224 = vmatprep.subr.bf16.mxu1 %v8997_v2 }
 0x7a8   : > { %5225 = vmatpush1.bf16.msra.mxu1 %v8995_v1 }
 0x7ab   : > { %5243 = vmatmul.mubr.f32.vlgmr.msra.gmra.mrb[64].mxu1 %v10247_v35 }
 0x7ac   : > { %5248 = vmatprep.mubr.f32.mxu1 %v9090_v61 }
 0x7af   : > { %5249 = vmatmul.mubr.f32.gmra.mrb[66].mxu1 %v10241_v33 }
 0x7b0   : > { %5254 = vmatprep.mubr.f32.mxu1 %v9090_v61 }
 0x7b3   : > { %5255 = vmatmul.mubr.f32.gmra.mrb[68].mxu1 %v10264_v41 }
 0x7b4   : > { %5260 = vmatprep.mubr.f32.mxu1 %v9090_v61 }
 0x7b7   : > { %5261 = vmatmul.mubr.f32.gmra.mrb[70].mxu1 %v10259_v39 }
 0x7df   : > { %v7797_v40 = vpop.f32.mrb[52].mxu0 }
 0x7e0   : > { %v7798_v4 = vpop.f32.mrb[53].mxu0 }
 0x7e1   : > { %v7799_v42 = vadd.f32 %v7798_v4, %v7797_v40 }
 0x7e3   : > { %v8464_v43 = vadd.f32 %v7799_v42, %v7759_v62  ;;  %v7800_v3 = vpop.f32.mrb[54].mxu0 }
 0x7e4   : > { %v7801_v48 = vpop.f32.mrb[55].mxu0 }
 0x7e5   : > { %v7802_v44 = vadd.f32 %v7801_v48, %v7800_v3 }
 0x7e7   : > { %v8461_v35 = vadd.f32 %v7802_v44, %v7762_v15  ;;  %v7803_v12 = vpop.f32.mrb[56].mxu0 }
 0x7e8   : > { %v7804_v26 = vpop.f32.mrb[57].mxu0 }
 0x7e9   : > { %v7805_v13 = vadd.f32 %v7804_v26, %v7803_v12  ;;  %v9070_v12 = vld [vmem:[%s11073_s6] sm:$0xff] }
 0x7ea   : > { %v8998_v26 = vld [vmem:[%s11080_s13 + $0x100] sm:$0xff]  }
 0x7eb   : > { %v8470_v33 = vadd.f32 %v7805_v13, %v7765_v34  ;;  %v7806_v50 = vpop.f32.mrb[58].mxu0  ;;  %v9071_v13 = vld [vmem:[%s11073_s6 + $0x8] sm:$0xff] }
 0x7ec   : > { %v7807_v51 = vpop.f32.mrb[59].mxu0 }
 0x7ed   : > { %v7808_v52 = vadd.f32 %v7807_v51, %v7806_v50  ;;  %v9073_v50 = vld [vmem:[%s11073_s6 + $0x18] sm:$0xff]  ;;  %v9074_v51 = vld [vmem:[%s11073_s6 + $0x20] sm:$0xff] }
 0x7ef   : > { %v8467_v41 = vadd.f32 %v7808_v52, %v7768_v38  ;;  %v9075_v52 = vld [vmem:[%s11073_s6 + $0x28] sm:$0xff] }
 0x820   : > { %v7837_v25 = vpop.f32.mrb[60].mxu0 }
 0x821   : > { %v7838_v27 = vpop.f32.mrb[61].mxu0 }
 0x822   : > { %v7839_v55 = vadd.f32 %v7838_v27, %v7837_v25  ;;  %v9077_v25 = vld [vmem:[%s11073_s6 + $0x38] sm:$0xff]  ;;  %v9078_v27 = vld [vmem:[%s11073_s6 + $0x40] sm:$0xff] }
 0x824   : > { %v7840_v39 = vpop.f32.mrb[62].mxu0  ;;  %v8465_v14 = vadd.f32 %v8464_v43, %v7839_v55  ;;  %v9079_v55 = vld [vmem:[%s11073_s6 + $0x48] sm:$0xff] }
 0x825   : > { %v7841_v11 = vpop.f32.mrb[63].mxu0 }
 0x826   : > { %v7842_v29 = vadd.f32 %v7841_v11, %v7840_v39  ;;  %v9080_v39 = vld [vmem:[%s11073_s6 + $0x50] sm:$0xff]  ;;  %v8999_v11 = vld [vmem:[%s11080_s13 + $0xc0] sm:$0xff]  }
 0x828   : > { %v7843_v59 = vpop.f32.mrb[64].mxu0  ;;  %v8462_v17 = vadd.f32 %v8461_v35, %v7842_v29  ;;  %v9000_v29 = vld [vmem:[%s11080_s13 + $0x108] sm:$0xff]  }
 0x829   : > { %v7844_v28 = vpop.f32.mrb[65].mxu0 }
 0x82a   : > { %v7845_v49 = vadd.f32 %v7844_v28, %v7843_v59  ;;  %v9002_v59 = vld [vmem:[%s11080_s13 + $0x110] sm:$0xff]   ;;  %v9004_v28 = vld [vmem:[%s11080_s13 + $0x118] sm:$0xff]  }
 0x82c   : > { %v7846_v20 = vpop.f32.mrb[66].mxu0  ;;  %v8471_v22 = vadd.f32 %v8470_v33, %v7845_v49  ;;  %v9072_v33 = vld [vmem:[%s11073_s6 + $0x10] sm:$0xff]  ;;  %v9005_v49 = vld [vmem:[%s11080_s13 + $0xd8] sm:$0xff]  }
 0x82d   : > { %v7847_v46 = vpop.f32.mrb[67].mxu0 }
 0x82e   : > { %v7848_v63 = vadd.f32 %v7847_v46, %v7846_v20  ;;  %v9006_v20 = vld [vmem:[%s11080_s13 + $0x120] sm:$0xff]   ;;  %v9008_v46 = vld [vmem:[%s11080_s13 + $0x128] sm:$0xff]  }
 0x830   : > { %v8468_v0 = vadd.f32 %v8467_v41, %v7848_v63  ;;  %v9076_v41 = vld [vmem:[%s11073_s6 + $0x30] sm:$0xff]  ;;  %v9009_v63 = vld [vmem:[%s11080_s13 + $0xe8] sm:$0xff]  }
 0x840   : > { %v8321_v8 = vpop.f32.mrb[48].mxu0 }
 0x841   : > { %v8463_v9 = vadd.f32 %v8462_v17, %v8321_v8  ;;  %v5354_v45 = vpop.f32.mrb[49].mxu0  ;;  %v9003_v17 = vld [vmem:[%s11080_s13 + $0xd0] sm:$0xff]   ;;  %v9014_v8 = vld [vmem:[%s11080_s13 + $0x40] sm:$0xff]  }
 0x842   : > { %v8466_v53 = vadd.f32 %v8465_v14, %v5354_v45  ;;  %v9081_v14 = vld [vmem:[%s11073_s6 + $0x58] sm:$0xff]  ;;  %v9021_v45 = vld [vmem:[%s11080_s13 + $0x148] sm:$0xff]  }
 0x843   : > { %v5407_v47 = vadd.f32 %v8463_v9, %v5398_v7  ;;  %v9018_v9 = vld [vmem:[%s11080_s13 + $0x140] sm:$0xff]  }
 0x844   : > { %v5404_v16 = vadd.f32 %v8466_v53, %v5398_v7  ;;  %v8324_v10 = vpop.f32.mrb[50].mxu0  ;;  %8351 = vmatprep.subr.bf16.mxu1 %v9018_v9  ;;  %v9024_v53 = vld [vmem:[%s11080_s13 + $0x150] sm:$0xff]  }
 0x845   : > { %v8469_v23 = vadd.f32 %v8468_v0, %v8324_v10  ;;  %v5364_v57 = vpop.f32.mrb[51].mxu0  ;;  %v9010_v0 = vld [vmem:[%s11080_s13 + $0x130] sm:$0xff]   ;;  %8352 = vmatpush3.bf16.msra.mxu1 %v9018_v9  ;;  %v9033_v10 = vld [vmem:[%s11080_s13 + $0x168] sm:$0xff]   ;;  %v9047_v9 = vld [vmem:[%s11080_s13 + $0x198] sm:$0xff]  }
 0x846   : > { %v8472_v62 = vadd.f32 %v8471_v22, %v5364_v57  ;;  %v8453_v24 = vpack.c.bf16 %v5407_v47, %v5404_v16  ;;  %v9007_v22 = vld [vmem:[%s11080_s13 + $0xe0] sm:$0xff]   ;;  %8353 = vmatprep.subr.bf16.mxu1 %v9021_v45  ;;  %v9027_v47 = vld [vmem:[%s11080_s13 + $0x158] sm:$0xff]  }
 0x847   : > { %v5413_v54 = vadd.f32 %v8469_v23, %v5398_v7  ;;  %v9030_v16 = vld [vmem:[%s11080_s13 + $0x160] sm:$0xff]   ;;  %v9036_v23 = vld [vmem:[%s11080_s13 + $0x170] sm:$0xff]   ;;  %v9039_v57 = vld [vmem:[%s11080_s13 + $0x178] sm:$0xff]  }
 0x848   : > { %v5410_v56 = vadd.f32 %v8472_v62, %v5398_v7  ;;  %v9013_v7 = vld [vmem:[%s11080_s13 + $0xf8] sm:$0xff]   ;;  %v10857_v62 = vld [vmem:[%s11080_s13 + $0x80] sm:$0xff]  }
 0x849   : > { %8354 = vmatpush3.bf16.msra.mxu1 %v9021_v45  ;;  %v9048_v45 = vld [vmem:[%s11080_s13 + $0x90] sm:$0xff]  }
 0x84a   : > { %v8457_v60 = vpack.c.bf16 %v5413_v54, %v5410_v56  ;;  %8355 = vmatprep.subr.bf16.mxu1 %v9024_v53 }
 0x84d   : > { %8356 = vmatpush3.bf16.msra.mxu1 %v9024_v53  ;;  %v9049_v53 = vld [vmem:[%s11080_s13 + $0x1e0] sm:$0xff]  }
 0x84e   : > { %8357 = vmatprep.subr.bf16.mxu1 %v9027_v47 }
 0x851   : > { %8358 = vmatpush3.bf16.msra.mxu1 %v9027_v47 }
 0x852   : > { %8359 = vmatprep.subr.bf16.mxu1 %v9030_v16 }
 0x855   : > { %8360 = vmatpush3.bf16.msra.mxu1 %v9030_v16  ;;  %v9050_v16 = vld [vmem:[%s11080_s13 + $0x1a0] sm:$0xff]  }
 0x856   : > { %8361 = vmatprep.subr.bf16.mxu1 %v9033_v10 }
 0x859   : > { %8362 = vmatpush3.bf16.msra.mxu1 %v9033_v10  ;;  %v9051_v10 = vld [vmem:[%s11080_s13 + $0x98] sm:$0xff]  }
 0x85a   : > { %8363 = vmatprep.subr.bf16.mxu1 %v9036_v23 }
 0x85d   : > { %8364 = vmatpush3.bf16.msra.mxu1 %v9036_v23 }
 0x85e   : > { %8365 = vmatprep.subr.bf16.mxu1 %v9039_v57 }
 0x861   : > { %8366 = vmatpush3.bf16.msra.mxu1 %v9039_v57  ;;  %v9052_v57 = vld [vmem:[%s11080_s13 + $0x1e8] sm:$0xff]  }
 0x862   : > { %8373 = vmatprep.subr.bf16.mxu1 %v10857_v62 }
 0x87e   : > { %v5244_v15 = vpop.f32.mrb[64].mxu1 }
 0x87f   : > { %v5246_v30 = vpop.f32.mrb[65].mxu1  ;;  %v5402_v34 = vadd.f32 %v5390_v58, %v5244_v15 }
 0x880   : > { %v5403_v37 = vadd.f32 %v5394_v31, %v5246_v30 }
 0x882   : > { %v5250_v32 = vpop.f32.mrb[66].mxu1 }
 0x883   : > { %v5405_v2 = vadd.f32 %v5390_v58, %v5250_v32  ;;  %v5252_v36 = vpop.f32.mrb[67].mxu1 }
 0x884   : > { %v5406_v1 = vadd.f32 %v5394_v31, %v5252_v36  ;;  %v9016_v36 = vld [vmem:[%s11080_s13 + $0x48] sm:$0xff]  }
 0x885   : > { %v8447_v38 = vpack.c.bf16 %v5405_v2, %v5402_v34  ;;  %v9015_v34 = vld [vmem:[%s11080_s13] sm:$0xff]  }
 0x886   : > { %v8445_v40 = vpack.c.bf16 %v5406_v1, %v5403_v37  ;;  %v5256_v4 = vpop.f32.mrb[68].mxu1  ;;  %v9017_v1 = vld [vmem:[%s11080_s13 + $0x8] sm:$0xff]  }
 0x887   : > { %v5258_v42 = vpop.f32.mrb[69].mxu1  ;;  %v5408_v3 = vadd.f32 %v5390_v58, %v5256_v4 }
 0x888   : > { %8446 = vmatprep.subr.bf16.mxu0 %v8445_v40  ;;  %v5409_v44 = vadd.f32 %v5394_v31, %v5258_v42  ;;  %v9019_v40 = vld [vmem:[%s11080_s13 + $0x50] sm:$0xff]  }
 0x889   : > { %8448 = vmatpush1.bf16.msra.mxu0 %v8447_v38  ;;  %v9020_v42 = vld [vmem:[%s11080_s13 + $0x10] sm:$0xff]  }
 0x88a   : > { %v5262_v43 = vpop.f32.mrb[70].mxu1 }
 0x88b   : > { %v5411_v48 = vadd.f32 %v5390_v58, %v5262_v43  ;;  %v5264_v19 = vpop.f32.mrb[71].mxu1 }
 0x88c   : > { %v5412_v35 = vadd.f32 %v5394_v31, %v5264_v19  ;;  %v9023_v19 = vld [vmem:[%s11080_s13 + $0x18] sm:$0xff]  }
 0x88d   : > { %v8451_v18 = vpack.c.bf16 %v5411_v48, %v5408_v3  ;;  %v9022_v3 = vld [vmem:[%s11080_s13 + $0x58] sm:$0xff]  }
 0x88e   : > { %v8449_v21 = vpack.c.bf16 %v5412_v35, %v5409_v44  ;;  %v9025_v35 = vld [vmem:[%s11080_s13 + $0x60] sm:$0xff]  }
 0x890   : > { %8450 = vmatprep.subr.bf16.mxu0 %v8449_v21  ;;  %v9026_v21 = vld [vmem:[%s11080_s13 + $0x20] sm:$0xff]  }
 0x891   : > { %8452 = vmatpush1.bf16.msra.mxu0 %v8451_v18 }
 0x892   : > { %8454 = vmatprep.subr.bf16.mxu0 %v8453_v24 }
 0x894   : > { %7388 = vmatmul.mubr.msk.f32.vlgmr.msra.gmra.mrb[68].mxu0 %vm951_vm1, %v9070_v12 }
 0x895   : > { %8456 = vmatpush3.bf16.msra.mxu0 %v8453_v24  ;;  %5484 = vmatprep.mubr.f32.mxu0 %v9090_v61 }
 0x896   : > { %8458 = vmatprep.subr.bf16.mxu0 %v8457_v60 }
 0x898   : > { %7389 = vmatmul.mubr.msk.f32.gmra.mrb[70].mxu0 %vm951_vm1, %v9071_v13 }
 0x899   : > { %8460 = vmatpush3.bf16.msra.mxu0 %v8457_v60  ;;  %5490 = vmatprep.mubr.f32.mxu0 %v9090_v61 }
 0x89a   : > { %7877 = vmatprep.subr.bf16.mxu0 %v8998_v26  ;;  %v9028_v26 = vld [vmem:[%s11080_s13 + $0x68] sm:$0xff]  }
 0x89c   : > { %7390 = vmatmul.mubr.msk.f32.gmra.mrb[72].mxu0 %vm951_vm1, %v9072_v33 }
 0x89d   : > { %5496 = vmatprep.mubr.f32.mxu0 %v9090_v61 }
 0x8a0   : > { %7391 = vmatmul.mubr.msk.f32.gmra.mrb[74].mxu0 %vm951_vm1, %v9073_v50 }
 0x8a1   : > { %5502 = vmatprep.mubr.f32.mxu0 %v9090_v61 }
 0x8a4   : > { %7392 = vmatmul.mubr.msk.f32.gmra.mrb[76].mxu0 %vm951_vm1, %v9074_v51 }
 0x8a5   : > { %5508 = vmatprep.mubr.f32.mxu0 %v9090_v61 }
 0x8a8   : > { %7393 = vmatmul.mubr.msk.f32.gmra.mrb[78].mxu0 %vm951_vm1, %v9075_v52 }
 0x8a9   : > { %5514 = vmatprep.mubr.f32.mxu0 %v9090_v61 }
 0x8ac   : > { %7394 = vmatmul.mubr.msk.f32.gmra.mrb[80].mxu0 %vm951_vm1, %v9076_v41 }
 0x8ad   : > { %5520 = vmatprep.mubr.f32.mxu0 %v9090_v61 }
 0x8b0   : > { %7395 = vmatmul.mubr.msk.f32.gmra.mrb[82].mxu0 %vm951_vm1, %v9077_v25 }
 0x8b1   : > { %5526 = vmatprep.mubr.f32.mxu0 %v9090_v61 }
 0x8b4   : > { %7396 = vmatmul.mubr.msk.f32.gmra.mrb[84].mxu0 %vm951_vm1, %v9078_v27 }
 0x8b5   : > { %5532 = vmatprep.mubr.f32.mxu0 %v9090_v61 }
 0x8b8   : > { %7397 = vmatmul.mubr.msk.f32.gmra.mrb[86].mxu0 %vm951_vm1, %v9079_v55 }
 0x8b9   : > { %5538 = vmatprep.mubr.f32.mxu0 %v9090_v61 }
 0x8bc   : > { %7398 = vmatmul.mubr.msk.f32.gmra.mrb[88].mxu0 %vm951_vm1, %v9080_v39 }
 0x8bd   : > { %5544 = vmatprep.mubr.f32.mxu0 %v9090_v61  ;;  %v9001_v61 = vld [vmem:[%s11080_s13 + $0xc8] sm:$0xff]  }
 0x8c0   : > { %7399 = vmatmul.mubr.msk.f32.gmra.mrb[90].mxu0 %vm951_vm1, %v9081_v14 }
 0x8c1   : > { %8333 = vmatprep.mubr.msk.f32.mxu0 %vm951_vm1, %v9070_v12 }
 0x8c4   : > { %8334 = vmatmul.mubr.msk.f32.vlgmr.msra.gmra.mrb[92].mxu0 %vm951_vm1, %v9071_v13 }
 0x8c5   : > { %8336 = vmatprep.mubr.msk.f32.mxu0 %vm951_vm1, %v9072_v33  ;;  %7878 = vmatpush3.bf16.msra.mxu0 %v8999_v11  ;;  %v9029_v33 = vld [vmem:[%s11080_s13 + $0x28] sm:$0xff]   ;;  %v9037_v11 = vld [vmem:[%s11080_s13 + $0x1c0] sm:$0xff]  }
 0x8c6   : > { %7879 = vmatprep.subr.bf16.mxu0 %v9000_v29 }
 0x8c8   : > { %8337 = vmatmul.mubr.msk.f32.gmra.mrb[94].mxu0 %vm951_vm1, %v9073_v50 }
 0x8c9   : > { %8339 = vmatprep.mubr.msk.f32.mxu0 %vm951_vm1, %v9074_v51  ;;  %7880 = vmatpush3.bf16.msra.mxu0 %v9001_v61  ;;  %v9031_v51 = vld [vmem:[%s11080_s13 + $0x70] sm:$0xff]   ;;  %v9038_v61 = vld [vmem:[%s11080_s13 + $0x180] sm:$0xff]  }
 0x8ca   : > { %7881 = vmatprep.subr.bf16.mxu0 %v9002_v59 }
 0x8cc   : > { %8340 = vmatmul.mubr.msk.f32.gmra.mrb[96].mxu0 %vm951_vm1, %v9075_v52 }
 0x8cd   : > { %8342 = vmatprep.mubr.msk.f32.mxu0 %vm951_vm1, %v9076_v41  ;;  %7882 = vmatpush3.bf16.msra.mxu0 %v9003_v17  ;;  %v9032_v41 = vld [vmem:[%s11080_s13 + $0x30] sm:$0xff]   ;;  %v9040_v17 = vld [vmem:[%s11080_s13 + $0x1c8] sm:$0xff]  }
 0x8ce   : > { %7883 = vmatprep.subr.bf16.mxu0 %v9004_v28 }
 0x8d0   : > { %8343 = vmatmul.mubr.msk.f32.gmra.mrb[98].mxu0 %vm951_vm1, %v9077_v25 }
 0x8d1   : > { %8345 = vmatprep.mubr.msk.f32.mxu0 %vm951_vm1, %v9078_v27  ;;  %7884 = vmatpush3.bf16.msra.mxu0 %v9005_v49  ;;  %v9034_v27 = vld [vmem:[%s11080_s13 + $0x78] sm:$0xff]   ;;  %v9041_v49 = vld [vmem:[%s11080_s13 + $0x188] sm:$0xff]  }
 0x8d2   : > { %7885 = vmatprep.subr.bf16.mxu0 %v9006_v20 }
 0x8d4   : > { %8346 = vmatmul.mubr.msk.f32.gmra.mrb[100].mxu0 %vm951_vm1, %v9079_v55 }
 0x8d5   : > { %8348 = vmatprep.mubr.msk.f32.mxu0 %vm951_vm1, %v9080_v39  ;;  %7886 = vmatpush3.bf16.msra.mxu0 %v9007_v22  ;;  %v9035_v39 = vld [vmem:[%s11080_s13 + $0x38] sm:$0xff]   ;;  %v9043_v22 = vld [vmem:[%s11080_s13 + $0x1d0] sm:$0xff]  }
 0x8d6   : > { %7887 = vmatprep.subr.bf16.mxu0 %v9008_v46 }
 0x8d8   : > { %8349 = vmatmul.mubr.msk.f32.gmra.mrb[102].mxu0 %vm951_vm1, %v9081_v14 }
 0x8d9   : > { %7888 = vmatpush3.bf16.msra.mxu0 %v9009_v63 }
 0x8da   : > { %7889 = vmatprep.subr.bf16.mxu0 %v9010_v0  ;;  %v9044_v0 = vld [vmem:[%s11080_s13 + $0x190] sm:$0xff]  }
 0x8dd   : > { %7890 = vmatpush3.bf16.msra.mxu0 %v9011_v5  ;;  %v9045_v5 = vld [vmem:[%s11080_s13 + $0x88] sm:$0xff]  }
 0x8de   : > { %7891 = vmatprep.subr.bf16.mxu0 %v9012_v6  ;;  %v9046_v6 = vld [vmem:[%s11080_s13 + $0x1d8] sm:$0xff]  }
 0x8e1   : > { %7892 = vmatpush3.bf16.msra.mxu0 %v9013_v7 }
 0x8e2   : > { %7917 = vmatprep.subr.bf16.mxu0 %v9014_v8 }
 0x967   : > { %v10860_v24 = vpop.f32.mrb[68].mxu0 }
 0x968   : > { %v5482_v54 = vpop.f32.mrb[69].mxu0 }
 0x96b   : > { %v10862_v56 = vpop.f32.mrb[70].mxu0 }
 0x96c   : > { %v10864_v60 = vpop.f32.mrb[71].mxu0 }
 0x96f   : > { %v10866_v15 = vpop.f32.mrb[72].mxu0 }
 0x970   : > { %v10868_v58 = vpop.f32.mrb[73].mxu0 }
 0x973   : > { %v10870_v30 = vpop.f32.mrb[74].mxu0 }
 0x974   : > { %v10872_v31 = vpop.f32.mrb[75].mxu0 }
 0x977   : > { %v5504_v32 = vpop.f32.mrb[76].mxu0 }
 0x978   : > { %v5506_v2 = vpop.f32.mrb[77].mxu0 }
 0x979   : > { %5949 = vmatprep.mubr.f32.mxu0 %v5506_v2  ;;  %v9062_v2 = vld [vmem:[%s11080_s13 + $0x200] sm:$0xff]  }
 0x97a   : > { %5950 = vmatmul.mubr.f32.vlgmr.msra.gmra.mrb[104].mxu0 %v5504_v32  ;;  %v9060_v32 = vld [vmem:[%s11080_s13 + $0xb0] sm:$0xff]  }
 0x97b   : > { %7918 = vmatpush3.bf16.msra.mxu0 %v9015_v34  ;;  %v5510_v37 = vpop.f32.mrb[78].mxu0  ;;  %v9061_v34 = vld [vmem:[%s11080_s13 + $0xb8] sm:$0xff]  }
 0x97c   : > { %v5512_v38 = vpop.f32.mrb[79].mxu0  ;;  %7919 = vmatprep.subr.bf16.mxu0 %v9016_v36  ;;  %v9063_v36 = vld [vmem:[%s11080_s13 + $0x208] sm:$0xff]  }
 0x97d   : > { %5954 = vmatprep.mubr.f32.mxu0 %v5512_v38  ;;  %v9066_v38 = vld [vmem:[%s11080_s13 + $0x220] sm:$0xff]  }
 0x97e   : > { %5955 = vmatmul.mubr.f32.gmra.mrb[106].mxu0 %v5510_v37  ;;  %v9064_v37 = vld [vmem:[%s11080_s13 + $0x210] sm:$0xff]  }
 0x97f   : > { %7920 = vmatpush3.bf16.msra.mxu0 %v9017_v1  ;;  %v5516_v4 = vpop.f32.mrb[80].mxu0  ;;  %v9065_v1 = vld [vmem:[%s11080_s13 + $0x218] sm:$0xff]  }
 0x980   : > { %v5518_v43 = vpop.f32.mrb[81].mxu0  ;;  %7921 = vmatprep.subr.bf16.mxu0 %v9019_v40  ;;  %v9067_v40 = vld [vmem:[%s11080_s13 + $0x228] sm:$0xff]  }
 0x981   : > { %5959 = vmatprep.mubr.f32.mxu0 %v5518_v43 }
 0x982   : > { %5960 = vmatmul.mubr.f32.gmra.mrb[108].mxu0 %v5516_v4  ;;  %v9068_v4 = vld [vmem:[%s11080_s13 + $0x230] sm:$0xff]  }
 0x983   : > { %7922 = vmatpush3.bf16.msra.mxu0 %v9020_v42  ;;  %v5522_v48 = vpop.f32.mrb[82].mxu0  ;;  %v9069_v42 = vld [vmem:[%s11080_s13 + $0x238] sm:$0xff]  }
 0x984   : > { %v5524_v44 = vpop.f32.mrb[83].mxu0  ;;  %7923 = vmatprep.subr.bf16.mxu0 %v9022_v3 }
 0x985   : > { %5964 = vmatprep.mubr.f32.mxu0 %v5524_v44 }
 0x986   : > { %5965 = vmatmul.mubr.f32.gmra.mrb[110].mxu0 %v5522_v48 }
 0x987   : > { %7924 = vmatpush3.bf16.msra.mxu0 %v9023_v19  ;;  %v10898_v18 = vpop.f32.mrb[84].mxu0  ;;  %6199 = vmatprep.mubr.f32.mxu0 %v5482_v54  ;;  %v9054_v54 = vld [vmem:[%s11080_s13 + $0xa0] sm:$0xff]  }
 0x988   : > { %v5530_v12 = vpop.f32.mrb[85].mxu0  ;;  %7925 = vmatprep.subr.bf16.mxu0 %v9025_v35 }
 0x98b   : > { %7926 = vmatpush3.bf16.msra.mxu0 %v9026_v21  ;;  %v10906_v13 = vpop.f32.mrb[86].mxu0 }
 0x98c   : > { %v10911_v50 = vpop.f32.mrb[87].mxu0  ;;  %7927 = vmatprep.subr.bf16.mxu0 %v9028_v26 }
 0x98f   : > { %7928 = vmatpush3.bf16.msra.mxu0 %v9029_v33  ;;  %v10916_v52 = vpop.f32.mrb[88].mxu0 }
 0x990   : > { %v10921_v25 = vpop.f32.mrb[89].mxu0  ;;  %7929 = vmatprep.subr.bf16.mxu0 %v9031_v51 }
 0x993   : > { %7930 = vmatpush3.bf16.msra.mxu0 %v9032_v41  ;;  %v10926_v55 = vpop.f32.mrb[90].mxu0 }
 0x994   : > { %v10931_v14 = vpop.f32.mrb[91].mxu0  ;;  %7931 = vmatprep.subr.bf16.mxu0 %v9034_v27 }
 0x997   : > { %7932 = vmatpush3.bf16.msra.mxu0 %v9035_v39  ;;  %v10936_v29 = vpop.f32.mrb[92].mxu0 }
 0x998   : > { %v5617_v59 = vpop.f32.mrb[93].mxu0  ;;  %7957 = vmatprep.subr.bf16.mxu0 %v9037_v11 }
 0x99a   : > { %6200 = vmatmul.mubr.f32.vlgmr.msra.gmra.mrb[112].mxu0 %v10860_v24  ;;  %v9053_v24 = vld [vmem:[%s11080_s13 + $0x1a8] sm:$0xff]  }
 0x99b   : > { %6204 = vmatprep.mubr.f32.mxu0 %v10864_v60  ;;  %7958 = vmatpush3.bf16.msra.mxu0 %v9038_v61  ;;  %v10946_v28 = vpop.f32.mrb[94].mxu0  ;;  %v9055_v60 = vld [vmem:[%s11080_s13 + $0x1f0] sm:$0xff]  }
 0x99c   : > { %v10951_v20 = vpop.f32.mrb[95].mxu0  ;;  %7959 = vmatprep.subr.bf16.mxu0 %v9040_v17 }
 0x99e   : > { %6205 = vmatmul.mubr.f32.gmra.mrb[114].mxu0 %v10862_v56 }
 0x99f   : > { %6209 = vmatprep.mubr.f32.mxu0 %v10868_v58  ;;  %7960 = vmatpush3.bf16.msra.mxu0 %v9041_v49  ;;  %v8341_v46 = vpop.f32.mrb[96].mxu0  ;;  %v9057_v58 = vld [vmem:[%s11080_s13 + $0xa8] sm:$0xff]  }
 0x9a0   : > { %v5637_v63 = vpop.f32.mrb[97].mxu0  ;;  %7961 = vmatprep.subr.bf16.mxu0 %v9043_v22 }
 0x9a1   : > { %8367 = vmatprep.mubr.f32.mxu1 %v5637_v63 }
 0x9a2   : > { %6210 = vmatmul.mubr.f32.gmra.mrb[116].mxu0 %v10866_v15  ;;  %8368 = vmatmul.mubr.f32.vlgmr.msra.gmra.mrb[72].mxu1 %v8341_v46  ;;  %v9056_v15 = vld [vmem:[%s11080_s13 + $0x1b0] sm:$0xff]  }
 0x9a3   : > { %6214 = vmatprep.mubr.f32.mxu0 %v10872_v31  ;;  %8374 = vmatpush3.bf16.msra.mxu1 %v10857_v62  ;;  %v8344_v7 = vpop.f32.mrb[98].mxu0  ;;  %v9059_v31 = vld [vmem:[%s11080_s13 + $0x1b8] sm:$0xff]  }
 0x9a4   : > { %7962 = vmatpush3.bf16.msra.mxu0 %v9044_v0  ;;  %v5647_v8 = vpop.f32.mrb[99].mxu0  ;;  %8375 = vmatprep.subr.bf16.mxu1 %v9045_v5 }
 0x9a5   : > { %8370 = vmatprep.mubr.f32.mxu1 %v5647_v8  ;;  %7963 = vmatprep.subr.bf16.mxu0 %v9046_v6 }
 0x9a6   : > { %6215 = vmatmul.mubr.f32.gmra.mrb[118].mxu0 %v10870_v30  ;;  %8371 = vmatmul.mubr.f32.gmra.mrb[74].mxu1 %v8344_v7  ;;  %v9058_v30 = vld [vmem:[%s11080_s13 + $0x1f8] sm:$0xff]  }
 0x9a7   : > { %8376 = vmatpush3.bf16.msra.mxu1 %v9045_v5  ;;  %6498 = vmatprep.mubr.f32.mxu0 %v5530_v12  ;;  %v10980_v47 = vpop.f32.mrb[100].mxu0 }
 0x9a8   : > { %7964 = vmatpush3.bf16.msra.mxu0 %v9047_v9  ;;  %8389 = vmatprep.mubr.f32.mxu1 %v5617_v59  ;;  %v5657_v23 = vpop.f32.mrb[101].mxu0 }
 0x9a9   : > { %8377 = vmatprep.subr.bf16.mxu1 %v9048_v45  ;;  %7965 = vmatprep.subr.bf16.mxu0 %v9049_v53 }
 0x9ab   : > { %8378 = vmatpush3.bf16.msra.mxu1 %v9048_v45  ;;  %v10991_v62 = vpop.f32.mrb[102].mxu0 }
 0x9ac   : > { %7966 = vmatpush3.bf16.msra.mxu0 %v9050_v16  ;;  %8379 = vmatprep.subr.bf16.mxu1 %v9051_v10  ;;  %v5667_v56 = vpop.f32.mrb[103].mxu0 }
 0x9ad   : > { %7967 = vmatprep.subr.bf16.mxu0 %v9052_v57 }
 0x9af   : > { %8380 = vmatpush3.bf16.msra.mxu1 %v9051_v10 }
 0x9b0   : > { %7968 = vmatpush3.bf16.msra.mxu0 %v9053_v24  ;;  %8381 = vmatprep.subr.bf16.mxu1 %v9054_v54 }
 0x9b1   : > { %7969 = vmatprep.subr.bf16.mxu0 %v9055_v60 }
 0x9b3   : > { %8382 = vmatpush3.bf16.msra.mxu1 %v9054_v54 }
 0x9b4   : > { %7970 = vmatpush3.bf16.msra.mxu0 %v9056_v15  ;;  %8383 = vmatprep.subr.bf16.mxu1 %v9057_v58 }
 0x9b5   : > { %7971 = vmatprep.subr.bf16.mxu0 %v9058_v30 }
 0x9b7   : > { %8384 = vmatpush3.bf16.msra.mxu1 %v9057_v58 }
 0x9b8   : > { %7972 = vmatpush3.bf16.msra.mxu0 %v9059_v31  ;;  %8385 = vmatprep.subr.bf16.mxu1 %v9060_v32 }
 0x9bb   : > { %6499 = vmatmul.mubr.f32.vlgmr.msra.gmra.mrb[120].mxu0 %v10898_v18  ;;  %8386 = vmatpush3.bf16.msra.mxu1 %v9060_v32 }
 0x9bc   : > { %6503 = vmatprep.mubr.f32.mxu0 %v10911_v50  ;;  %8387 = vmatprep.subr.bf16.mxu1 %v9061_v34 }
 0x9bf   : > { %6504 = vmatmul.mubr.f32.gmra.mrb[122].mxu0 %v10906_v13  ;;  %8388 = vmatpush3.bf16.msra.mxu1 %v9061_v34 }
 0x9c0   : > { %6508 = vmatprep.mubr.f32.mxu0 %v10921_v25  ;;  %8395 = vmatprep.subr.bf16.mxu1 %v9062_v2 }
 0x9c2   : > { %8390 = vmatmul.mubr.f32.vlgmr.msra.gmra.mrb[72].mxu1 %v10936_v29 }
 0x9c3   : > { %6509 = vmatmul.mubr.f32.gmra.mrb[124].mxu0 %v10916_v52  ;;  %8392 = vmatprep.mubr.f32.mxu1 %v10951_v20 }
 0x9c4   : > { %6513 = vmatprep.mubr.f32.mxu0 %v10931_v14  ;;  %8396 = vmatpush3.bf16.msra.mxu1 %v9062_v2 }
 0x9c5   : > { %8397 = vmatprep.subr.bf16.mxu1 %v9063_v36 }
 0x9c6   : > { %8393 = vmatmul.mubr.f32.gmra.mrb[74].mxu1 %v10946_v28 }
 0x9c7   : > { %6514 = vmatmul.mubr.f32.gmra.mrb[126].mxu0 %v10926_v55  ;;  %8411 = vmatprep.mubr.f32.mxu1 %v5657_v23 }
 0x9c8   : > { %8398 = vmatpush3.bf16.msra.mxu1 %v9063_v36 }
 0x9c9   : > { %8399 = vmatprep.subr.bf16.mxu1 %v9064_v37 }
 0x9cc   : > { %8400 = vmatpush3.bf16.msra.mxu1 %v9064_v37 }
 0x9cd   : > { %8401 = vmatprep.subr.bf16.mxu1 %v9065_v1 }
 0x9d0   : > { %8402 = vmatpush3.bf16.msra.mxu1 %v9065_v1 }
 0x9d1   : > { %8403 = vmatprep.subr.bf16.mxu1 %v9066_v38 }
 0x9d4   : > { %8404 = vmatpush3.bf16.msra.mxu1 %v9066_v38 }
 0x9d5   : > { %8405 = vmatprep.subr.bf16.mxu1 %v9067_v40 }
 0x9d8   : > { %8406 = vmatpush3.bf16.msra.mxu1 %v9067_v40 }
 0x9d9   : > { %8407 = vmatprep.subr.bf16.mxu1 %v9068_v4 }
 0x9dc   : > { %8408 = vmatpush3.bf16.msra.mxu1 %v9068_v4 }
 0x9dd   : > { %8409 = vmatprep.subr.bf16.mxu1 %v9069_v42 }
 0x9e0   : > { %8410 = vmatpush3.bf16.msra.mxu1 %v9069_v42 }
 0x9e3   : > { %8412 = vmatmul.mubr.f32.vlgmr.msra.gmra.mrb[72].mxu1 %v10980_v47 }
 0x9e4   : > { %8414 = vmatprep.mubr.f32.mxu1 %v5667_v56 }
 0x9e7   : > { %8415 = vmatmul.mubr.f32.gmra.mrb[74].mxu1 %v10991_v62  ;;  %v7580_v62 = vld [vmem:[%s11087_s20] ss:$0 sm:$0xff] }
 0xa4d   : > { %v7893_v43 = vpop.f32.mrb[104].mxu0 }
 0xa4e   : > { %v7894_v3 = vpop.f32.mrb[105].mxu0 }
 0xa4f   : > { %v7895_v48 = vadd.f32 %v7894_v3, %v7893_v43 }
 0xa51   : > { %v7896_v19 = vpop.f32.mrb[106].mxu0 }
 0xa52   : > { %v7897_v44 = vpop.f32.mrb[107].mxu0 }
 0xa53   : > { %v7898_v35 = vadd.f32 %v7897_v44, %v7896_v19 }
 0xa55   : > { %v7899_v18 = vpop.f32.mrb[108].mxu0 }
 0xa56   : > { %v7900_v21 = vpop.f32.mrb[109].mxu0 }
 0xa57   : > { %v7901_v12 = vadd.f32 %v7900_v21, %v7899_v18 }
 0xa59   : > { %v7902_v26 = vpop.f32.mrb[110].mxu0 }
 0xa5a   : > { %v7903_v13 = vpop.f32.mrb[111].mxu0 }
 0xa5b   : > { %v7904_v33 = vadd.f32 %v7903_v13, %v7902_v26 }
 0xa6d   : > { %v7933_v50 = vpop.f32.mrb[112].mxu0 }
 0xa6e   : > { %v7934_v51 = vpop.f32.mrb[113].mxu0 }
 0xa6f   : > { %v7935_v52 = vadd.f32 %v7934_v51, %v7933_v50 }
 0xa71   : > { %v8476_v41 = vadd.f32 %v7935_v52, %v7895_v48  ;;  %v7936_v25 = vpop.f32.mrb[114].mxu0 }
 0xa72   : > { %v7937_v27 = vpop.f32.mrb[115].mxu0 }
 0xa73   : > { %v7938_v55 = vadd.f32 %v7937_v27, %v7936_v25 }
 0xa75   : > { %v8473_v39 = vadd.f32 %v7938_v55, %v7898_v35  ;;  %v7939_v14 = vpop.f32.mrb[116].mxu0 }
 0xa76   : > { %v7940_v11 = vpop.f32.mrb[117].mxu0 }
 0xa77   : > { %v7941_v29 = vadd.f32 %v7940_v11, %v7939_v14 }
 0xa79   : > { %v8482_v61 = vadd.f32 %v7941_v29, %v7901_v12  ;;  %v7942_v59 = vpop.f32.mrb[118].mxu0 }
 0xa7a   : > { %v7943_v17 = vpop.f32.mrb[119].mxu0 }
 0xa7b   : > { %v7944_v28 = vadd.f32 %v7943_v17, %v7942_v59 }
 0xa7d   : > { %v8479_v49 = vadd.f32 %v7944_v28, %v7904_v33 }
 0xa8e   : > { %v7973_v20 = vpop.f32.mrb[120].mxu0 }
 0xa8f   : > { %v7974_v22 = vpop.f32.mrb[121].mxu0 }
 0xa90   : > { %v7975_v46 = vadd.f32 %v7974_v22, %v7973_v20 }
 0xa92   : > { %v7976_v63 = vpop.f32.mrb[122].mxu0  ;;  %v8477_v0 = vadd.f32 %v8476_v41, %v7975_v46 }
 0xa93   : > { %v7977_v5 = vpop.f32.mrb[123].mxu0 }
 0xa94   : > { %v7978_v6 = vadd.f32 %v7977_v5, %v7976_v63 }
 0xa96   : > { %v7979_v7 = vpop.f32.mrb[124].mxu0  ;;  %v8474_v8 = vadd.f32 %v8473_v39, %v7978_v6 }
 0xa97   : > { %v7980_v9 = vpop.f32.mrb[125].mxu0 }
 0xa98   : > { %v7981_v45 = vadd.f32 %v7980_v9, %v7979_v7 }
 0xa9a   : > { %v7982_v53 = vpop.f32.mrb[126].mxu0  ;;  %v8483_v47 = vadd.f32 %v8482_v61, %v7981_v45 }
 0xa9b   : > { %v7983_v16 = vpop.f32.mrb[127].mxu0 }
 0xa9c   : > { %v7984_v10 = vadd.f32 %v7983_v16, %v7982_v53 }
 0xa9e   : > { %v8480_v23 = vadd.f32 %v8479_v49, %v7984_v10 }
 0xab6   : > { %v8413_v57 = vpop.f32.mrb[72].mxu1 }
 0xab7   : > { %v8475_v24 = vadd.f32 %v8474_v8, %v8413_v57  ;;  %v6553_v54 = vpop.f32.mrb[73].mxu1 }
 0xab8   : > { %v8478_v56 = vadd.f32 %v8477_v0, %v6553_v54 }
 0xab9   : > { %v6584_v60 = vadd.f32 %v8475_v24, %v7580_v62 }
 0xaba   : > { %v6583_v15 = vadd.f32 %v8478_v56, %v7580_v62  ;;  %v8416_v58 = vpop.f32.mrb[74].mxu1 }
 0xabb   : > { %6588 = vst [vmem:[%s693_s22 + $0x8] sm:$0xff] %v6584_v60  ;;  %v8481_v30 = vadd.f32 %v8480_v23, %v8416_v58  ;;  %v6563_v31 = vpop.f32.mrb[75].mxu1 }
 0xabc   : > { %6587 = vst [vmem:[%s693_s22] sm:$0xff] %v6583_v15  ;;  %v8484_v32 = vadd.f32 %v8483_v47, %v6563_v31 }
 0xabd   : > { %v6586_v34 = vadd.f32 %v8481_v30, %v7580_v62 }
 0xabe   : > { %v6585_v2 = vadd.f32 %v8484_v32, %v7580_v62 }
 0xabf   : > { %6590 = vst [vmem:[%s693_s22 + $0x18] sm:$0xff] %v6586_v34 }
 0xac0   : > { %6589 = vst [vmem:[%s693_s22 + $0x10] sm:$0xff] %v6585_v2 }
 0xac1 PF: > { %s31_s2 = sadd.s32 1, %s9088_s2  }
 0xac2   : > { %p28_p4 = scmp.ge.s32.totalorder %s31_s2, 4  }
 0xac4   :  { %30 = sbr.rel (!%p28_p4) target bundleno = 7 (0x7), region = 154 }

</bundles_post_ra>
